<compile_context>
chip_gen: v5e
topology: v5e:2x2
jax: 0.10.0
libtpu: 0.0.40
codegen_flags: <defaults>
</compile_context>

<pallas_src>
import functools

import jax
import jax.numpy as jnp
from jax import lax
from jax.experimental import pallas as pl
from jax.experimental.pallas import tpu as pltpu

LEAKY_SLOPE = 0.2
BN_EPS = 1e-5


def _round_up(x, m):
    return (x + m - 1) // m * m


# ----------------------------- Pallas kernels ------------------------------ #
def _mm_kernel(p_ref, w_ref, y_ref, *stat_refs, act, with_stats):
    """(TM, Kp) @ (Kp, Cp) on the MXU, optional fused activation, optional
    per-tile partial BN statistics (sum / sum-of-squares over the tile rows)."""
    y = jnp.dot(p_ref[...], w_ref[...], preferred_element_type=jnp.float32)

    if act == "leaky":
        y = jnp.where(y >= 0, y, LEAKY_SLOPE * y)
    elif act == "sigmoid":
        # exp on EUP + approximate reciprocal (EUP slot, ~free vs VALU).
        y = pl.reciprocal(1.0 + jnp.exp(-y), approx=True)

    y_ref[...] = y

    if with_stats:
        sum_ref, sq_ref = stat_refs
        c = y.shape[-1]
        s = jnp.sum(y, axis=0, keepdims=True)           # (1, Cp)
        q = jnp.sum(y * y, axis=0, keepdims=True)       # (1, Cp)
        # Broadcast to 8 sublanes so the output block is (8, Cp) aligned;
        # the host only reads row 0 of each tile's block.
        sum_ref[...] = jnp.broadcast_to(s, (8, c))
        sq_ref[...] = jnp.broadcast_to(q, (8, c))


def _bn_leaky_kernel(y_ref, scale_ref, shift_ref, o_ref):
    """Elementwise BN apply (precomputed per-channel scale/shift) + LeakyReLU."""
    y = y_ref[...] * scale_ref[...] + shift_ref[...]
    o_ref[...] = jnp.where(y >= 0, y, LEAKY_SLOPE * y)


# --------------------------- pallas_call wrappers --------------------------- #
def matmul_act(patches, w_kc, *, act=None, with_stats=False):
    """patches (M, K) f32, w_kc (K, Cout) f32.

    Returns (y_pad (M_pad, C_pad) f32, stats-or-None, (TM, C_pad)).
    stats = (sum_per_channel, sumsq_per_channel) over all M rows (padded rows
    are zero so they contribute nothing)."""
    M, K = patches.shape
    _, C = w_kc.shape
    K_pad = _round_up(K, 128)
    C_pad = _round_up(C, 128)
    TM = 512 if M >= 512 else _round_up(max(M, 8), 8)
    M_pad = _round_up(M, TM)
    nt = M_pad // TM

    p = jnp.pad(patches, ((0, M_pad - M), (0, K_pad - K))).astype(jnp.bfloat16)
    w = jnp.pad(w_kc, ((0, K_pad - K), (0, C_pad - C))).astype(jnp.bfloat16)

    kernel = functools.partial(_mm_kernel, act=act, with_stats=with_stats)
    in_specs = [
        pl.BlockSpec((TM, K_pad), lambda i: (i, 0)),
        pl.BlockSpec((K_pad, C_pad), lambda i: (0, 0)),
    ]
    y_spec = pl.BlockSpec((TM, C_pad), lambda i: (i, 0))
    y_shape = jax.ShapeDtypeStruct((M_pad, C_pad), jnp.float32)

    # double-buffered inputs/outputs (bf16 in, f32 out) + margin
    vmem_bytes = 2 * (TM * K_pad * 2 + K_pad * C_pad * 2
                      + TM * C_pad * 4 + 2 * 8 * C_pad * 4) + (4 << 20)
    cparams = pltpu.CompilerParams(
        dimension_semantics=("parallel",),
        vmem_limit_bytes=int(min(max(vmem_bytes, 8 << 20), 64 << 20)))
    cost = pl.CostEstimate(
        flops=2 * M_pad * K_pad * C_pad,
        transcendentals=M_pad * C_pad if act == "sigmoid" else 0,
        bytes_accessed=(M_pad * K_pad + K_pad * C_pad) * 2 + M_pad * C_pad * 4)

    if with_stats:
        out_shape = (
            y_shape,
            jax.ShapeDtypeStruct((8 * nt, C_pad), jnp.float32),
            jax.ShapeDtypeStruct((8 * nt, C_pad), jnp.float32),
        )
        out_specs = (
            y_spec,
            pl.BlockSpec((8, C_pad), lambda i: (i, 0)),
            pl.BlockSpec((8, C_pad), lambda i: (i, 0)),
        )
        y_pad, s_part, q_part = pl.pallas_call(
            kernel, out_shape=out_shape, grid=(nt,), in_specs=in_specs,
            out_specs=out_specs, compiler_params=cparams, cost_estimate=cost,
        )(p, w)
        s = s_part.reshape(nt, 8, C_pad)[:, 0, :].sum(axis=0)   # (C_pad,)
        q = q_part.reshape(nt, 8, C_pad)[:, 0, :].sum(axis=0)   # (C_pad,)
        return y_pad, (s, q), (TM, C_pad)

    y_pad = pl.pallas_call(
        kernel, out_shape=y_shape, grid=(nt,), in_specs=in_specs,
        out_specs=y_spec, compiler_params=cparams, cost_estimate=cost,
    )(p, w)
    return y_pad, None, (TM, C_pad)


def bn_leaky(y_pad, scale, shift, tm):
    """Apply y*scale + shift (per-channel) then LeakyReLU, tiled over rows."""
    Mp, Cp = y_pad.shape
    nt = Mp // tm
    return pl.pallas_call(
        _bn_leaky_kernel,
        out_shape=jax.ShapeDtypeStruct((Mp, Cp), jnp.float32),
        grid=(nt,),
        in_specs=[
            pl.BlockSpec((tm, Cp), lambda i: (i, 0)),
            pl.BlockSpec((1, Cp), lambda i: (0, 0)),
            pl.BlockSpec((1, Cp), lambda i: (0, 0)),
        ],
        out_specs=pl.BlockSpec((tm, Cp), lambda i: (i, 0)),
        compiler_params=pltpu.CompilerParams(
            dimension_semantics=("parallel",),
            vmem_limit_bytes=int(min(4 * tm * Cp * 4 + (4 << 20), 64 << 20))),
    )(y_pad, scale, shift)


# ------------------------------- JAX glue ---------------------------------- #
def im2col_nhwc(x, kh, kw, stride, pad):
    """x: (N, H, W, C) -> patches (N*Ho*Wo, kh*kw*C), row-major over (i, j, c)."""
    N, H, W, C = x.shape
    xp = jnp.pad(x, ((0, 0), (pad, pad), (pad, pad), (0, 0)))
    Ho = (H + 2 * pad - kh) // stride + 1
    Wo = (W + 2 * pad - kw) // stride + 1
    cols = []
    for i in range(kh):
        for j in range(kw):
            cols.append(xp[:, i:i + stride * Ho:stride, j:j + stride * Wo:stride, :])
    p = jnp.stack(cols, axis=3)                      # (N, Ho, Wo, kh*kw, C)
    p = p.reshape(N * Ho * Wo, kh * kw * C)
    return p, Ho, Wo


# (stride, pad, batch_norm, leaky_relu, sigmoid) per layer of the Sequential.
_LAYER_CFGS = (
    dict(stride=2, pad=1, bn=False, leaky=True,  sigmoid=False),  # block(3, ndf)
    dict(stride=2, pad=1, bn=True,  leaky=True,  sigmoid=False),  # block(ndf, 2ndf)
    dict(stride=2, pad=1, bn=True,  leaky=True,  sigmoid=False),  # block(2ndf, 4ndf) + dropout (identity)
    dict(stride=2, pad=1, bn=True,  leaky=True,  sigmoid=False),  # block(4ndf, 8ndf)
    dict(stride=1, pad=0, bn=False, leaky=False, sigmoid=True),   # Conv2d(8ndf, 1) + Sigmoid
)


def discriminator_forward(img, params):
    """img: (N, C, H, W) f32 -> (N, 1, 1, 1) f32."""
    N = img.shape[0]
    x = jnp.transpose(img, (0, 2, 3, 1))                  # NHWC, once
    for cfg, p in zip(_LAYER_CFGS, params):
        w = p["w"]                                        # (Cout, Cin, kh, kw)
        Cout, Cin, kh, kw = w.shape
        patches, Ho, Wo = im2col_nhwc(x, kh, kw, cfg["stride"], cfg["pad"])
        M = patches.shape[0]
        # (kh, kw, Cin, Cout) flattening matches im2col (i, j, c) row order.
        w_kc = jnp.transpose(w, (2, 3, 1, 0)).reshape(kh * kw * Cin, Cout)

        if cfg["bn"]:
            y_pad, (s, q), (tm, C_pad) = matmul_act(
                patches, w_kc, act=None, with_stats=True)
            # Tiny per-channel JAX reduction -> BN scale/shift (training stats,
            # biased variance, exactly PyTorch BatchNorm2d training forward).
            mean = s / M
            var = jnp.maximum(q / M - mean * mean, 0.0)
            gamma = jnp.pad(p["gamma"], (0, C_pad - Cout))
            beta = jnp.pad(p["beta"], (0, C_pad - Cout))
            scale = gamma * lax.rsqrt(var + BN_EPS)
            shift = beta - mean * scale
            y_pad = bn_leaky(y_pad, scale.reshape(1, -1), shift.reshape(1, -1), tm)
        else:
            act = "sigmoid" if cfg["sigmoid"] else "leaky"
            y_pad, _, (tm, C_pad) = matmul_act(
                patches, w_kc, act=act, with_stats=False)

        x = y_pad[:M, :Cout].reshape(N, Ho, Wo, Cout)     # stay NHWC
    return jnp.transpose(x, (0, 3, 1, 2))                 # (N, 1, 1, 1)


def reference_forward(img, params):
    """Pure-JAX reference with matching bf16 matmul-input quantization."""
    x = img
    for cfg, p in zip(_LAYER_CFGS, params):
        y = lax.conv_general_dilated(
            x.astype(jnp.bfloat16), p["w"].astype(jnp.bfloat16),
            (cfg["stride"],) * 2, [(cfg["pad"], cfg["pad"])] * 2,
            dimension_numbers=("NCHW", "OIHW", "NCHW"),
            preferred_element_type=jnp.float32)
        if cfg["bn"]:
            mean = y.mean(axis=(0, 2, 3), keepdims=True)
            var = jnp.square(y - mean).mean(axis=(0, 2, 3), keepdims=True)
            y = (y - mean) / jnp.sqrt(var + BN_EPS)
            y = y * p["gamma"].reshape(1, -1, 1, 1) + p["beta"].reshape(1, -1, 1, 1)
        if cfg["leaky"]:
            y = jnp.where(y >= 0, y, LEAKY_SLOPE * y)
        if cfg["sigmoid"]:
            y = jax.nn.sigmoid(y)
        x = y
    return x


def init_params(key, ndf):
    channel_cfgs = [(3, ndf), (ndf, 2 * ndf), (2 * ndf, 4 * ndf),
                    (4 * ndf, 8 * ndf), (8 * ndf, 1)]
    params = []
    for cin, cout in channel_cfgs:
        key, kw_, kg, kb = jax.random.split(key, 4)
        params.append(dict(
            w=0.05 * jax.random.normal(kw_, (cout, cin, 4, 4), jnp.float32),
            gamma=1.0 + 0.1 * jax.random.normal(kg, (cout,), jnp.float32),
            beta=0.1 * jax.random.normal(kb, (cout,), jnp.float32),
        ))
    return params


if __name__ == "__main__":
    key = jax.random.PRNGKey(0)
    k_img, k_par = jax.random.split(key)

    ndf = 8
    # 64x64 is the minimum spatial size implied by the final 4x4 valid conv.
    img = jax.random.normal(k_img, (2, 3, 64, 64), jnp.float32)
    params = init_params(k_par, ndf)

    fwd = jax.jit(discriminator_forward)
    out = jax.block_until_ready(fwd(img, params))
    assert out.shape == (2, 1, 1, 1), out.shape

    ref = jax.block_until_ready(reference_forward(img, params))
    assert jnp.allclose(out, ref, atol=2e-2, rtol=2e-2), (out, ref)

    print("KERNEL_OK")
</pallas_src>

<mosaic_0001>
module attributes {stable_mosaic.version = 11 : i64} {
  func.func @_mm_kernel(%arg0: i32, %arg1: memref<512x128xbf16, #tpu.memory_space<vmem>>, %arg2: memref<128x128xbf16, #tpu.memory_space<vmem>>, %arg3: memref<512x128xf32, #tpu.memory_space<vmem>>) attributes {dimension_semantics = [#tpu.dimension_semantics<parallel>], iteration_bounds = array<i64: 4>, scalar_prefetch = 0 : i64, scratch_operands = 0 : i64, tpu.core_type = #tpu.core_type<tc>, window_params = [{transform_indices = @transform_0, window_bounds = array<i64: 512, 128>}, {pipeline_mode = #tpu.pipeline_mode<synchronous>, transform_indices = @transform_1, window_bounds = array<i64: 128, 128>}, {transform_indices = @transform_2, window_bounds = array<i64: 512, 128>}]} {
    %c0 = arith.constant 0 : index
    %c0_0 = arith.constant 0 : index
    %0 = vector.load %arg1[%c0, %c0_0] : memref<512x128xbf16, #tpu.memory_space<vmem>>, vector<512x128xbf16>
    %c0_1 = arith.constant 0 : index
    %c0_2 = arith.constant 0 : index
    %1 = vector.load %arg2[%c0_1, %c0_2] : memref<128x128xbf16, #tpu.memory_space<vmem>>, vector<128x128xbf16>
    %cst = arith.constant dense<0.000000e+00> : vector<512x128xf32>
    %2 = tpu.matmul %0, %1, %cst {dimension_numbers = #tpu.dot_dimension_numbers<[1], [0], [0], [1], [0, 0, 1, 1], [], []>} : vector<512x128xbf16>, vector<128x128xbf16>, vector<512x128xf32> -> vector<512x128xf32>
    %cst_3 = arith.constant 0.000000e+00 : f32
    %3 = vector.broadcast %cst_3 : f32 to vector<512x128xf32>
    %4 = arith.cmpf oge, %2, %3 : vector<512x128xf32>
    %cst_4 = arith.constant 2.000000e-01 : f32
    %5 = vector.broadcast %cst_4 : f32 to vector<512x128xf32>
    %6 = arith.mulf %5, %2 : vector<512x128xf32>
    %7 = arith.select %4, %2, %6 : vector<512x128xi1>, vector<512x128xf32>
    %c0_5 = arith.constant 0 : index
    %c0_6 = arith.constant 0 : index
    %8 = vector.load %arg3[%c0_5, %c0_6] : memref<512x128xf32, #tpu.memory_space<vmem>>, vector<512x128xf32>
    tpu.vector_store %arg3[%c0_5, %c0_6], %7 {strides = array<i32>} : memref<512x128xf32, #tpu.memory_space<vmem>>, vector<512x128xf32>,
    return
  }
  func.func @transform_0(%arg0: i32) -> (i32, i32) {
    %c0_i32 = arith.constant 0 : i32
    %c0_i32_0 = arith.constant 0 : i32
    return %arg0, %c0_i32 : i32, i32
  }
  func.func @transform_1(%arg0: i32) -> (i32, i32) {
    %c0_i32 = arith.constant 0 : i32
    %c0_i32_0 = arith.constant 0 : i32
    %c0_i32_1 = arith.constant 0 : i32
    return %c0_i32, %c0_i32_0 : i32, i32
  }
  func.func @transform_2(%arg0: i32) -> (i32, i32) {
    %c0_i32 = arith.constant 0 : i32
    %c0_i32_0 = arith.constant 0 : i32
    return %arg0, %c0_i32 : i32, i32
  }
}

module attributes {stable_mosaic.version = 11 : i64} {
  func.func @_mm_kernel(%arg0: i32, %arg1: memref<512x128xbf16, #tpu.memory_space<vmem>>, %arg2: memref<128x128xbf16, #tpu.memory_space<vmem>>, %arg3: memref<512x128xf32, #tpu.memory_space<vmem>>, %arg4: memref<8x128xf32, #tpu.memory_space<vmem>>, %arg5: memref<8x128xf32, #tpu.memory_space<vmem>>) attributes {dimension_semantics = [#tpu.dimension_semantics<parallel>], iteration_bounds = array<i64: 1>, scalar_prefetch = 0 : i64, scratch_operands = 0 : i64, tpu.core_type = #tpu.core_type<tc>, window_params = [{transform_indices = @transform_0, window_bounds = array<i64: 512, 128>}, {pipeline_mode = #tpu.pipeline_mode<synchronous>, transform_indices = @transform_1, window_bounds = array<i64: 128, 128>}, {transform_indices = @transform_2, window_bounds = array<i64: 512, 128>}, {transform_indices = @transform_3, window_bounds = array<i64: 8, 128>}, {transform_indices = @transform_4, window_bounds = array<i64: 8, 128>}]} {
    %c0 = arith.constant 0 : index
    %c0_0 = arith.constant 0 : index
    %0 = vector.load %arg1[%c0, %c0_0] : memref<512x128xbf16, #tpu.memory_space<vmem>>, vector<512x128xbf16>
    %c0_1 = arith.constant 0 : index
    %c0_2 = arith.constant 0 : index
    %1 = vector.load %arg2[%c0_1, %c0_2] : memref<128x128xbf16, #tpu.memory_space<vmem>>, vector<128x128xbf16>
    %cst = arith.constant dense<0.000000e+00> : vector<512x128xf32>
    %2 = tpu.matmul %0, %1, %cst {dimension_numbers = #tpu.dot_dimension_numbers<[1], [0], [0], [1], [0, 0, 1, 1], [], []>} : vector<512x128xbf16>, vector<128x128xbf16>, vector<512x128xf32> -> vector<512x128xf32>
    %c0_3 = arith.constant 0 : index
    %c0_4 = arith.constant 0 : index
    %3 = vector.load %arg3[%c0_3, %c0_4] : memref<512x128xf32, #tpu.memory_space<vmem>>, vector<512x128xf32>
    tpu.vector_store %arg3[%c0_3, %c0_4], %2 {strides = array<i32>} : memref<512x128xf32, #tpu.memory_space<vmem>>, vector<512x128xf32>,
    %cst_5 = arith.constant dense<0.000000e+00> : vector<128xf32>
    %4 = vector.multi_reduction <add>, %2, %cst_5 [0] : vector<512x128xf32> to vector<128xf32>
    %5 = vector.shape_cast %4 : vector<128xf32> to vector<1x128xf32>
    %6 = arith.mulf %2, %2 : vector<512x128xf32>
    %cst_6 = arith.constant dense<0.000000e+00> : vector<128xf32>
    %7 = vector.multi_reduction <add>, %6, %cst_6 [0] : vector<512x128xf32> to vector<128xf32>
    %8 = vector.shape_cast %7 : vector<128xf32> to vector<1x128xf32>
    %9 = vector.shape_cast %5 : vector<1x128xf32> to vector<1x128xf32>
    %10 = vector.broadcast %9 : vector<1x128xf32> to vector<8x128xf32>
    %c0_7 = arith.constant 0 : index
    %c0_8 = arith.constant 0 : index
    %11 = vector.load %arg4[%c0_7, %c0_8] : memref<8x128xf32, #tpu.memory_space<vmem>>, vector<8x128xf32>
    tpu.vector_store %arg4[%c0_7, %c0_8], %10 {strides = array<i32>} : memref<8x128xf32, #tpu.memory_space<vmem>>, vector<8x128xf32>,
    %12 = vector.shape_cast %8 : vector<1x128xf32> to vector<1x128xf32>
    %13 = vector.broadcast %12 : vector<1x128xf32> to vector<8x128xf32>
    %c0_9 = arith.constant 0 : index
    %c0_10 = arith.constant 0 : index
    %14 = vector.load %arg5[%c0_9, %c0_10] : memref<8x128xf32, #tpu.memory_space<vmem>>, vector<8x128xf32>
    tpu.vector_store %arg5[%c0_9, %c0_10], %13 {strides = array<i32>} : memref<8x128xf32, #tpu.memory_space<vmem>>, vector<8x128xf32>,
    return
  }
  func.func @transform_0(%arg0: i32) -> (i32, i32) {
    %c0_i32 = arith.constant 0 : i32
    %c0_i32_0 = arith.constant 0 : i32
    return %arg0, %c0_i32 : i32, i32
  }
  func.func @transform_1(%arg0: i32) -> (i32, i32) {
    %c0_i32 = arith.constant 0 : i32
    %c0_i32_0 = arith.constant 0 : i32
    %c0_i32_1 = arith.constant 0 : i32
    return %c0_i32, %c0_i32_0 : i32, i32
  }
  func.func @transform_2(%arg0: i32) -> (i32, i32) {
    %c0_i32 = arith.constant 0 : i32
    %c0_i32_0 = arith.constant 0 : i32
    return %arg0, %c0_i32 : i32, i32
  }
  func.func @transform_3(%arg0: i32) -> (i32, i32) {
    %c0_i32 = arith.constant 0 : i32
    %c0_i32_0 = arith.constant 0 : i32
    return %arg0, %c0_i32 : i32, i32
  }
  func.func @transform_4(%arg0: i32) -> (i32, i32) {
    %c0_i32 = arith.constant 0 : i32
    %c0_i32_0 = arith.constant 0 : i32
    return %arg0, %c0_i32 : i32, i32
  }
}

module attributes {stable_mosaic.version = 11 : i64} {
  func.func @_bn_leaky_kernel(%arg0: i32, %arg1: memref<512x128xf32, #tpu.memory_space<vmem>>, %arg2: memref<1x128xf32, #tpu.memory_space<vmem>>, %arg3: memref<1x128xf32, #tpu.memory_space<vmem>>, %arg4: memref<512x128xf32, #tpu.memory_space<vmem>>) attributes {dimension_semantics = [#tpu.dimension_semantics<parallel>], iteration_bounds = array<i64: 1>, scalar_prefetch = 0 : i64, scratch_operands = 0 : i64, tpu.core_type = #tpu.core_type<tc>, window_params = [{transform_indices = @transform_0, window_bounds = array<i64: 512, 128>}, {pipeline_mode = #tpu.pipeline_mode<synchronous>, transform_indices = @transform_1, window_bounds = array<i64: 1, 128>}, {pipeline_mode = #tpu.pipeline_mode<synchronous>, transform_indices = @transform_2, window_bounds = array<i64: 1, 128>}, {transform_indices = @transform_3, window_bounds = array<i64: 512, 128>}]} {
    %c0 = arith.constant 0 : index
    %c0_0 = arith.constant 0 : index
    %0 = vector.load %arg1[%c0, %c0_0] : memref<512x128xf32, #tpu.memory_space<vmem>>, vector<512x128xf32>
    %c0_1 = arith.constant 0 : index
    %c0_2 = arith.constant 0 : index
    %1 = vector.load %arg2[%c0_1, %c0_2] : memref<1x128xf32, #tpu.memory_space<vmem>>, vector<1x128xf32>
    %2 = vector.broadcast %1 : vector<1x128xf32> to vector<512x128xf32>
    %3 = arith.mulf %0, %2 : vector<512x128xf32>
    %c0_3 = arith.constant 0 : index
    %c0_4 = arith.constant 0 : index
    %4 = vector.load %arg3[%c0_3, %c0_4] : memref<1x128xf32, #tpu.memory_space<vmem>>, vector<1x128xf32>
    %5 = vector.broadcast %4 : vector<1x128xf32> to vector<512x128xf32>
    %6 = arith.addf %3, %5 : vector<512x128xf32>
    %cst = arith.constant 0.000000e+00 : f32
    %7 = vector.broadcast %cst : f32 to vector<512x128xf32>
    %8 = arith.cmpf oge, %6, %7 : vector<512x128xf32>
    %cst_5 = arith.constant 2.000000e-01 : f32
    %9 = vector.broadcast %cst_5 : f32 to vector<512x128xf32>
    %10 = arith.mulf %9, %6 : vector<512x128xf32>
    %11 = arith.select %8, %6, %10 : vector<512x128xi1>, vector<512x128xf32>
    %c0_6 = arith.constant 0 : index
    %c0_7 = arith.constant 0 : index
    %12 = vector.load %arg4[%c0_6, %c0_7] : memref<512x128xf32, #tpu.memory_space<vmem>>, vector<512x128xf32>
    tpu.vector_store %arg4[%c0_6, %c0_7], %11 {strides = array<i32>} : memref<512x128xf32, #tpu.memory_space<vmem>>, vector<512x128xf32>,
    return
  }
  func.func @transform_0(%arg0: i32) -> (i32, i32) {
    %c0_i32 = arith.constant 0 : i32
    %c0_i32_0 = arith.constant 0 : i32
    return %arg0, %c0_i32 : i32, i32
  }
  func.func @transform_1(%arg0: i32) -> (i32, i32) {
    %c0_i32 = arith.constant 0 : i32
    %c0_i32_0 = arith.constant 0 : i32
    %c0_i32_1 = arith.constant 0 : i32
    return %c0_i32, %c0_i32_0 : i32, i32
  }
  func.func @transform_2(%arg0: i32) -> (i32, i32) {
    %c0_i32 = arith.constant 0 : i32
    %c0_i32_0 = arith.constant 0 : i32
    %c0_i32_1 = arith.constant 0 : i32
    return %c0_i32, %c0_i32_0 : i32, i32
  }
  func.func @transform_3(%arg0: i32) -> (i32, i32) {
    %c0_i32 = arith.constant 0 : i32
    %c0_i32_0 = arith.constant 0 : i32
    return %arg0, %c0_i32 : i32, i32
  }
}

module attributes {stable_mosaic.version = 11 : i64} {
  func.func @_mm_kernel(%arg0: i32, %arg1: memref<128x256xbf16, #tpu.memory_space<vmem>>, %arg2: memref<256x128xbf16, #tpu.memory_space<vmem>>, %arg3: memref<128x128xf32, #tpu.memory_space<vmem>>, %arg4: memref<8x128xf32, #tpu.memory_space<vmem>>, %arg5: memref<8x128xf32, #tpu.memory_space<vmem>>) attributes {dimension_semantics = [#tpu.dimension_semantics<parallel>], iteration_bounds = array<i64: 1>, scalar_prefetch = 0 : i64, scratch_operands = 0 : i64, tpu.core_type = #tpu.core_type<tc>, window_params = [{transform_indices = @transform_0, window_bounds = array<i64: 128, 256>}, {pipeline_mode = #tpu.pipeline_mode<synchronous>, transform_indices = @transform_1, window_bounds = array<i64: 256, 128>}, {transform_indices = @transform_2, window_bounds = array<i64: 128, 128>}, {transform_indices = @transform_3, window_bounds = array<i64: 8, 128>}, {transform_indices = @transform_4, window_bounds = array<i64: 8, 128>}]} {
    %c0 = arith.constant 0 : index
    %c0_0 = arith.constant 0 : index
    %0 = vector.load %arg1[%c0, %c0_0] : memref<128x256xbf16, #tpu.memory_space<vmem>>, vector<128x256xbf16>
    %c0_1 = arith.constant 0 : index
    %c0_2 = arith.constant 0 : index
    %1 = vector.load %arg2[%c0_1, %c0_2] : memref<256x128xbf16, #tpu.memory_space<vmem>>, vector<256x128xbf16>
    %cst = arith.constant dense<0.000000e+00> : vector<128x128xf32>
    %2 = tpu.matmul %0, %1, %cst {dimension_numbers = #tpu.dot_dimension_numbers<[1], [0], [0], [1], [0, 0, 1, 1], [], []>} : vector<128x256xbf16>, vector<256x128xbf16>, vector<128x128xf32> -> vector<128x128xf32>
    %c0_3 = arith.constant 0 : index
    %c0_4 = arith.constant 0 : index
    %3 = vector.load %arg3[%c0_3, %c0_4] : memref<128x128xf32, #tpu.memory_space<vmem>>, vector<128x128xf32>
    tpu.vector_store %arg3[%c0_3, %c0_4], %2 {strides = array<i32>} : memref<128x128xf32, #tpu.memory_space<vmem>>, vector<128x128xf32>,
    %cst_5 = arith.constant dense<0.000000e+00> : vector<128xf32>
    %4 = vector.multi_reduction <add>, %2, %cst_5 [0] : vector<128x128xf32> to vector<128xf32>
    %5 = vector.shape_cast %4 : vector<128xf32> to vector<1x128xf32>
    %6 = arith.mulf %2, %2 : vector<128x128xf32>
    %cst_6 = arith.constant dense<0.000000e+00> : vector<128xf32>
    %7 = vector.multi_reduction <add>, %6, %cst_6 [0] : vector<128x128xf32> to vector<128xf32>
    %8 = vector.shape_cast %7 : vector<128xf32> to vector<1x128xf32>
    %9 = vector.shape_cast %5 : vector<1x128xf32> to vector<1x128xf32>
    %10 = vector.broadcast %9 : vector<1x128xf32> to vector<8x128xf32>
    %c0_7 = arith.constant 0 : index
    %c0_8 = arith.constant 0 : index
    %11 = vector.load %arg4[%c0_7, %c0_8] : memref<8x128xf32, #tpu.memory_space<vmem>>, vector<8x128xf32>
    tpu.vector_store %arg4[%c0_7, %c0_8], %10 {strides = array<i32>} : memref<8x128xf32, #tpu.memory_space<vmem>>, vector<8x128xf32>,
    %12 = vector.shape_cast %8 : vector<1x128xf32> to vector<1x128xf32>
    %13 = vector.broadcast %12 : vector<1x128xf32> to vector<8x128xf32>
    %c0_9 = arith.constant 0 : index
    %c0_10 = arith.constant 0 : index
    %14 = vector.load %arg5[%c0_9, %c0_10] : memref<8x128xf32, #tpu.memory_space<vmem>>, vector<8x128xf32>
    tpu.vector_store %arg5[%c0_9, %c0_10], %13 {strides = array<i32>} : memref<8x128xf32, #tpu.memory_space<vmem>>, vector<8x128xf32>,
    return
  }
  func.func @transform_0(%arg0: i32) -> (i32, i32) {
    %c0_i32 = arith.constant 0 : i32
    %c0_i32_0 = arith.constant 0 : i32
    return %arg0, %c0_i32 : i32, i32
  }
  func.func @transform_1(%arg0: i32) -> (i32, i32) {
    %c0_i32 = arith.constant 0 : i32
    %c0_i32_0 = arith.constant 0 : i32
    %c0_i32_1 = arith.constant 0 : i32
    return %c0_i32, %c0_i32_0 : i32, i32
  }
  func.func @transform_2(%arg0: i32) -> (i32, i32) {
    %c0_i32 = arith.constant 0 : i32
    %c0_i32_0 = arith.constant 0 : i32
    return %arg0, %c0_i32 : i32, i32
  }
  func.func @transform_3(%arg0: i32) -> (i32, i32) {
    %c0_i32 = arith.constant 0 : i32
    %c0_i32_0 = arith.constant 0 : i32
    return %arg0, %c0_i32 : i32, i32
  }
  func.func @transform_4(%arg0: i32) -> (i32, i32) {
    %c0_i32 = arith.constant 0 : i32
    %c0_i32_0 = arith.constant 0 : i32
    return %arg0, %c0_i32 : i32, i32
  }
}

module attributes {stable_mosaic.version = 11 : i64} {
  func.func @_bn_leaky_kernel(%arg0: i32, %arg1: memref<128x128xf32, #tpu.memory_space<vmem>>, %arg2: memref<1x128xf32, #tpu.memory_space<vmem>>, %arg3: memref<1x128xf32, #tpu.memory_space<vmem>>, %arg4: memref<128x128xf32, #tpu.memory_space<vmem>>) attributes {dimension_semantics = [#tpu.dimension_semantics<parallel>], iteration_bounds = array<i64: 1>, scalar_prefetch = 0 : i64, scratch_operands = 0 : i64, tpu.core_type = #tpu.core_type<tc>, window_params = [{transform_indices = @transform_0, window_bounds = array<i64: 128, 128>}, {pipeline_mode = #tpu.pipeline_mode<synchronous>, transform_indices = @transform_1, window_bounds = array<i64: 1, 128>}, {pipeline_mode = #tpu.pipeline_mode<synchronous>, transform_indices = @transform_2, window_bounds = array<i64: 1, 128>}, {transform_indices = @transform_3, window_bounds = array<i64: 128, 128>}]} {
    %c0 = arith.constant 0 : index
    %c0_0 = arith.constant 0 : index
    %0 = vector.load %arg1[%c0, %c0_0] : memref<128x128xf32, #tpu.memory_space<vmem>>, vector<128x128xf32>
    %c0_1 = arith.constant 0 : index
    %c0_2 = arith.constant 0 : index
    %1 = vector.load %arg2[%c0_1, %c0_2] : memref<1x128xf32, #tpu.memory_space<vmem>>, vector<1x128xf32>
    %2 = vector.broadcast %1 : vector<1x128xf32> to vector<128x128xf32>
    %3 = arith.mulf %0, %2 : vector<128x128xf32>
    %c0_3 = arith.constant 0 : index
    %c0_4 = arith.constant 0 : index
    %4 = vector.load %arg3[%c0_3, %c0_4] : memref<1x128xf32, #tpu.memory_space<vmem>>, vector<1x128xf32>
    %5 = vector.broadcast %4 : vector<1x128xf32> to vector<128x128xf32>
    %6 = arith.addf %3, %5 : vector<128x128xf32>
    %cst = arith.constant 0.000000e+00 : f32
    %7 = vector.broadcast %cst : f32 to vector<128x128xf32>
    %8 = arith.cmpf oge, %6, %7 : vector<128x128xf32>
    %cst_5 = arith.constant 2.000000e-01 : f32
    %9 = vector.broadcast %cst_5 : f32 to vector<128x128xf32>
    %10 = arith.mulf %9, %6 : vector<128x128xf32>
    %11 = arith.select %8, %6, %10 : vector<128x128xi1>, vector<128x128xf32>
    %c0_6 = arith.constant 0 : index
    %c0_7 = arith.constant 0 : index
    %12 = vector.load %arg4[%c0_6, %c0_7] : memref<128x128xf32, #tpu.memory_space<vmem>>, vector<128x128xf32>
    tpu.vector_store %arg4[%c0_6, %c0_7], %11 {strides = array<i32>} : memref<128x128xf32, #tpu.memory_space<vmem>>, vector<128x128xf32>,
    return
  }
  func.func @transform_0(%arg0: i32) -> (i32, i32) {
    %c0_i32 = arith.constant 0 : i32
    %c0_i32_0 = arith.constant 0 : i32
    return %arg0, %c0_i32 : i32, i32
  }
  func.func @transform_1(%arg0: i32) -> (i32, i32) {
    %c0_i32 = arith.constant 0 : i32
    %c0_i32_0 = arith.constant 0 : i32
    %c0_i32_1 = arith.constant 0 : i32
    return %c0_i32, %c0_i32_0 : i32, i32
  }
  func.func @transform_2(%arg0: i32) -> (i32, i32) {
    %c0_i32 = arith.constant 0 : i32
    %c0_i32_0 = arith.constant 0 : i32
    %c0_i32_1 = arith.constant 0 : i32
    return %c0_i32, %c0_i32_0 : i32, i32
  }
  func.func @transform_3(%arg0: i32) -> (i32, i32) {
    %c0_i32 = arith.constant 0 : i32
    %c0_i32_0 = arith.constant 0 : i32
    return %arg0, %c0_i32 : i32, i32
  }
}

module attributes {stable_mosaic.version = 11 : i64} {
  func.func @_bn_leaky_kernel(%arg0: i32, %arg1: memref<32x128xf32, #tpu.memory_space<vmem>>, %arg2: memref<1x128xf32, #tpu.memory_space<vmem>>, %arg3: memref<1x128xf32, #tpu.memory_space<vmem>>, %arg4: memref<32x128xf32, #tpu.memory_space<vmem>>) attributes {dimension_semantics = [#tpu.dimension_semantics<parallel>], iteration_bounds = array<i64: 1>, scalar_prefetch = 0 : i64, scratch_operands = 0 : i64, tpu.core_type = #tpu.core_type<tc>, window_params = [{transform_indices = @transform_0, window_bounds = array<i64: 32, 128>}, {pipeline_mode = #tpu.pipeline_mode<synchronous>, transform_indices = @transform_1, window_bounds = array<i64: 1, 128>}, {pipeline_mode = #tpu.pipeline_mode<synchronous>, transform_indices = @transform_2, window_bounds = array<i64: 1, 128>}, {transform_indices = @transform_3, window_bounds = array<i64: 32, 128>}]} {
    %c0 = arith.constant 0 : index
    %c0_0 = arith.constant 0 : index
    %0 = vector.load %arg1[%c0, %c0_0] : memref<32x128xf32, #tpu.memory_space<vmem>>, vector<32x128xf32>
    %c0_1 = arith.constant 0 : index
    %c0_2 = arith.constant 0 : index
    %1 = vector.load %arg2[%c0_1, %c0_2] : memref<1x128xf32, #tpu.memory_space<vmem>>, vector<1x128xf32>
    %2 = vector.broadcast %1 : vector<1x128xf32> to vector<32x128xf32>
    %3 = arith.mulf %0, %2 : vector<32x128xf32>
    %c0_3 = arith.constant 0 : index
    %c0_4 = arith.constant 0 : index
    %4 = vector.load %arg3[%c0_3, %c0_4] : memref<1x128xf32, #tpu.memory_space<vmem>>, vector<1x128xf32>
    %5 = vector.broadcast %4 : vector<1x128xf32> to vector<32x128xf32>
    %6 = arith.addf %3, %5 : vector<32x128xf32>
    %cst = arith.constant 0.000000e+00 : f32
    %7 = vector.broadcast %cst : f32 to vector<32x128xf32>
    %8 = arith.cmpf oge, %6, %7 : vector<32x128xf32>
    %cst_5 = arith.constant 2.000000e-01 : f32
    %9 = vector.broadcast %cst_5 : f32 to vector<32x128xf32>
    %10 = arith.mulf %9, %6 : vector<32x128xf32>
    %11 = arith.select %8, %6, %10 : vector<32x128xi1>, vector<32x128xf32>
    %c0_6 = arith.constant 0 : index
    %c0_7 = arith.constant 0 : index
    %12 = vector.load %arg4[%c0_6, %c0_7] : memref<32x128xf32, #tpu.memory_space<vmem>>, vector<32x128xf32>
    tpu.vector_store %arg4[%c0_6, %c0_7], %11 {strides = array<i32>} : memref<32x128xf32, #tpu.memory_space<vmem>>, vector<32x128xf32>,
    return
  }
  func.func @transform_0(%arg0: i32) -> (i32, i32) {
    %c0_i32 = arith.constant 0 : i32
    %c0_i32_0 = arith.constant 0 : i32
    return %arg0, %c0_i32 : i32, i32
  }
  func.func @transform_1(%arg0: i32) -> (i32, i32) {
    %c0_i32 = arith.constant 0 : i32
    %c0_i32_0 = arith.constant 0 : i32
    %c0_i32_1 = arith.constant 0 : i32
    return %c0_i32, %c0_i32_0 : i32, i32
  }
  func.func @transform_2(%arg0: i32) -> (i32, i32) {
    %c0_i32 = arith.constant 0 : i32
    %c0_i32_0 = arith.constant 0 : i32
    %c0_i32_1 = arith.constant 0 : i32
    return %c0_i32, %c0_i32_0 : i32, i32
  }
  func.func @transform_3(%arg0: i32) -> (i32, i32) {
    %c0_i32 = arith.constant 0 : i32
    %c0_i32_0 = arith.constant 0 : i32
    return %arg0, %c0_i32 : i32, i32
  }
}

module attributes {stable_mosaic.version = 11 : i64} {
  func.func @_mm_kernel(%arg0: i32, %arg1: memref<32x512xbf16, #tpu.memory_space<vmem>>, %arg2: memref<512x128xbf16, #tpu.memory_space<vmem>>, %arg3: memref<32x128xf32, #tpu.memory_space<vmem>>, %arg4: memref<8x128xf32, #tpu.memory_space<vmem>>, %arg5: memref<8x128xf32, #tpu.memory_space<vmem>>) attributes {dimension_semantics = [#tpu.dimension_semantics<parallel>], iteration_bounds = array<i64: 1>, scalar_prefetch = 0 : i64, scratch_operands = 0 : i64, tpu.core_type = #tpu.core_type<tc>, window_params = [{transform_indices = @transform_0, window_bounds = array<i64: 32, 512>}, {pipeline_mode = #tpu.pipeline_mode<synchronous>, transform_indices = @transform_1, window_bounds = array<i64: 512, 128>}, {transform_indices = @transform_2, window_bounds = array<i64: 32, 128>}, {transform_indices = @transform_3, window_bounds = array<i64: 8, 128>}, {transform_indices = @transform_4, window_bounds = array<i64: 8, 128>}]} {
    %c0 = arith.constant 0 : index
    %c0_0 = arith.constant 0 : index
    %0 = vector.load %arg1[%c0, %c0_0] : memref<32x512xbf16, #tpu.memory_space<vmem>>, vector<32x512xbf16>
    %c0_1 = arith.constant 0 : index
    %c0_2 = arith.constant 0 : index
    %1 = vector.load %arg2[%c0_1, %c0_2] : memref<512x128xbf16, #tpu.memory_space<vmem>>, vector<512x128xbf16>
    %cst = arith.constant dense<0.000000e+00> : vector<32x128xf32>
    %2 = tpu.matmul %0, %1, %cst {dimension_numbers = #tpu.dot_dimension_numbers<[1], [0], [0], [1], [0, 0, 1, 1], [], []>} : vector<32x512xbf16>, vector<512x128xbf16>, vector<32x128xf32> -> vector<32x128xf32>
    %c0_3 = arith.constant 0 : index
    %c0_4 = arith.constant 0 : index
    %3 = vector.load %arg3[%c0_3, %c0_4] : memref<32x128xf32, #tpu.memory_space<vmem>>, vector<32x128xf32>
    tpu.vector_store %arg3[%c0_3, %c0_4], %2 {strides = array<i32>} : memref<32x128xf32, #tpu.memory_space<vmem>>, vector<32x128xf32>,
    %cst_5 = arith.constant dense<0.000000e+00> : vector<128xf32>
    %4 = vector.multi_reduction <add>, %2, %cst_5 [0] : vector<32x128xf32> to vector<128xf32>
    %5 = vector.shape_cast %4 : vector<128xf32> to vector<1x128xf32>
    %6 = arith.mulf %2, %2 : vector<32x128xf32>
    %cst_6 = arith.constant dense<0.000000e+00> : vector<128xf32>
    %7 = vector.multi_reduction <add>, %6, %cst_6 [0] : vector<32x128xf32> to vector<128xf32>
    %8 = vector.shape_cast %7 : vector<128xf32> to vector<1x128xf32>
    %9 = vector.shape_cast %5 : vector<1x128xf32> to vector<1x128xf32>
    %10 = vector.broadcast %9 : vector<1x128xf32> to vector<8x128xf32>
    %c0_7 = arith.constant 0 : index
    %c0_8 = arith.constant 0 : index
    %11 = vector.load %arg4[%c0_7, %c0_8] : memref<8x128xf32, #tpu.memory_space<vmem>>, vector<8x128xf32>
    tpu.vector_store %arg4[%c0_7, %c0_8], %10 {strides = array<i32>} : memref<8x128xf32, #tpu.memory_space<vmem>>, vector<8x128xf32>,
    %12 = vector.shape_cast %8 : vector<1x128xf32> to vector<1x128xf32>
    %13 = vector.broadcast %12 : vector<1x128xf32> to vector<8x128xf32>
    %c0_9 = arith.constant 0 : index
    %c0_10 = arith.constant 0 : index
    %14 = vector.load %arg5[%c0_9, %c0_10] : memref<8x128xf32, #tpu.memory_space<vmem>>, vector<8x128xf32>
    tpu.vector_store %arg5[%c0_9, %c0_10], %13 {strides = array<i32>} : memref<8x128xf32, #tpu.memory_space<vmem>>, vector<8x128xf32>,
    return
  }
  func.func @transform_0(%arg0: i32) -> (i32, i32) {
    %c0_i32 = arith.constant 0 : i32
    %c0_i32_0 = arith.constant 0 : i32
    return %arg0, %c0_i32 : i32, i32
  }
  func.func @transform_1(%arg0: i32) -> (i32, i32) {
    %c0_i32 = arith.constant 0 : i32
    %c0_i32_0 = arith.constant 0 : i32
    %c0_i32_1 = arith.constant 0 : i32
    return %c0_i32, %c0_i32_0 : i32, i32
  }
  func.func @transform_2(%arg0: i32) -> (i32, i32) {
    %c0_i32 = arith.constant 0 : i32
    %c0_i32_0 = arith.constant 0 : i32
    return %arg0, %c0_i32 : i32, i32
  }
  func.func @transform_3(%arg0: i32) -> (i32, i32) {
    %c0_i32 = arith.constant 0 : i32
    %c0_i32_0 = arith.constant 0 : i32
    return %arg0, %c0_i32 : i32, i32
  }
  func.func @transform_4(%arg0: i32) -> (i32, i32) {
    %c0_i32 = arith.constant 0 : i32
    %c0_i32_0 = arith.constant 0 : i32
    return %arg0, %c0_i32 : i32, i32
  }
}

module attributes {stable_mosaic.version = 11 : i64} {
  func.func @_mm_kernel(%arg0: i32, %arg1: memref<8x1024xbf16, #tpu.memory_space<vmem>>, %arg2: memref<1024x128xbf16, #tpu.memory_space<vmem>>, %arg3: memref<8x128xf32, #tpu.memory_space<vmem>>) attributes {dimension_semantics = [#tpu.dimension_semantics<parallel>], iteration_bounds = array<i64: 1>, scalar_prefetch = 0 : i64, scratch_operands = 0 : i64, tpu.core_type = #tpu.core_type<tc>, window_params = [{transform_indices = @transform_0, window_bounds = array<i64: 8, 1024>}, {pipeline_mode = #tpu.pipeline_mode<synchronous>, transform_indices = @transform_1, window_bounds = array<i64: 1024, 128>}, {transform_indices = @transform_2, window_bounds = array<i64: 8, 128>}]} {
    %c0 = arith.constant 0 : index
    %c0_0 = arith.constant 0 : index
    %0 = vector.load %arg1[%c0, %c0_0] : memref<8x1024xbf16, #tpu.memory_space<vmem>>, vector<8x1024xbf16>
    %c0_1 = arith.constant 0 : index
    %c0_2 = arith.constant 0 : index
    %1 = vector.load %arg2[%c0_1, %c0_2] : memref<1024x128xbf16, #tpu.memory_space<vmem>>, vector<1024x128xbf16>
    %cst = arith.constant dense<0.000000e+00> : vector<8x128xf32>
    %2 = tpu.matmul %0, %1, %cst {dimension_numbers = #tpu.dot_dimension_numbers<[1], [0], [0], [1], [0, 0, 1, 1], [], []>} : vector<8x1024xbf16>, vector<1024x128xbf16>, vector<8x128xf32> -> vector<8x128xf32>
    %cst_3 = arith.constant 0.000000e+00 : f32
    %3 = vector.broadcast %cst_3 : f32 to vector<8x128xf32>
    %4 = arith.subf %3, %2 : vector<8x128xf32>
    %5 = math.exp %4 : vector<8x128xf32>
    %cst_4 = arith.constant 1.000000e+00 : f32
    %6 = vector.broadcast %cst_4 : f32 to vector<8x128xf32>
    %7 = arith.addf %6, %5 : vector<8x128xf32>
    %8 = tpu.reciprocal %7 {approx = true} : vector<8x128xf32> -> vector<8x128xf32>
    %c0_5 = arith.constant 0 : index
    %c0_6 = arith.constant 0 : index
    %9 = vector.load %arg3[%c0_5, %c0_6] : memref<8x128xf32, #tpu.memory_space<vmem>>, vector<8x128xf32>
    tpu.vector_store %arg3[%c0_5, %c0_6], %8 {strides = array<i32>} : memref<8x128xf32, #tpu.memory_space<vmem>>, vector<8x128xf32>,
    return
  }
  func.func @transform_0(%arg0: i32) -> (i32, i32) {
    %c0_i32 = arith.constant 0 : i32
    %c0_i32_0 = arith.constant 0 : i32
    return %arg0, %c0_i32 : i32, i32
  }
  func.func @transform_1(%arg0: i32) -> (i32, i32) {
    %c0_i32 = arith.constant 0 : i32
    %c0_i32_0 = arith.constant 0 : i32
    %c0_i32_1 = arith.constant 0 : i32
    return %c0_i32, %c0_i32_0 : i32, i32
  }
  func.func @transform_2(%arg0: i32) -> (i32, i32) {
    %c0_i32 = arith.constant 0 : i32
    %c0_i32_0 = arith.constant 0 : i32
    return %arg0, %c0_i32 : i32, i32
  }
}

</mosaic_0001>

<bundles_post_ra>
// kernel: discriminator_forward.8
= control target key start
LH: loop header
LB: loop body
LE: loop exit
PB: predicated region body
PF: predicated region fallthrough
CT: control target
= control target key end

     0   :  { %s1214_s9 = smov 0   ;;  %s1359_s0 = inlined_call_operand.vmem [shape: bf16[2048,128], index: 0, kind: input, shape index: {}]   ;;  %s1360_s1 = inlined_call_operand.vmem [shape: bf16[128,128], index: 1, kind: input, shape index: {}]   ;;  %s1361_s2 = inlined_call_operand.vmem [shape: f32[2048,128], index: 2, kind: output, shape index: {}]  }
   0x1 LB: > { %s948_s10 = sadd.s32 4294967295, %s1197_s9   ;;  %p952_p0 = scmp.ge.s32.totalorder %s1197_s9, 1  ;;  %s1197_s9 = sphi %s1214_s9, %s12_s9  }
   0x2   : > { %p113_p1 = scmp.lt.s32.totalorder %s1197_s9, 5 }
   0x4   : > { %p114_p2 = pnand %p952_p0, %p113_p1 }
   0x5   : > { %s953_s19 = sshll.u32 (!%p114_p2), %s948_s10, 6 }
   0x6   : > { %117 = sbr.rel (%p114_p2) target bundleno = 301 (0x12d), region = 28  ;;  %p136_p3 = scmp.lt.s32.totalorder (!%p114_p2), %s953_s19, 255 }
   0xb   : > { %v1158_v0 = vld [vmem:[%s1360_s1 + $0x38] sm:$0xff]  ;;  %v1157_v1 = vld [vmem:[%s1360_s1 + $0x30] sm:$0xff]  ;;  %v1156_v2 = vld [vmem:[%s1360_s1 + $0x28] sm:$0xff]  ;;  %s1363_s19 = smov (!%p136_p3, %s953_s19), 255 }
   0xc   : > { %467 = vmatpush.bf16.msra.mxu0 %v1158_v0  ;;  %1159 = vmatpush.bf16.msra.mxu1 %v1158_v0  ;;  %v1155_v3 = vld [vmem:[%s1360_s1 + $0x20] sm:$0xff]  ;;  %v1154_v4 = vld [vmem:[%s1360_s1 + $0x18] sm:$0xff]  ;;  %v1153_v5 = vld [vmem:[%s1360_s1 + $0x10] sm:$0xff]  ;;  %s954_s26 = sshll.u32 %s1363_s19, 2  ;;  %s956_s4 = sshll.u32 %s1363_s19, 3 }
   0xd   : > { %1160 = vmatpush.bf16.msra.mxu2 %v1158_v0  ;;  %1161 = vmatpush.bf16.msra.mxu3 %v1158_v0  ;;  %v1152_v6 = vld [vmem:[%s1360_s1 + $0x8] sm:$0xff]  ;;  %v1151_v7 = vld [vmem:[%s1360_s1] sm:$0xff]  ;;  %s1252_s3 = scalar_lea.vmem %s1359_s0, %s954_s26  ;;  %s1290_s7 = scalar_lea.vmem %s1361_s2, %s956_s4 }
   0xe   : > { %v1119_v8 = vld [vmem:[%s1252_s3] sm:$0xff]  ;;  %v1120_v12 = vld [vmem:[%s1252_s3 + $0x8] sm:$0xff]  ;;  %v1121_v16 = vld [vmem:[%s1252_s3 + $0x10] sm:$0xff] }
   0xf   : > { %v1127_v9 = vld [vmem:[%s1252_s3 + $0x40] sm:$0xff]  ;;  %v1128_v13 = vld [vmem:[%s1252_s3 + $0x48] sm:$0xff]  ;;  %v1129_v17 = vld [vmem:[%s1252_s3 + $0x50] sm:$0xff] }
  0x10   : > { %468 = vmatpush.bf16.msra.mxu0 %v1157_v1  ;;  %1162 = vmatpush.bf16.msra.mxu1 %v1157_v1  ;;  %v1135_v10 = vld [vmem:[%s1252_s3 + $0x80] sm:$0xff]  ;;  %v1136_v14 = vld [vmem:[%s1252_s3 + $0x88] sm:$0xff]  ;;  %v1137_v18 = vld [vmem:[%s1252_s3 + $0x90] sm:$0xff] }
  0x11   : > { %1163 = vmatpush.bf16.msra.mxu2 %v1157_v1  ;;  %1164 = vmatpush.bf16.msra.mxu3 %v1157_v1  ;;  %v1143_v11 = vld [vmem:[%s1252_s3 + $0xc0] sm:$0xff]  ;;  %v1144_v15 = vld [vmem:[%s1252_s3 + $0xc8] sm:$0xff]  ;;  %v1145_v19 = vld [vmem:[%s1252_s3 + $0xd0] sm:$0xff] }
  0x12   : > { %v1122_v20 = vld [vmem:[%s1252_s3 + $0x18] sm:$0xff]  ;;  %v1123_v24 = vld [vmem:[%s1252_s3 + $0x20] sm:$0xff]  ;;  %v1124_v28 = vld [vmem:[%s1252_s3 + $0x28] sm:$0xff] }
  0x13   : > { %v1130_v21 = vld [vmem:[%s1252_s3 + $0x58] sm:$0xff]  ;;  %v1131_v25 = vld [vmem:[%s1252_s3 + $0x60] sm:$0xff]  ;;  %v1132_v29 = vld [vmem:[%s1252_s3 + $0x68] sm:$0xff] }
  0x14   : > { %469 = vmatpush.bf16.msra.mxu0 %v1156_v2  ;;  %1165 = vmatpush.bf16.msra.mxu1 %v1156_v2  ;;  %v1138_v22 = vld [vmem:[%s1252_s3 + $0x98] sm:$0xff]  ;;  %v1139_v26 = vld [vmem:[%s1252_s3 + $0xa0] sm:$0xff]  ;;  %v1140_v30 = vld [vmem:[%s1252_s3 + $0xa8] sm:$0xff] }
  0x15   : > { %1166 = vmatpush.bf16.msra.mxu2 %v1156_v2  ;;  %1167 = vmatpush.bf16.msra.mxu3 %v1156_v2  ;;  %v1146_v23 = vld [vmem:[%s1252_s3 + $0xd8] sm:$0xff]  ;;  %v1147_v27 = vld [vmem:[%s1252_s3 + $0xe0] sm:$0xff]  ;;  %v1148_v31 = vld [vmem:[%s1252_s3 + $0xe8] sm:$0xff] }
  0x16   : > { %v1125_v32 = vld [vmem:[%s1252_s3 + $0x30] sm:$0xff]  ;;  %v1126_v36 = vld [vmem:[%s1252_s3 + $0x38] sm:$0xff] }
  0x17   : > { %v1133_v33 = vld [vmem:[%s1252_s3 + $0x70] sm:$0xff]  ;;  %v1134_v37 = vld [vmem:[%s1252_s3 + $0x78] sm:$0xff] }
  0x18   : > { %470 = vmatpush.bf16.msra.mxu0 %v1155_v3  ;;  %1168 = vmatpush.bf16.msra.mxu1 %v1155_v3  ;;  %v1141_v34 = vld [vmem:[%s1252_s3 + $0xb0] sm:$0xff]  ;;  %v1142_v38 = vld [vmem:[%s1252_s3 + $0xb8] sm:$0xff] }
  0x19   : > { %1169 = vmatpush.bf16.msra.mxu2 %v1155_v3  ;;  %1170 = vmatpush.bf16.msra.mxu3 %v1155_v3  ;;  %v1149_v35 = vld [vmem:[%s1252_s3 + $0xf0] sm:$0xff]  ;;  %v1150_v39 = vld [vmem:[%s1252_s3 + $0xf8] sm:$0xff] }
  0x1c   : > { %471 = vmatpush.bf16.msra.mxu0 %v1154_v4  ;;  %1171 = vmatpush.bf16.msra.mxu1 %v1154_v4 }
  0x1d   : > { %1172 = vmatpush.bf16.msra.mxu2 %v1154_v4  ;;  %1173 = vmatpush.bf16.msra.mxu3 %v1154_v4 }
  0x20   : > { %472 = vmatpush.bf16.msra.mxu0 %v1153_v5  ;;  %1174 = vmatpush.bf16.msra.mxu1 %v1153_v5 }
  0x21   : > { %1175 = vmatpush.bf16.msra.mxu2 %v1153_v5  ;;  %1176 = vmatpush.bf16.msra.mxu3 %v1153_v5 }
  0x24   : > { %473 = vmatpush.bf16.msra.mxu0 %v1152_v6  ;;  %1177 = vmatpush.bf16.msra.mxu1 %v1152_v6 }
  0x25   : > { %1178 = vmatpush.bf16.msra.mxu2 %v1152_v6  ;;  %1179 = vmatpush.bf16.msra.mxu3 %v1152_v6 }
  0x28   : > { %474 = vmatpush.bf16.msra.mxu0 %v1151_v7  ;;  %1180 = vmatpush.bf16.msra.mxu1 %v1151_v7 }
  0x29   : > { %1181 = vmatpush.bf16.msra.mxu2 %v1151_v7  ;;  %1182 = vmatpush.bf16.msra.mxu3 %v1151_v7 }
  0x2b   : > { %475 = vmatmul.bf16.vlgmr.msra.gmra.mxu0 %v1119_v8  ;;  %515 = vmatmul.bf16.vlgmr.msra.gmra.mxu1 %v1127_v9 }
  0x2c   : > { %555 = vmatmul.bf16.vlgmr.msra.gmra.mxu2 %v1135_v10  ;;  %595 = vmatmul.bf16.vlgmr.msra.gmra.mxu3 %v1143_v11 }
  0x3b   : > { %480 = vmatmul.bf16.gmra.mxu0 %v1120_v12  ;;  %520 = vmatmul.bf16.gmra.mxu1 %v1128_v13 }
  0x3c   : > { %560 = vmatmul.bf16.gmra.mxu2 %v1136_v14  ;;  %600 = vmatmul.bf16.gmra.mxu3 %v1144_v15 }
  0x4b   : > { %485 = vmatmul.bf16.gmra.mxu0 %v1121_v16  ;;  %525 = vmatmul.bf16.gmra.mxu1 %v1129_v17 }
  0x4c   : > { %565 = vmatmul.bf16.gmra.mxu2 %v1137_v18  ;;  %605 = vmatmul.bf16.gmra.mxu3 %v1145_v19 }
  0x5b   : > { %490 = vmatmul.bf16.gmra.mxu0 %v1122_v20  ;;  %530 = vmatmul.bf16.gmra.mxu1 %v1130_v21 }
  0x5c   : > { %570 = vmatmul.bf16.gmra.mxu2 %v1138_v22  ;;  %610 = vmatmul.bf16.gmra.mxu3 %v1146_v23 }
  0x6b   : > { %495 = vmatmul.bf16.gmra.mxu0 %v1123_v24  ;;  %535 = vmatmul.bf16.gmra.mxu1 %v1131_v25 }
  0x6c   : > { %575 = vmatmul.bf16.gmra.mxu2 %v1139_v26  ;;  %615 = vmatmul.bf16.gmra.mxu3 %v1147_v27 }
  0x7b   : > { %500 = vmatmul.bf16.gmra.mxu0 %v1124_v28  ;;  %540 = vmatmul.bf16.gmra.mxu1 %v1132_v29 }
  0x7c   : > { %580 = vmatmul.bf16.gmra.mxu2 %v1140_v30  ;;  %620 = vmatmul.bf16.gmra.mxu3 %v1148_v31 }
  0x8b   : > { %505 = vmatmul.bf16.gmra.mxu0 %v1125_v32  ;;  %545 = vmatmul.bf16.gmra.mxu1 %v1133_v33 }
  0x8c   : > { %585 = vmatmul.bf16.gmra.mxu2 %v1141_v34  ;;  %625 = vmatmul.bf16.gmra.mxu3 %v1149_v35 }
  0x9b   : > { %510 = vmatmul.bf16.gmra.mxu0 %v1126_v36  ;;  %550 = vmatmul.bf16.gmra.mxu1 %v1134_v37 }
  0x9c   : > { %590 = vmatmul.bf16.gmra.mxu2 %v1142_v38  ;;  %630 = vmatmul.bf16.gmra.mxu3 %v1150_v39 }
  0xa8   : > { %v476_v40 = vpop.f32.mrf.mxu0  ;;  %v516_v41 = vpop.f32.mrf.mxu1 }
  0xa9   : > { %vm636_vm0 = vcmp.ge.f32.partialorder %v476_v40, 0.0  ;;  %v700_v42 = vmul.f32 0.2, %v476_v40  ;;  %vm652_vm1 = vcmp.ge.f32.partialorder %v516_v41, 0.0  ;;  %v716_v43 = vmul.f32 0.2, %v516_v41 }
  0xab   : > { %v764_v44 = vsel %vm636_vm0, %v476_v40, %v700_v42  ;;  %v780_v45 = vsel %vm652_vm1, %v516_v41, %v716_v43 }
  0xac   : > { %828 = vst [vmem:[%s1290_s7] sm:$0xff] %v764_v44 }
  0xad   : > { %844 = vst [vmem:[%s1290_s7 + $0x80] sm:$0xff] %v780_v45 }
  0xaf   : > { %v556_v46 = vpop.f32.mrf.mxu2  ;;  %v596_v47 = vpop.f32.mrf.mxu3 }
  0xb0   : > { %vm668_vm2 = vcmp.ge.f32.partialorder %v556_v46, 0.0  ;;  %v732_v48 = vmul.f32 0.2, %v556_v46  ;;  %vm684_vm3 = vcmp.ge.f32.partialorder %v596_v47, 0.0  ;;  %v748_v49 = vmul.f32 0.2, %v596_v47  ;;  %v478_v50 = vpop.f32.mrf.mxu0  ;;  %v518_v51 = vpop.f32.mrf.mxu1 }
  0xb1   : > { %vm637_vm4 = vcmp.ge.f32.partialorder %v478_v50, 0.0  ;;  %v701_v52 = vmul.f32 0.2, %v478_v50  ;;  %vm653_vm5 = vcmp.ge.f32.partialorder %v518_v51, 0.0  ;;  %v717_v53 = vmul.f32 0.2, %v518_v51 }
  0xb2   : > { %v796_v54 = vsel %vm668_vm2, %v556_v46, %v732_v48  ;;  %v812_v55 = vsel %vm684_vm3, %v596_v47, %v748_v49 }
  0xb3   : > { %860 = vst [vmem:[%s1290_s7 + $0x100] sm:$0xff] %v796_v54  ;;  %v765_v56 = vsel %vm637_vm4, %v478_v50, %v701_v52  ;;  %v781_v57 = vsel %vm653_vm5, %v518_v51, %v717_v53 }
  0xb4   : > { %876 = vst [vmem:[%s1290_s7 + $0x180] sm:$0xff] %v812_v55 }
  0xb5   : > { %829 = vst [vmem:[%s1290_s7 + $0x8] sm:$0xff] %v765_v56 }
  0xb6   : > { %845 = vst [vmem:[%s1290_s7 + $0x88] sm:$0xff] %v781_v57 }
  0xb7   : > { %v558_v58 = vpop.f32.mrf.mxu2  ;;  %v598_v59 = vpop.f32.mrf.mxu3 }
  0xb8   : > { %vm669_vm6 = vcmp.ge.f32.partialorder %v558_v58, 0.0  ;;  %v733_v60 = vmul.f32 0.2, %v558_v58  ;;  %vm685_vm7 = vcmp.ge.f32.partialorder %v598_v59, 0.0  ;;  %v749_v61 = vmul.f32 0.2, %v598_v59  ;;  %v481_v62 = vpop.f32.mrf.mxu0  ;;  %v521_v63 = vpop.f32.mrf.mxu1 }
  0xb9   : > { %vm638_vm8 = vcmp.ge.f32.partialorder %v481_v62, 0.0  ;;  %v702_v0 = vmul.f32 0.2, %v481_v62  ;;  %vm654_vm9 = vcmp.ge.f32.partialorder %v521_v63, 0.0  ;;  %v718_v1 = vmul.f32 0.2, %v521_v63 }
  0xba   : > { %v797_v2 = vsel %vm669_vm6, %v558_v58, %v733_v60  ;;  %v813_v3 = vsel %vm685_vm7, %v598_v59, %v749_v61 }
  0xbb   : > { %861 = vst [vmem:[%s1290_s7 + $0x108] sm:$0xff] %v797_v2  ;;  %v766_v4 = vsel %vm638_vm8, %v481_v62, %v702_v0  ;;  %v782_v5 = vsel %vm654_vm9, %v521_v63, %v718_v1 }
  0xbc   : > { %877 = vst [vmem:[%s1290_s7 + $0x188] sm:$0xff] %v813_v3 }
  0xbd   : > { %830 = vst [vmem:[%s1290_s7 + $0x10] sm:$0xff] %v766_v4 }
  0xbe   : > { %846 = vst [vmem:[%s1290_s7 + $0x90] sm:$0xff] %v782_v5 }
  0xbf   : > { %v561_v6 = vpop.f32.mrf.mxu2  ;;  %v601_v7 = vpop.f32.mrf.mxu3 }
  0xc0   : > { %vm670_vm10 = vcmp.ge.f32.partialorder %v561_v6, 0.0  ;;  %v734_v8 = vmul.f32 0.2, %v561_v6  ;;  %vm686_vm11 = vcmp.ge.f32.partialorder %v601_v7, 0.0  ;;  %v750_v9 = vmul.f32 0.2, %v601_v7  ;;  %v483_v10 = vpop.f32.mrf.mxu0  ;;  %v523_v11 = vpop.f32.mrf.mxu1 }
  0xc1   : > { %vm639_vm12 = vcmp.ge.f32.partialorder %v483_v10, 0.0  ;;  %v703_v12 = vmul.f32 0.2, %v483_v10  ;;  %vm655_vm13 = vcmp.ge.f32.partialorder %v523_v11, 0.0  ;;  %v719_v13 = vmul.f32 0.2, %v523_v11 }
  0xc2   : > { %v798_v14 = vsel %vm670_vm10, %v561_v6, %v734_v8  ;;  %v814_v15 = vsel %vm686_vm11, %v601_v7, %v750_v9 }
  0xc3   : > { %862 = vst [vmem:[%s1290_s7 + $0x110] sm:$0xff] %v798_v14  ;;  %v767_v16 = vsel %vm639_vm12, %v483_v10, %v703_v12  ;;  %v783_v17 = vsel %vm655_vm13, %v523_v11, %v719_v13 }
  0xc4   : > { %878 = vst [vmem:[%s1290_s7 + $0x190] sm:$0xff] %v814_v15 }
  0xc5   : > { %831 = vst [vmem:[%s1290_s7 + $0x18] sm:$0xff] %v767_v16 }
  0xc6   : > { %847 = vst [vmem:[%s1290_s7 + $0x98] sm:$0xff] %v783_v17 }
  0xc7   : > { %v563_v18 = vpop.f32.mrf.mxu2  ;;  %v603_v19 = vpop.f32.mrf.mxu3 }
  0xc8   : > { %vm671_vm14 = vcmp.ge.f32.partialorder %v563_v18, 0.0  ;;  %v735_v20 = vmul.f32 0.2, %v563_v18  ;;  %vm687_vm15 = vcmp.ge.f32.partialorder %v603_v19, 0.0  ;;  %v751_v21 = vmul.f32 0.2, %v603_v19  ;;  %v486_v22 = vpop.f32.mrf.mxu0  ;;  %v526_v23 = vpop.f32.mrf.mxu1 }
  0xc9   : > { %vm640_vm0 = vcmp.ge.f32.partialorder %v486_v22, 0.0  ;;  %v704_v24 = vmul.f32 0.2, %v486_v22  ;;  %vm656_vm1 = vcmp.ge.f32.partialorder %v526_v23, 0.0  ;;  %v720_v25 = vmul.f32 0.2, %v526_v23 }
  0xca   : > { %v799_v26 = vsel %vm671_vm14, %v563_v18, %v735_v20  ;;  %v815_v27 = vsel %vm687_vm15, %v603_v19, %v751_v21 }
  0xcb   : > { %863 = vst [vmem:[%s1290_s7 + $0x118] sm:$0xff] %v799_v26  ;;  %v768_v28 = vsel %vm640_vm0, %v486_v22, %v704_v24  ;;  %v784_v29 = vsel %vm656_vm1, %v526_v23, %v720_v25 }
  0xcc   : > { %879 = vst [vmem:[%s1290_s7 + $0x198] sm:$0xff] %v815_v27 }
  0xcd   : > { %832 = vst [vmem:[%s1290_s7 + $0x20] sm:$0xff] %v768_v28 }
  0xce   : > { %848 = vst [vmem:[%s1290_s7 + $0xa0] sm:$0xff] %v784_v29 }
  0xcf   : > { %v566_v30 = vpop.f32.mrf.mxu2  ;;  %v606_v31 = vpop.f32.mrf.mxu3 }
  0xd0   : > { %vm672_vm2 = vcmp.ge.f32.partialorder %v566_v30, 0.0  ;;  %v736_v32 = vmul.f32 0.2, %v566_v30  ;;  %vm688_vm3 = vcmp.ge.f32.partialorder %v606_v31, 0.0  ;;  %v752_v33 = vmul.f32 0.2, %v606_v31  ;;  %v488_v34 = vpop.f32.mrf.mxu0  ;;  %v528_v35 = vpop.f32.mrf.mxu1 }
  0xd1   : > { %vm641_vm4 = vcmp.ge.f32.partialorder %v488_v34, 0.0  ;;  %v705_v36 = vmul.f32 0.2, %v488_v34  ;;  %vm657_vm5 = vcmp.ge.f32.partialorder %v528_v35, 0.0  ;;  %v721_v37 = vmul.f32 0.2, %v528_v35 }
  0xd2   : > { %v800_v38 = vsel %vm672_vm2, %v566_v30, %v736_v32  ;;  %v816_v39 = vsel %vm688_vm3, %v606_v31, %v752_v33 }
  0xd3   : > { %864 = vst [vmem:[%s1290_s7 + $0x120] sm:$0xff] %v800_v38  ;;  %v769_v40 = vsel %vm641_vm4, %v488_v34, %v705_v36  ;;  %v785_v41 = vsel %vm657_vm5, %v528_v35, %v721_v37 }
  0xd4   : > { %880 = vst [vmem:[%s1290_s7 + $0x1a0] sm:$0xff] %v816_v39 }
  0xd5   : > { %833 = vst [vmem:[%s1290_s7 + $0x28] sm:$0xff] %v769_v40 }
  0xd6   : > { %849 = vst [vmem:[%s1290_s7 + $0xa8] sm:$0xff] %v785_v41 }
  0xd7   : > { %v568_v42 = vpop.f32.mrf.mxu2  ;;  %v608_v43 = vpop.f32.mrf.mxu3 }
  0xd8   : > { %vm673_vm6 = vcmp.ge.f32.partialorder %v568_v42, 0.0  ;;  %v737_v44 = vmul.f32 0.2, %v568_v42  ;;  %vm689_vm7 = vcmp.ge.f32.partialorder %v608_v43, 0.0  ;;  %v753_v45 = vmul.f32 0.2, %v608_v43  ;;  %v491_v46 = vpop.f32.mrf.mxu0  ;;  %v531_v47 = vpop.f32.mrf.mxu1 }
  0xd9   : > { %vm642_vm8 = vcmp.ge.f32.partialorder %v491_v46, 0.0  ;;  %v706_v48 = vmul.f32 0.2, %v491_v46  ;;  %vm658_vm9 = vcmp.ge.f32.partialorder %v531_v47, 0.0  ;;  %v722_v49 = vmul.f32 0.2, %v531_v47 }
  0xda   : > { %v801_v50 = vsel %vm673_vm6, %v568_v42, %v737_v44  ;;  %v817_v51 = vsel %vm689_vm7, %v608_v43, %v753_v45 }
  0xdb   : > { %865 = vst [vmem:[%s1290_s7 + $0x128] sm:$0xff] %v801_v50  ;;  %v770_v52 = vsel %vm642_vm8, %v491_v46, %v706_v48  ;;  %v786_v53 = vsel %vm658_vm9, %v531_v47, %v722_v49 }
  0xdc   : > { %881 = vst [vmem:[%s1290_s7 + $0x1a8] sm:$0xff] %v817_v51 }
  0xdd   : > { %834 = vst [vmem:[%s1290_s7 + $0x30] sm:$0xff] %v770_v52 }
  0xde   : > { %850 = vst [vmem:[%s1290_s7 + $0xb0] sm:$0xff] %v786_v53 }
  0xdf   : > { %v571_v54 = vpop.f32.mrf.mxu2  ;;  %v611_v55 = vpop.f32.mrf.mxu3 }
  0xe0   : > { %vm674_vm10 = vcmp.ge.f32.partialorder %v571_v54, 0.0  ;;  %v738_v56 = vmul.f32 0.2, %v571_v54  ;;  %vm690_vm11 = vcmp.ge.f32.partialorder %v611_v55, 0.0  ;;  %v754_v57 = vmul.f32 0.2, %v611_v55  ;;  %v493_v58 = vpop.f32.mrf.mxu0  ;;  %v533_v59 = vpop.f32.mrf.mxu1 }
  0xe1   : > { %vm643_vm12 = vcmp.ge.f32.partialorder %v493_v58, 0.0  ;;  %v707_v60 = vmul.f32 0.2, %v493_v58  ;;  %vm659_vm13 = vcmp.ge.f32.partialorder %v533_v59, 0.0  ;;  %v723_v61 = vmul.f32 0.2, %v533_v59 }
  0xe2   : > { %v802_v62 = vsel %vm674_vm10, %v571_v54, %v738_v56  ;;  %v818_v63 = vsel %vm690_vm11, %v611_v55, %v754_v57 }
  0xe3   : > { %866 = vst [vmem:[%s1290_s7 + $0x130] sm:$0xff] %v802_v62  ;;  %v771_v0 = vsel %vm643_vm12, %v493_v58, %v707_v60  ;;  %v787_v1 = vsel %vm659_vm13, %v533_v59, %v723_v61 }
  0xe4   : > { %882 = vst [vmem:[%s1290_s7 + $0x1b0] sm:$0xff] %v818_v63 }
  0xe5   : > { %835 = vst [vmem:[%s1290_s7 + $0x38] sm:$0xff] %v771_v0 }
  0xe6   : > { %851 = vst [vmem:[%s1290_s7 + $0xb8] sm:$0xff] %v787_v1 }
  0xe7   : > { %v573_v2 = vpop.f32.mrf.mxu2  ;;  %v613_v3 = vpop.f32.mrf.mxu3 }
  0xe8   : > { %vm675_vm14 = vcmp.ge.f32.partialorder %v573_v2, 0.0  ;;  %v739_v4 = vmul.f32 0.2, %v573_v2  ;;  %vm691_vm15 = vcmp.ge.f32.partialorder %v613_v3, 0.0  ;;  %v755_v5 = vmul.f32 0.2, %v613_v3  ;;  %v496_v6 = vpop.f32.mrf.mxu0  ;;  %v536_v7 = vpop.f32.mrf.mxu1 }
  0xe9   : > { %vm644_vm0 = vcmp.ge.f32.partialorder %v496_v6, 0.0  ;;  %v708_v8 = vmul.f32 0.2, %v496_v6  ;;  %vm660_vm1 = vcmp.ge.f32.partialorder %v536_v7, 0.0  ;;  %v724_v9 = vmul.f32 0.2, %v536_v7 }
  0xea   : > { %v803_v10 = vsel %vm675_vm14, %v573_v2, %v739_v4  ;;  %v819_v11 = vsel %vm691_vm15, %v613_v3, %v755_v5 }
  0xeb   : > { %867 = vst [vmem:[%s1290_s7 + $0x138] sm:$0xff] %v803_v10  ;;  %v772_v12 = vsel %vm644_vm0, %v496_v6, %v708_v8  ;;  %v788_v13 = vsel %vm660_vm1, %v536_v7, %v724_v9 }
  0xec   : > { %883 = vst [vmem:[%s1290_s7 + $0x1b8] sm:$0xff] %v819_v11 }
  0xed   : > { %836 = vst [vmem:[%s1290_s7 + $0x40] sm:$0xff] %v772_v12 }
  0xee   : > { %852 = vst [vmem:[%s1290_s7 + $0xc0] sm:$0xff] %v788_v13 }
  0xef   : > { %v576_v14 = vpop.f32.mrf.mxu2  ;;  %v616_v15 = vpop.f32.mrf.mxu3 }
  0xf0   : > { %vm676_vm2 = vcmp.ge.f32.partialorder %v576_v14, 0.0  ;;  %v740_v16 = vmul.f32 0.2, %v576_v14  ;;  %vm692_vm3 = vcmp.ge.f32.partialorder %v616_v15, 0.0  ;;  %v756_v17 = vmul.f32 0.2, %v616_v15  ;;  %v498_v18 = vpop.f32.mrf.mxu0  ;;  %v538_v19 = vpop.f32.mrf.mxu1 }
  0xf1   : > { %vm645_vm4 = vcmp.ge.f32.partialorder %v498_v18, 0.0  ;;  %v709_v20 = vmul.f32 0.2, %v498_v18  ;;  %vm661_vm5 = vcmp.ge.f32.partialorder %v538_v19, 0.0  ;;  %v725_v21 = vmul.f32 0.2, %v538_v19 }
  0xf2   : > { %v804_v22 = vsel %vm676_vm2, %v576_v14, %v740_v16  ;;  %v820_v23 = vsel %vm692_vm3, %v616_v15, %v756_v17 }
  0xf3   : > { %868 = vst [vmem:[%s1290_s7 + $0x140] sm:$0xff] %v804_v22  ;;  %v773_v24 = vsel %vm645_vm4, %v498_v18, %v709_v20  ;;  %v789_v25 = vsel %vm661_vm5, %v538_v19, %v725_v21 }
  0xf4   : > { %884 = vst [vmem:[%s1290_s7 + $0x1c0] sm:$0xff] %v820_v23 }
  0xf5   : > { %837 = vst [vmem:[%s1290_s7 + $0x48] sm:$0xff] %v773_v24 }
  0xf6   : > { %853 = vst [vmem:[%s1290_s7 + $0xc8] sm:$0xff] %v789_v25 }
  0xf7   : > { %v578_v26 = vpop.f32.mrf.mxu2  ;;  %v618_v27 = vpop.f32.mrf.mxu3 }
  0xf8   : > { %vm677_vm6 = vcmp.ge.f32.partialorder %v578_v26, 0.0  ;;  %v741_v28 = vmul.f32 0.2, %v578_v26  ;;  %vm693_vm7 = vcmp.ge.f32.partialorder %v618_v27, 0.0  ;;  %v757_v29 = vmul.f32 0.2, %v618_v27  ;;  %v501_v30 = vpop.f32.mrf.mxu0  ;;  %v541_v31 = vpop.f32.mrf.mxu1 }
  0xf9   : > { %vm646_vm8 = vcmp.ge.f32.partialorder %v501_v30, 0.0  ;;  %v710_v32 = vmul.f32 0.2, %v501_v30  ;;  %vm662_vm9 = vcmp.ge.f32.partialorder %v541_v31, 0.0  ;;  %v726_v33 = vmul.f32 0.2, %v541_v31 }
  0xfa   : > { %v805_v34 = vsel %vm677_vm6, %v578_v26, %v741_v28  ;;  %v821_v35 = vsel %vm693_vm7, %v618_v27, %v757_v29 }
  0xfb   : > { %869 = vst [vmem:[%s1290_s7 + $0x148] sm:$0xff] %v805_v34  ;;  %v774_v36 = vsel %vm646_vm8, %v501_v30, %v710_v32  ;;  %v790_v37 = vsel %vm662_vm9, %v541_v31, %v726_v33 }
  0xfc   : > { %885 = vst [vmem:[%s1290_s7 + $0x1c8] sm:$0xff] %v821_v35 }
  0xfd   : > { %838 = vst [vmem:[%s1290_s7 + $0x50] sm:$0xff] %v774_v36 }
  0xfe   : > { %854 = vst [vmem:[%s1290_s7 + $0xd0] sm:$0xff] %v790_v37 }
  0xff   : > { %v581_v38 = vpop.f32.mrf.mxu2  ;;  %v621_v39 = vpop.f32.mrf.mxu3 }
 0x100   : > { %vm678_vm10 = vcmp.ge.f32.partialorder %v581_v38, 0.0  ;;  %v742_v40 = vmul.f32 0.2, %v581_v38  ;;  %vm694_vm11 = vcmp.ge.f32.partialorder %v621_v39, 0.0  ;;  %v758_v41 = vmul.f32 0.2, %v621_v39  ;;  %v503_v42 = vpop.f32.mrf.mxu0  ;;  %v543_v43 = vpop.f32.mrf.mxu1 }
 0x101   : > { %vm647_vm12 = vcmp.ge.f32.partialorder %v503_v42, 0.0  ;;  %v711_v44 = vmul.f32 0.2, %v503_v42  ;;  %vm663_vm13 = vcmp.ge.f32.partialorder %v543_v43, 0.0  ;;  %v727_v45 = vmul.f32 0.2, %v543_v43 }
 0x102   : > { %v806_v46 = vsel %vm678_vm10, %v581_v38, %v742_v40  ;;  %v822_v47 = vsel %vm694_vm11, %v621_v39, %v758_v41 }
 0x103   : > { %870 = vst [vmem:[%s1290_s7 + $0x150] sm:$0xff] %v806_v46  ;;  %v775_v48 = vsel %vm647_vm12, %v503_v42, %v711_v44  ;;  %v791_v49 = vsel %vm663_vm13, %v543_v43, %v727_v45 }
 0x104   : > { %886 = vst [vmem:[%s1290_s7 + $0x1d0] sm:$0xff] %v822_v47 }
 0x105   : > { %839 = vst [vmem:[%s1290_s7 + $0x58] sm:$0xff] %v775_v48 }
 0x106   : > { %855 = vst [vmem:[%s1290_s7 + $0xd8] sm:$0xff] %v791_v49 }
 0x107   : > { %v583_v50 = vpop.f32.mrf.mxu2  ;;  %v623_v51 = vpop.f32.mrf.mxu3 }
 0x108   : > { %vm679_vm14 = vcmp.ge.f32.partialorder %v583_v50, 0.0  ;;  %v743_v52 = vmul.f32 0.2, %v583_v50  ;;  %vm695_vm15 = vcmp.ge.f32.partialorder %v623_v51, 0.0  ;;  %v759_v53 = vmul.f32 0.2, %v623_v51  ;;  %v506_v54 = vpop.f32.mrf.mxu0  ;;  %v546_v55 = vpop.f32.mrf.mxu1 }
 0x109   : > { %vm648_vm0 = vcmp.ge.f32.partialorder %v506_v54, 0.0  ;;  %v712_v56 = vmul.f32 0.2, %v506_v54  ;;  %vm664_vm1 = vcmp.ge.f32.partialorder %v546_v55, 0.0  ;;  %v728_v57 = vmul.f32 0.2, %v546_v55 }
 0x10a   : > { %v807_v58 = vsel %vm679_vm14, %v583_v50, %v743_v52  ;;  %v823_v59 = vsel %vm695_vm15, %v623_v51, %v759_v53 }
 0x10b   : > { %871 = vst [vmem:[%s1290_s7 + $0x158] sm:$0xff] %v807_v58  ;;  %v776_v60 = vsel %vm648_vm0, %v506_v54, %v712_v56  ;;  %v792_v61 = vsel %vm664_vm1, %v546_v55, %v728_v57 }
 0x10c   : > { %887 = vst [vmem:[%s1290_s7 + $0x1d8] sm:$0xff] %v823_v59 }
 0x10d   : > { %840 = vst [vmem:[%s1290_s7 + $0x60] sm:$0xff] %v776_v60 }
 0x10e   : > { %856 = vst [vmem:[%s1290_s7 + $0xe0] sm:$0xff] %v792_v61 }
 0x10f   : > { %v586_v62 = vpop.f32.mrf.mxu2  ;;  %v626_v63 = vpop.f32.mrf.mxu3 }
 0x110   : > { %vm680_vm2 = vcmp.ge.f32.partialorder %v586_v62, 0.0  ;;  %v744_v0 = vmul.f32 0.2, %v586_v62  ;;  %vm696_vm3 = vcmp.ge.f32.partialorder %v626_v63, 0.0  ;;  %v760_v1 = vmul.f32 0.2, %v626_v63  ;;  %v508_v2 = vpop.f32.mrf.mxu0  ;;  %v548_v3 = vpop.f32.mrf.mxu1 }
 0x111   : > { %vm649_vm4 = vcmp.ge.f32.partialorder %v508_v2, 0.0  ;;  %v713_v4 = vmul.f32 0.2, %v508_v2  ;;  %vm665_vm5 = vcmp.ge.f32.partialorder %v548_v3, 0.0  ;;  %v729_v5 = vmul.f32 0.2, %v548_v3 }
 0x112   : > { %v808_v6 = vsel %vm680_vm2, %v586_v62, %v744_v0  ;;  %v824_v7 = vsel %vm696_vm3, %v626_v63, %v760_v1 }
 0x113   : > { %872 = vst [vmem:[%s1290_s7 + $0x160] sm:$0xff] %v808_v6  ;;  %v777_v8 = vsel %vm649_vm4, %v508_v2, %v713_v4  ;;  %v793_v9 = vsel %vm665_vm5, %v548_v3, %v729_v5 }
 0x114   : > { %888 = vst [vmem:[%s1290_s7 + $0x1e0] sm:$0xff] %v824_v7 }
 0x115   : > { %841 = vst [vmem:[%s1290_s7 + $0x68] sm:$0xff] %v777_v8 }
 0x116   : > { %857 = vst [vmem:[%s1290_s7 + $0xe8] sm:$0xff] %v793_v9 }
 0x117   : > { %v588_v10 = vpop.f32.mrf.mxu2  ;;  %v628_v11 = vpop.f32.mrf.mxu3 }
 0x118   : > { %vm681_vm6 = vcmp.ge.f32.partialorder %v588_v10, 0.0  ;;  %v745_v12 = vmul.f32 0.2, %v588_v10  ;;  %vm697_vm7 = vcmp.ge.f32.partialorder %v628_v11, 0.0  ;;  %v761_v13 = vmul.f32 0.2, %v628_v11  ;;  %v511_v14 = vpop.f32.mrf.mxu0  ;;  %v551_v15 = vpop.f32.mrf.mxu1 }
 0x119   : > { %vm650_vm8 = vcmp.ge.f32.partialorder %v511_v14, 0.0  ;;  %v714_v16 = vmul.f32 0.2, %v511_v14  ;;  %vm666_vm9 = vcmp.ge.f32.partialorder %v551_v15, 0.0  ;;  %v730_v17 = vmul.f32 0.2, %v551_v15 }
 0x11a   : > { %v809_v18 = vsel %vm681_vm6, %v588_v10, %v745_v12  ;;  %v825_v19 = vsel %vm697_vm7, %v628_v11, %v761_v13 }
 0x11b   : > { %873 = vst [vmem:[%s1290_s7 + $0x168] sm:$0xff] %v809_v18  ;;  %v778_v20 = vsel %vm650_vm8, %v511_v14, %v714_v16  ;;  %v794_v21 = vsel %vm666_vm9, %v551_v15, %v730_v17 }
 0x11c   : > { %889 = vst [vmem:[%s1290_s7 + $0x1e8] sm:$0xff] %v825_v19 }
 0x11d   : > { %842 = vst [vmem:[%s1290_s7 + $0x70] sm:$0xff] %v778_v20 }
 0x11e   : > { %858 = vst [vmem:[%s1290_s7 + $0xf0] sm:$0xff] %v794_v21 }
 0x11f   : > { %v591_v22 = vpop.f32.mrf.mxu2  ;;  %v631_v23 = vpop.f32.mrf.mxu3 }
 0x120   : > { %vm682_vm10 = vcmp.ge.f32.partialorder %v591_v22, 0.0  ;;  %v746_v24 = vmul.f32 0.2, %v591_v22  ;;  %vm698_vm11 = vcmp.ge.f32.partialorder %v631_v23, 0.0  ;;  %v762_v25 = vmul.f32 0.2, %v631_v23  ;;  %v513_v26 = vpop.f32.mrf.mxu0  ;;  %v553_v27 = vpop.f32.mrf.mxu1 }
 0x121   : > { %vm651_vm12 = vcmp.ge.f32.partialorder %v513_v26, 0.0  ;;  %v715_v28 = vmul.f32 0.2, %v513_v26  ;;  %vm667_vm13 = vcmp.ge.f32.partialorder %v553_v27, 0.0  ;;  %v731_v29 = vmul.f32 0.2, %v553_v27 }
 0x122   : > { %v810_v30 = vsel %vm682_vm10, %v591_v22, %v746_v24  ;;  %v826_v31 = vsel %vm698_vm11, %v631_v23, %v762_v25 }
 0x123   : > { %874 = vst [vmem:[%s1290_s7 + $0x170] sm:$0xff] %v810_v30  ;;  %v779_v32 = vsel %vm651_vm12, %v513_v26, %v715_v28  ;;  %v795_v33 = vsel %vm667_vm13, %v553_v27, %v731_v29 }
 0x124   : > { %890 = vst [vmem:[%s1290_s7 + $0x1f0] sm:$0xff] %v826_v31 }
 0x125   : > { %843 = vst [vmem:[%s1290_s7 + $0x78] sm:$0xff] %v779_v32 }
 0x126   : > { %859 = vst [vmem:[%s1290_s7 + $0xf8] sm:$0xff] %v795_v33 }
 0x127   : > { %v593_v34 = vpop.f32.mrf.mxu2  ;;  %v633_v35 = vpop.f32.mrf.mxu3 }
 0x128   : > { %vm683_vm14 = vcmp.ge.f32.partialorder %v593_v34, 0.0  ;;  %v747_v36 = vmul.f32 0.2, %v593_v34  ;;  %vm699_vm15 = vcmp.ge.f32.partialorder %v633_v35, 0.0  ;;  %v763_v37 = vmul.f32 0.2, %v633_v35 }
 0x12a   : > { %v811_v38 = vsel %vm683_vm14, %v593_v34, %v747_v36  ;;  %v827_v39 = vsel %vm699_vm15, %v633_v35, %v763_v37 }
 0x12b   : > { %875 = vst [vmem:[%s1290_s7 + $0x178] sm:$0xff] %v811_v38 }
 0x12c   : > { %891 = vst [vmem:[%s1290_s7 + $0x1f8] sm:$0xff] %v827_v39 }
 0x12d PF: > { %s12_s9 = sadd.s32 1, %s1197_s9  }
 0x12e   : > { %p9_p4 = scmp.ge.s32.totalorder %s12_s9, 6  }
 0x130   :  { %11 = sbr.rel (!%p9_p4) target bundleno = 1 (0x1), region = 58 }

// kernel: discriminator_forward.9
= control target key start
LH: loop header
LB: loop body
LE: loop exit
PB: predicated region body
PF: predicated region fallthrough
CT: control target
= control target key end

     0   :  { %s1638_s1 = inlined_call_operand.vmem [shape: bf16[128,128], index: 1, kind: input, shape index: {}]   ;;  %s1639_s0 = inlined_call_operand.vmem [shape: bf16[512,128], index: 0, kind: input, shape index: {}]   ;;  %s1640_s2 = inlined_call_operand.vmem [shape: f32[512,128], index: 2, kind: output, shape index: {0}]   ;;  %s1641_s3 = inlined_call_operand.vmem [shape: f32[8,128], index: 3, kind: output, shape index: {1}]   ;;  %s1642_s4 = inlined_call_operand.vmem [shape: f32[8,128], index: 4, kind: output, shape index: {2}]  }
   0x1   :  { %v982_v0 = vld [vmem:[%s1638_s1 + $0x38] sm:$0xff]  ;;  %v981_v1 = vld [vmem:[%s1638_s1 + $0x30] sm:$0xff]  ;;  %v980_v2 = vld [vmem:[%s1638_s1 + $0x28] sm:$0xff] }
   0x2   :  { %334 = vmatpush.bf16.msra.mxu0 %v982_v0  ;;  %983 = vmatpush.bf16.msra.mxu1 %v982_v0  ;;  %v979_v3 = vld [vmem:[%s1638_s1 + $0x20] sm:$0xff]  ;;  %v978_v4 = vld [vmem:[%s1638_s1 + $0x18] sm:$0xff]  ;;  %v977_v5 = vld [vmem:[%s1638_s1 + $0x10] sm:$0xff] }
   0x3   :  { %984 = vmatpush.bf16.msra.mxu2 %v982_v0  ;;  %985 = vmatpush.bf16.msra.mxu3 %v982_v0  ;;  %v976_v6 = vld [vmem:[%s1638_s1 + $0x8] sm:$0xff]  ;;  %v975_v7 = vld [vmem:[%s1638_s1] sm:$0xff]  ;;  %v945_v13 = vld [vmem:[%s1639_s0 + $0x10] sm:$0xff] }
   0x4   :  { %v943_v8 = vld [vmem:[%s1639_s0] sm:$0xff]  ;;  %v944_v10 = vld [vmem:[%s1639_s0 + $0x8] sm:$0xff]  ;;  %v953_v14 = vld [vmem:[%s1639_s0 + $0x50] sm:$0xff] }
   0x5   :  { %v951_v9 = vld [vmem:[%s1639_s0 + $0x40] sm:$0xff]  ;;  %v952_v11 = vld [vmem:[%s1639_s0 + $0x48] sm:$0xff]  ;;  %v946_v16 = vld [vmem:[%s1639_s0 + $0x18] sm:$0xff] }
   0x6   :  { %335 = vmatpush.bf16.msra.mxu0 %v981_v1  ;;  %986 = vmatpush.bf16.msra.mxu1 %v981_v1  ;;  %v959_v12 = vld [vmem:[%s1639_s0 + $0x80] sm:$0xff]  ;;  %v960_v15 = vld [vmem:[%s1639_s0 + $0x88] sm:$0xff]  ;;  %v954_v17 = vld [vmem:[%s1639_s0 + $0x58] sm:$0xff] }
   0x7   :  { %987 = vmatpush.bf16.msra.mxu2 %v981_v1  ;;  %988 = vmatpush.bf16.msra.mxu3 %v981_v1  ;;  %v961_v18 = vld [vmem:[%s1639_s0 + $0x90] sm:$0xff]  ;;  %v967_v19 = vld [vmem:[%s1639_s0 + $0xc0] sm:$0xff]  ;;  %v962_v22 = vld [vmem:[%s1639_s0 + $0x98] sm:$0xff] }
   0x8   :  { %v947_v20 = vld [vmem:[%s1639_s0 + $0x20] sm:$0xff]  ;;  %v968_v23 = vld [vmem:[%s1639_s0 + $0xc8] sm:$0xff]  ;;  %v969_v27 = vld [vmem:[%s1639_s0 + $0xd0] sm:$0xff] }
   0x9   :  { %v955_v21 = vld [vmem:[%s1639_s0 + $0x60] sm:$0xff]  ;;  %v948_v24 = vld [vmem:[%s1639_s0 + $0x28] sm:$0xff]  ;;  %v949_v28 = vld [vmem:[%s1639_s0 + $0x30] sm:$0xff] }
   0xa   :  { %336 = vmatpush.bf16.msra.mxu0 %v980_v2  ;;  %989 = vmatpush.bf16.msra.mxu1 %v980_v2  ;;  %v956_v25 = vld [vmem:[%s1639_s0 + $0x68] sm:$0xff]  ;;  %v963_v26 = vld [vmem:[%s1639_s0 + $0xa0] sm:$0xff]  ;;  %v957_v29 = vld [vmem:[%s1639_s0 + $0x70] sm:$0xff] }
   0xb   :  { %990 = vmatpush.bf16.msra.mxu2 %v980_v2  ;;  %991 = vmatpush.bf16.msra.mxu3 %v980_v2  ;;  %v964_v30 = vld [vmem:[%s1639_s0 + $0xa8] sm:$0xff]  ;;  %v970_v31 = vld [vmem:[%s1639_s0 + $0xd8] sm:$0xff]  ;;  %v965_v34 = vld [vmem:[%s1639_s0 + $0xb0] sm:$0xff] }
   0xc   :  { %v950_v32 = vld [vmem:[%s1639_s0 + $0x38] sm:$0xff]  ;;  %v971_v35 = vld [vmem:[%s1639_s0 + $0xe0] sm:$0xff]  ;;  %v972_v39 = vld [vmem:[%s1639_s0 + $0xe8] sm:$0xff] }
   0xd   :  { %v958_v33 = vld [vmem:[%s1639_s0 + $0x78] sm:$0xff]  ;;  %v973_v51 = vld [vmem:[%s1639_s0 + $0xf0] sm:$0xff] }
   0xe   :  { %337 = vmatpush.bf16.msra.mxu0 %v979_v3  ;;  %992 = vmatpush.bf16.msra.mxu1 %v979_v3  ;;  %v966_v38 = vld [vmem:[%s1639_s0 + $0xb8] sm:$0xff] }
   0xf   :  { %993 = vmatpush.bf16.msra.mxu2 %v979_v3  ;;  %994 = vmatpush.bf16.msra.mxu3 %v979_v3  ;;  %v974_v0 = vld [vmem:[%s1639_s0 + $0xf8] sm:$0xff] }
  0x12   :  { %338 = vmatpush.bf16.msra.mxu0 %v978_v4  ;;  %995 = vmatpush.bf16.msra.mxu1 %v978_v4 }
  0x13   :  { %996 = vmatpush.bf16.msra.mxu2 %v978_v4  ;;  %997 = vmatpush.bf16.msra.mxu3 %v978_v4 }
  0x16   :  { %339 = vmatpush.bf16.msra.mxu0 %v977_v5  ;;  %998 = vmatpush.bf16.msra.mxu1 %v977_v5 }
  0x17   :  { %999 = vmatpush.bf16.msra.mxu2 %v977_v5  ;;  %1000 = vmatpush.bf16.msra.mxu3 %v977_v5 }
  0x1a   :  { %340 = vmatpush.bf16.msra.mxu0 %v976_v6  ;;  %1001 = vmatpush.bf16.msra.mxu1 %v976_v6 }
  0x1b   :  { %1002 = vmatpush.bf16.msra.mxu2 %v976_v6  ;;  %1003 = vmatpush.bf16.msra.mxu3 %v976_v6 }
  0x1e   :  { %341 = vmatpush.bf16.msra.mxu0 %v975_v7  ;;  %1004 = vmatpush.bf16.msra.mxu1 %v975_v7 }
  0x1f   :  { %1005 = vmatpush.bf16.msra.mxu2 %v975_v7  ;;  %1006 = vmatpush.bf16.msra.mxu3 %v975_v7 }
  0x21   :  { %342 = vmatmul.bf16.vlgmr.msra.gmra.mxu0 %v943_v8  ;;  %382 = vmatmul.bf16.vlgmr.msra.gmra.mxu1 %v951_v9 }
  0x22   :  { %422 = vmatmul.bf16.vlgmr.msra.gmra.mxu2 %v959_v12  ;;  %462 = vmatmul.bf16.vlgmr.msra.gmra.mxu3 %v967_v19 }
  0x31   :  { %347 = vmatmul.bf16.gmra.mxu0 %v944_v10  ;;  %387 = vmatmul.bf16.gmra.mxu1 %v952_v11 }
  0x32   :  { %427 = vmatmul.bf16.gmra.mxu2 %v960_v15  ;;  %467 = vmatmul.bf16.gmra.mxu3 %v968_v23 }
  0x41   :  { %352 = vmatmul.bf16.gmra.mxu0 %v945_v13  ;;  %392 = vmatmul.bf16.gmra.mxu1 %v953_v14 }
  0x42   :  { %432 = vmatmul.bf16.gmra.mxu2 %v961_v18  ;;  %472 = vmatmul.bf16.gmra.mxu3 %v969_v27 }
  0x51   :  { %357 = vmatmul.bf16.gmra.mxu0 %v946_v16  ;;  %397 = vmatmul.bf16.gmra.mxu1 %v954_v17 }
  0x52   :  { %437 = vmatmul.bf16.gmra.mxu2 %v962_v22  ;;  %477 = vmatmul.bf16.gmra.mxu3 %v970_v31 }
  0x61   :  { %362 = vmatmul.bf16.gmra.mxu0 %v947_v20  ;;  %402 = vmatmul.bf16.gmra.mxu1 %v955_v21 }
  0x62   :  { %442 = vmatmul.bf16.gmra.mxu2 %v963_v26  ;;  %482 = vmatmul.bf16.gmra.mxu3 %v971_v35 }
  0x71   :  { %367 = vmatmul.bf16.gmra.mxu0 %v948_v24  ;;  %407 = vmatmul.bf16.gmra.mxu1 %v956_v25 }
  0x72   :  { %447 = vmatmul.bf16.gmra.mxu2 %v964_v30  ;;  %487 = vmatmul.bf16.gmra.mxu3 %v972_v39 }
  0x81   :  { %372 = vmatmul.bf16.gmra.mxu0 %v949_v28  ;;  %412 = vmatmul.bf16.gmra.mxu1 %v957_v29 }
  0x82   :  { %452 = vmatmul.bf16.gmra.mxu2 %v965_v34  ;;  %492 = vmatmul.bf16.gmra.mxu3 %v973_v51 }
  0x91   :  { %377 = vmatmul.bf16.gmra.mxu0 %v950_v32  ;;  %417 = vmatmul.bf16.gmra.mxu1 %v958_v33 }
  0x92   :  { %457 = vmatmul.bf16.gmra.mxu2 %v966_v38  ;;  %497 = vmatmul.bf16.gmra.mxu3 %v974_v0 }
  0x9e   :  { %v343_v36 = vpop.f32.mrf.mxu0  ;;  %v1140_v37 = vpop.f32.mrf.mxu1 }
  0x9f   :  { %503 = vst [vmem:[%s1640_s2] sm:$0xff] %v343_v36  ;;  %v636_v42 = vmul.f32 %v343_v36, %v343_v36 }
  0xa0   :  { %519 = vst [vmem:[%s1640_s2 + $0x80] sm:$0xff] %v1140_v37 }
  0xa5   :  { %v1181_v56 = vpop.f32.mrf.mxu2  ;;  %v1250_v10 = vpop.f32.mrf.mxu3 }
  0xa6   :  { %v345_v40 = vpop.f32.mrf.mxu0  ;;  %v1155_v41 = vpop.f32.mrf.mxu1  ;;  %535 = vst [vmem:[%s1640_s2 + $0x100] sm:$0xff] %v1181_v56 }
  0xa7   :  { %504 = vst [vmem:[%s1640_s2 + $0x8] sm:$0xff] %v345_v40  ;;  %v567_v43 = vadd.f32 %v345_v40, %v343_v36  ;;  %v637_v44 = vmul.f32 %v345_v40, %v345_v40 }
  0xa8   :  { %520 = vst [vmem:[%s1640_s2 + $0x88] sm:$0xff] %v1155_v41 }
  0xa9   :  { %v700_v45 = vadd.f32 %v637_v44, %v636_v42  ;;  %551 = vst [vmem:[%s1640_s2 + $0x180] sm:$0xff] %v1250_v10 }
  0xad   :  { %v1198_v62 = vpop.f32.mrf.mxu2  ;;  %v1271_v14 = vpop.f32.mrf.mxu3 }
  0xae   :  { %v348_v46 = vpop.f32.mrf.mxu0  ;;  %v1164_v47 = vpop.f32.mrf.mxu1  ;;  %536 = vst [vmem:[%s1640_s2 + $0x108] sm:$0xff] %v1198_v62 }
  0xaf   :  { %505 = vst [vmem:[%s1640_s2 + $0x10] sm:$0xff] %v348_v46  ;;  %v568_v48 = vadd.f32 %v567_v43, %v348_v46  ;;  %v638_v49 = vmul.f32 %v348_v46, %v348_v46 }
  0xb0   :  { %521 = vst [vmem:[%s1640_s2 + $0x90] sm:$0xff] %v1164_v47 }
  0xb1   :  { %v701_v50 = vadd.f32 %v700_v45, %v638_v49  ;;  %552 = vst [vmem:[%s1640_s2 + $0x188] sm:$0xff] %v1271_v14 }
  0xb5   :  { %v1218_v3 = vpop.f32.mrf.mxu2  ;;  %v1292_v18 = vpop.f32.mrf.mxu3 }
  0xb6   :  { %v350_v52 = vpop.f32.mrf.mxu0  ;;  %v1176_v53 = vpop.f32.mrf.mxu1  ;;  %537 = vst [vmem:[%s1640_s2 + $0x110] sm:$0xff] %v1218_v3 }
  0xb7   :  { %506 = vst [vmem:[%s1640_s2 + $0x18] sm:$0xff] %v350_v52  ;;  %v569_v54 = vadd.f32 %v568_v48, %v350_v52  ;;  %v639_v55 = vmul.f32 %v350_v52, %v350_v52 }
  0xb8   :  { %522 = vst [vmem:[%s1640_s2 + $0x98] sm:$0xff] %v1176_v53 }
  0xb9   :  { %v702_v57 = vadd.f32 %v701_v50, %v639_v55  ;;  %553 = vst [vmem:[%s1640_s2 + $0x190] sm:$0xff] %v1292_v18 }
  0xbd   :  { %v1233_v6 = vpop.f32.mrf.mxu2  ;;  %v1313_v22 = vpop.f32.mrf.mxu3 }
  0xbe   :  { %v353_v58 = vpop.f32.mrf.mxu0  ;;  %v1191_v59 = vpop.f32.mrf.mxu1  ;;  %538 = vst [vmem:[%s1640_s2 + $0x118] sm:$0xff] %v1233_v6 }
  0xbf   :  { %507 = vst [vmem:[%s1640_s2 + $0x20] sm:$0xff] %v353_v58  ;;  %v1196_v60 = vadd.f32 %v569_v54, %v353_v58  ;;  %v640_v61 = vmul.f32 %v353_v58, %v353_v58 }
  0xc0   :  { %523 = vst [vmem:[%s1640_s2 + $0xa0] sm:$0xff] %v1191_v59 }
  0xc1   :  { %v1204_v63 = vadd.f32 %v702_v57, %v640_v61  ;;  %554 = vst [vmem:[%s1640_s2 + $0x198] sm:$0xff] %v1313_v22 }
  0xc5   :  { %v1248_v9 = vpop.f32.mrf.mxu2  ;;  %v1334_v26 = vpop.f32.mrf.mxu3 }
  0xc6   :  { %v355_v1 = vpop.f32.mrf.mxu0  ;;  %v1213_v2 = vpop.f32.mrf.mxu1  ;;  %539 = vst [vmem:[%s1640_s2 + $0x120] sm:$0xff] %v1248_v9 }
  0xc7   :  { %508 = vst [vmem:[%s1640_s2 + $0x28] sm:$0xff] %v355_v1  ;;  %v641_v31 = vmul.f32 %v355_v1, %v355_v1  ;;  %v571_v32 = vadd.f32 %v1196_v60, %v355_v1 }
  0xc8   :  { %524 = vst [vmem:[%s1640_s2 + $0xa8] sm:$0xff] %v1213_v2 }
  0xc9   :  { %555 = vst [vmem:[%s1640_s2 + $0x1a0] sm:$0xff] %v1334_v26  ;;  %v704_v34 = vadd.f32 %v1204_v63, %v641_v31 }
  0xcd   :  { %v1269_v13 = vpop.f32.mrf.mxu2  ;;  %v1355_v30 = vpop.f32.mrf.mxu3 }
  0xce   :  { %v358_v4 = vpop.f32.mrf.mxu0  ;;  %v1228_v5 = vpop.f32.mrf.mxu1  ;;  %540 = vst [vmem:[%s1640_s2 + $0x128] sm:$0xff] %v1269_v13 }
  0xcf   :  { %509 = vst [vmem:[%s1640_s2 + $0x30] sm:$0xff] %v358_v4  ;;  %v642_v33 = vmul.f32 %v358_v4, %v358_v4  ;;  %v572_v35 = vadd.f32 %v571_v32, %v358_v4 }
  0xd0   :  { %525 = vst [vmem:[%s1640_s2 + $0xb0] sm:$0xff] %v1228_v5 }
  0xd1   :  { %556 = vst [vmem:[%s1640_s2 + $0x1a8] sm:$0xff] %v1355_v30  ;;  %v705_v40 = vadd.f32 %v704_v34, %v642_v33 }
  0xd5   :  { %v1290_v17 = vpop.f32.mrf.mxu2  ;;  %v1378_v45 = vpop.f32.mrf.mxu3 }
  0xd6   :  { %v360_v7 = vpop.f32.mrf.mxu0  ;;  %v1243_v8 = vpop.f32.mrf.mxu1  ;;  %541 = vst [vmem:[%s1640_s2 + $0x130] sm:$0xff] %v1290_v17 }
  0xd7   :  { %510 = vst [vmem:[%s1640_s2 + $0x38] sm:$0xff] %v360_v7  ;;  %v643_v36 = vmul.f32 %v360_v7, %v360_v7  ;;  %v573_v42 = vadd.f32 %v572_v35, %v360_v7 }
  0xd8   :  { %526 = vst [vmem:[%s1640_s2 + $0xb8] sm:$0xff] %v1243_v8 }
  0xd9   :  { %v706_v46 = vadd.f32 %v705_v40, %v643_v36  ;;  %557 = vst [vmem:[%s1640_s2 + $0x1b0] sm:$0xff] %v1378_v45 }
  0xdd   :  { %v1311_v21 = vpop.f32.mrf.mxu2  ;;  %v1399_v4 = vpop.f32.mrf.mxu3 }
  0xde   :  { %v363_v11 = vpop.f32.mrf.mxu0  ;;  %v1264_v12 = vpop.f32.mrf.mxu1  ;;  %542 = vst [vmem:[%s1640_s2 + $0x138] sm:$0xff] %v1311_v21 }
  0xdf   :  { %511 = vst [vmem:[%s1640_s2 + $0x40] sm:$0xff] %v363_v11  ;;  %v644_v43 = vmul.f32 %v363_v11, %v363_v11  ;;  %v574_v48 = vadd.f32 %v573_v42, %v363_v11 }
  0xe0   :  { %527 = vst [vmem:[%s1640_s2 + $0xc0] sm:$0xff] %v1264_v12 }
  0xe1   :  { %v707_v50 = vadd.f32 %v706_v46, %v644_v43  ;;  %558 = vst [vmem:[%s1640_s2 + $0x1b8] sm:$0xff] %v1399_v4 }
  0xe5   :  { %v1332_v25 = vpop.f32.mrf.mxu2  ;;  %v1420_v43 = vpop.f32.mrf.mxu3 }
  0xe6   :  { %v365_v15 = vpop.f32.mrf.mxu0  ;;  %v1285_v16 = vpop.f32.mrf.mxu1  ;;  %543 = vst [vmem:[%s1640_s2 + $0x140] sm:$0xff] %v1332_v25 }
  0xe7   :  { %512 = vst [vmem:[%s1640_s2 + $0x48] sm:$0xff] %v365_v15  ;;  %v645_v49 = vmul.f32 %v365_v15, %v365_v15  ;;  %v575_v51 = vadd.f32 %v574_v48, %v365_v15 }
  0xe8   :  { %528 = vst [vmem:[%s1640_s2 + $0xc8] sm:$0xff] %v1285_v16 }
  0xe9   :  { %v708_v54 = vadd.f32 %v707_v50, %v645_v49  ;;  %559 = vst [vmem:[%s1640_s2 + $0x1c0] sm:$0xff] %v1420_v43  ;;  %v653_v49 = vmul.f32 %v1155_v41, %v1155_v41 }
  0xed   :  { %v1353_v29 = vpop.f32.mrf.mxu2 }
  0xee   :  { %v368_v19 = vpop.f32.mrf.mxu0  ;;  %v1306_v20 = vpop.f32.mrf.mxu1  ;;  %544 = vst [vmem:[%s1640_s2 + $0x148] sm:$0xff] %v1353_v29 }
  0xef   :  { %513 = vst [vmem:[%s1640_s2 + $0x50] sm:$0xff] %v368_v19  ;;  %v646_v52 = vmul.f32 %v368_v19, %v368_v19  ;;  %v576_v55 = vadd.f32 %v575_v51, %v368_v19 }
  0xf0   :  { %529 = vst [vmem:[%s1640_s2 + $0xd0] sm:$0xff] %v1306_v20 }
  0xf1   :  { %v709_v61 = vadd.f32 %v708_v54, %v646_v52 }
  0xf5   :  { %v1376_v44 = vpop.f32.mrf.mxu2 }
  0xf6   :  { %v370_v23 = vpop.f32.mrf.mxu0  ;;  %v1327_v24 = vpop.f32.mrf.mxu1  ;;  %545 = vst [vmem:[%s1640_s2 + $0x150] sm:$0xff] %v1376_v44 }
  0xf7   :  { %514 = vst [vmem:[%s1640_s2 + $0x58] sm:$0xff] %v370_v23  ;;  %v647_v57 = vmul.f32 %v370_v23, %v370_v23  ;;  %v577_v63 = vadd.f32 %v576_v55, %v370_v23  ;;  %v655_v55 = vmul.f32 %v1176_v53, %v1176_v53 }
  0xf8   :  { %530 = vst [vmem:[%s1640_s2 + $0xd8] sm:$0xff] %v1327_v24 }
  0xf9   :  { %v710_v7 = vadd.f32 %v709_v61, %v647_v57 }
  0xfd   :  { %v1397_v1 = vpop.f32.mrf.mxu2 }
  0xfe   :  { %v373_v27 = vpop.f32.mrf.mxu0  ;;  %v1348_v28 = vpop.f32.mrf.mxu1  ;;  %546 = vst [vmem:[%s1640_s2 + $0x158] sm:$0xff] %v1397_v1 }
  0xff   :  { %515 = vst [vmem:[%s1640_s2 + $0x60] sm:$0xff] %v373_v27  ;;  %v648_v0 = vmul.f32 %v373_v27, %v373_v27  ;;  %v578_v11 = vadd.f32 %v577_v63, %v373_v27  ;;  %v1448_v63 = vpop.f32.mrf.mxu3 }
 0x100   :  { %531 = vst [vmem:[%s1640_s2 + $0xe0] sm:$0xff] %v1348_v28 }
 0x101   :  { %v711_v19 = vadd.f32 %v710_v7, %v648_v0  ;;  %560 = vst [vmem:[%s1640_s2 + $0x1c8] sm:$0xff] %v1448_v63 }
 0x105   :  { %v1418_v42 = vpop.f32.mrf.mxu2 }
 0x106   :  { %v375_v38 = vpop.f32.mrf.mxu0  ;;  %v1371_v39 = vpop.f32.mrf.mxu1  ;;  %547 = vst [vmem:[%s1640_s2 + $0x160] sm:$0xff] %v1418_v42 }
 0x107   :  { %516 = vst [vmem:[%s1640_s2 + $0x68] sm:$0xff] %v375_v38  ;;  %v649_v15 = vmul.f32 %v375_v38, %v375_v38  ;;  %v579_v23 = vadd.f32 %v578_v11, %v375_v38  ;;  %v652_v38 = vmul.f32 %v1140_v37, %v1140_v37 }
 0x108   :  { %532 = vst [vmem:[%s1640_s2 + $0xe8] sm:$0xff] %v1371_v39 }
 0x109   :  { %v712_v32 = vadd.f32 %v711_v19, %v649_v15  ;;  %v658_v15 = vmul.f32 %v1228_v5, %v1228_v5 }
 0x10d   :  { %v1446_v61 = vpop.f32.mrf.mxu2 }
 0x10e   :  { %v378_v58 = vpop.f32.mrf.mxu0  ;;  %v1392_v60 = vpop.f32.mrf.mxu1  ;;  %548 = vst [vmem:[%s1640_s2 + $0x168] sm:$0xff] %v1446_v61 }
 0x10f   :  { %517 = vst [vmem:[%s1640_s2 + $0x70] sm:$0xff] %v378_v58  ;;  %v650_v31 = vmul.f32 %v378_v58, %v378_v58  ;;  %v580_v33 = vadd.f32 %v579_v23, %v378_v58 }
 0x110   :  { %533 = vst [vmem:[%s1640_s2 + $0xf0] sm:$0xff] %v1392_v60 }
 0x111   :  { %v713_v27 = vadd.f32 %v712_v32, %v650_v31 }
 0x116   :  { %v380_v34 = vpop.f32.mrf.mxu0  ;;  %v1413_v35 = vpop.f32.mrf.mxu1 }
 0x117   :  { %518 = vst [vmem:[%s1640_s2 + $0x78] sm:$0xff] %v380_v34  ;;  %v581_v36 = vadd.f32 %v580_v33, %v380_v34  ;;  %v651_v40 = vmul.f32 %v380_v34, %v380_v34  ;;  %v1470_v33 = vpop.f32.mrf.mxu2  ;;  %v1472_v34 = vpop.f32.mrf.mxu3 }
 0x118   :  { %534 = vst [vmem:[%s1640_s2 + $0xf8] sm:$0xff] %v1413_v35 }
 0x119   :  { %v582_v46 = vadd.f32 %v581_v36, %v1140_v37  ;;  %v714_v48 = vadd.f32 %v713_v27, %v651_v40  ;;  %v654_v37 = vmul.f32 %v1164_v47, %v1164_v47  ;;  %549 = vst [vmem:[%s1640_s2 + $0x170] sm:$0xff] %v1470_v33 }
 0x11a   :  { %561 = vst [vmem:[%s1640_s2 + $0x1d0] sm:$0xff] %v1472_v34 }
 0x11b   :  { %v583_v50 = vadd.f32 %v582_v46, %v1155_v41  ;;  %v715_v51 = vadd.f32 %v714_v48, %v652_v38  ;;  %v656_v41 = vmul.f32 %v1191_v59, %v1191_v59  ;;  %v662_v38 = vmul.f32 %v1306_v20, %v1306_v20 }
 0x11d   :  { %v584_v52 = vadd.f32 %v583_v50, %v1164_v47  ;;  %v716_v54 = vadd.f32 %v715_v51, %v653_v49 }
 0x11f   :  { %v585_v57 = vadd.f32 %v584_v52, %v1176_v53  ;;  %v717_v58 = vadd.f32 %v716_v54, %v654_v37  ;;  %v657_v53 = vmul.f32 %v1213_v2, %v1213_v2  ;;  %v1494_v51 = vpop.f32.mrf.mxu2  ;;  %v1496_v37 = vpop.f32.mrf.mxu3 }
 0x120   :  { %550 = vst [vmem:[%s1640_s2 + $0x178] sm:$0xff] %v1494_v51 }
 0x121   :  { %v586_v47 = vadd.f32 %v585_v57, %v1191_v59  ;;  %v718_v0 = vadd.f32 %v717_v58, %v655_v55  ;;  %v659_v59 = vmul.f32 %v1243_v8, %v1243_v8  ;;  %562 = vst [vmem:[%s1640_s2 + $0x1d8] sm:$0xff] %v1496_v37  ;;  %v665_v55 = vmul.f32 %v1371_v39, %v1371_v39 }
 0x123   :  { %v587_v7 = vadd.f32 %v586_v47, %v1213_v2  ;;  %v719_v11 = vadd.f32 %v718_v0, %v656_v41  ;;  %v660_v2 = vmul.f32 %v1264_v12, %v1264_v12  ;;  %v666_v41 = vmul.f32 %v1392_v60, %v1392_v60 }
 0x124   :  { %v667_v0 = vmul.f32 %v1413_v35, %v1413_v35 }
 0x125   :  { %v720_v19 = vadd.f32 %v719_v11, %v657_v53  ;;  %v588_v23 = vadd.f32 %v587_v7, %v1228_v5 }
 0x127   :  { %v589_v31 = vadd.f32 %v588_v23, %v1243_v8  ;;  %v721_v32 = vadd.f32 %v720_v19, %v658_v15  ;;  %v661_v8 = vmul.f32 %v1285_v16, %v1285_v16  ;;  %v1518_v53 = vpop.f32.mrf.mxu3 }
 0x128   :  { %563 = vst [vmem:[%s1640_s2 + $0x1e0] sm:$0xff] %v1518_v53 }
 0x129   :  { %v590_v5 = vadd.f32 %v589_v31, %v1264_v12  ;;  %v722_v27 = vadd.f32 %v721_v32, %v659_v59  ;;  %v663_v12 = vmul.f32 %v1327_v24, %v1327_v24  ;;  %v671_v31 = vmul.f32 %v1233_v6, %v1233_v6 }
 0x12b   :  { %v591_v36 = vadd.f32 %v590_v5, %v1285_v16  ;;  %v723_v40 = vadd.f32 %v722_v27, %v660_v2  ;;  %v673_v27 = vmul.f32 %v1269_v13, %v1269_v13 }
 0x12d   :  { %v592_v46 = vadd.f32 %v591_v36, %v1306_v20  ;;  %v724_v48 = vadd.f32 %v723_v40, %v661_v8  ;;  %v664_v20 = vmul.f32 %v1348_v28, %v1348_v28  ;;  %v674_v36 = vmul.f32 %v1290_v17, %v1290_v17 }
 0x12f   :  { %v593_v49 = vadd.f32 %v592_v46, %v1327_v24  ;;  %v725_v50 = vadd.f32 %v724_v48, %v662_v38  ;;  %v675_v46 = vmul.f32 %v1311_v21, %v1311_v21 }
 0x131   :  { %v594_v16 = vadd.f32 %v593_v49, %v1348_v28  ;;  %v726_v52 = vadd.f32 %v725_v50, %v663_v12 }
 0x133   :  { %v727_v24 = vadd.f32 %v726_v52, %v664_v20  ;;  %v595_v54 = vadd.f32 %v594_v16, %v1371_v39  ;;  %v668_v39 = vmul.f32 %v1181_v56, %v1181_v56  ;;  %v678_v20 = vmul.f32 %v1376_v44, %v1376_v44 }
 0x135   :  { %v728_v57 = vadd.f32 %v727_v24, %v665_v55  ;;  %v596_v58 = vadd.f32 %v595_v54, %v1392_v60  ;;  %v669_v60 = vmul.f32 %v1198_v62, %v1198_v62  ;;  %v679_v55 = vmul.f32 %v1397_v1, %v1397_v1 }
 0x137   :  { %v729_v47 = vadd.f32 %v728_v57, %v666_v41  ;;  %v597_v28 = vadd.f32 %v596_v58, %v1413_v35  ;;  %v670_v35 = vmul.f32 %v1218_v3, %v1218_v3  ;;  %v680_v41 = vmul.f32 %v1418_v42, %v1418_v42 }
 0x139   :  { %v598_v7 = vadd.f32 %v597_v28, %v1181_v56  ;;  %v730_v11 = vadd.f32 %v729_v47, %v667_v0  ;;  %v1536_v56 = vpop.f32.mrf.mxu3  ;;  %v681_v28 = vmul.f32 %v1446_v61, %v1446_v61 }
 0x13a   :  { %564 = vst [vmem:[%s1640_s2 + $0x1e8] sm:$0xff] %v1536_v56 }
 0x13b   :  { %v599_v15 = vadd.f32 %v598_v7, %v1198_v62  ;;  %v731_v19 = vadd.f32 %v730_v11, %v668_v39  ;;  %v672_v62 = vmul.f32 %v1248_v9, %v1248_v9  ;;  %v682_v39 = vmul.f32 %v1470_v33, %v1470_v33 }
 0x13d   :  { %v600_v23 = vadd.f32 %v599_v15, %v1218_v3  ;;  %v732_v59 = vadd.f32 %v731_v19, %v669_v60  ;;  %v683_v60 = vmul.f32 %v1494_v51, %v1494_v51 }
 0x13f   :  { %v601_v32 = vadd.f32 %v600_v23, %v1233_v6  ;;  %v733_v2 = vadd.f32 %v732_v59, %v670_v35 }
 0x141   :  { %v602_v5 = vadd.f32 %v601_v32, %v1248_v9  ;;  %v734_v3 = vadd.f32 %v733_v2, %v671_v31  ;;  %v1554_v9 = vpop.f32.mrf.mxu3 }
 0x142   :  { %565 = vst [vmem:[%s1640_s2 + $0x1f0] sm:$0xff] %v1554_v9 }
 0x143   :  { %v603_v8 = vadd.f32 %v602_v5, %v1269_v13  ;;  %v735_v6 = vadd.f32 %v734_v3, %v672_v62  ;;  %v676_v13 = vmul.f32 %v1332_v25, %v1332_v25 }
 0x145   :  { %v736_v40 = vadd.f32 %v735_v6, %v673_v27  ;;  %v604_v38 = vadd.f32 %v603_v8, %v1290_v17  ;;  %v677_v17 = vmul.f32 %v1353_v29, %v1353_v29 }
 0x147   :  { %v605_v48 = vadd.f32 %v604_v38, %v1311_v21  ;;  %v737_v12 = vadd.f32 %v736_v40, %v674_v36 }
 0x149   :  { %v606_v49 = vadd.f32 %v605_v48, %v1332_v25  ;;  %v738_v50 = vadd.f32 %v737_v12, %v675_v46  ;;  %v500_v25 = vpop.f32.mrf.mxu3 }
 0x14a   :  { %566 = vst [vmem:[%s1640_s2 + $0x1f8] sm:$0xff] %v500_v25 }
 0x14b   :  { %v607_v16 = vadd.f32 %v606_v49, %v1353_v29  ;;  %v739_v21 = vadd.f32 %v738_v50, %v676_v13  ;;  %v695_v50 = vmul.f32 %v1496_v37, %v1496_v37 }
 0x14d   :  { %v608_v52 = vadd.f32 %v607_v16, %v1376_v44  ;;  %v740_v24 = vadd.f32 %v739_v21, %v677_v17  ;;  %v696_v21 = vmul.f32 %v1518_v53, %v1518_v53 }
 0x14f   :  { %v609_v54 = vadd.f32 %v608_v52, %v1397_v1  ;;  %v741_v57 = vadd.f32 %v740_v24, %v678_v20  ;;  %v697_v52 = vmul.f32 %v1536_v56, %v1536_v56 }
 0x151   :  { %v742_v58 = vadd.f32 %v741_v57, %v679_v55  ;;  %v610_v29 = vadd.f32 %v609_v54, %v1418_v42  ;;  %v684_v42 = vmul.f32 %v1250_v10, %v1250_v10  ;;  %v698_v54 = vmul.f32 %v1554_v9, %v1554_v9 }
 0x152   :  { %v699_v57 = vmul.f32 %v500_v25, %v500_v25 }
 0x153   :  { %v743_v47 = vadd.f32 %v742_v58, %v680_v41  ;;  %v611_v44 = vadd.f32 %v610_v29, %v1446_v61  ;;  %v685_v61 = vmul.f32 %v1271_v14, %v1271_v14 }
 0x155   :  { %v744_v0 = vadd.f32 %v743_v47, %v681_v28  ;;  %v612_v1 = vadd.f32 %v611_v44, %v1470_v33  ;;  %v686_v33 = vmul.f32 %v1292_v18, %v1292_v18 }
 0x157   :  { %v745_v7 = vadd.f32 %v744_v0, %v682_v39  ;;  %v613_v11 = vadd.f32 %v612_v1, %v1494_v51  ;;  %v687_v51 = vmul.f32 %v1313_v22, %v1313_v22 }
 0x159   :  { %v614_v15 = vadd.f32 %v613_v11, %v1250_v10  ;;  %v746_v19 = vadd.f32 %v745_v7, %v683_v60  ;;  %v688_v10 = vmul.f32 %v1334_v26, %v1334_v26 }
 0x15b   :  { %v615_v35 = vadd.f32 %v614_v15, %v1271_v14  ;;  %v747_v23 = vadd.f32 %v746_v19, %v684_v42  ;;  %v689_v14 = vmul.f32 %v1355_v30, %v1355_v30 }
 0x15d   :  { %v616_v59 = vadd.f32 %v615_v35, %v1292_v18  ;;  %v748_v31 = vadd.f32 %v747_v23, %v685_v61  ;;  %v690_v18 = vmul.f32 %v1378_v45, %v1378_v45 }
 0x15f   :  { %v617_v32 = vadd.f32 %v616_v59, %v1313_v22  ;;  %v749_v2 = vadd.f32 %v748_v31, %v686_v33  ;;  %v691_v22 = vmul.f32 %v1399_v4, %v1399_v4 }
 0x161   :  { %v618_v62 = vadd.f32 %v617_v32, %v1334_v26  ;;  %v750_v5 = vadd.f32 %v749_v2, %v687_v51  ;;  %v692_v26 = vmul.f32 %v1420_v43, %v1420_v43 }
 0x163   :  { %v619_v3 = vadd.f32 %v618_v62, %v1355_v30  ;;  %v751_v27 = vadd.f32 %v750_v5, %v688_v10  ;;  %v693_v30 = vmul.f32 %v1448_v63, %v1448_v63 }
 0x165   :  { %v752_v8 = vadd.f32 %v751_v27, %v689_v14  ;;  %v620_v6 = vadd.f32 %v619_v3, %v1378_v45  ;;  %v694_v45 = vmul.f32 %v1472_v34, %v1472_v34 }
 0x167   :  { %v621_v36 = vadd.f32 %v620_v6, %v1399_v4  ;;  %v753_v40 = vadd.f32 %v752_v8, %v690_v18 }
 0x169   :  { %v622_v38 = vadd.f32 %v621_v36, %v1420_v43  ;;  %v754_v46 = vadd.f32 %v753_v40, %v691_v22 }
 0x16b   :  { %v623_v48 = vadd.f32 %v622_v38, %v1448_v63  ;;  %v755_v12 = vadd.f32 %v754_v46, %v692_v26 }
 0x16d   :  { %v624_v13 = vadd.f32 %v623_v48, %v1472_v34  ;;  %v756_v49 = vadd.f32 %v755_v12, %v693_v30 }
 0x16f   :  { %v625_v4 = vadd.f32 %v624_v13, %v1496_v37  ;;  %v757_v17 = vadd.f32 %v756_v49, %v694_v45 }
 0x171   :  { %v758_v43 = vadd.f32 %v757_v17, %v695_v50  ;;  %v626_v16 = vadd.f32 %v625_v4, %v1518_v53 }
 0x173   :  { %v759_v63 = vadd.f32 %v758_v43, %v696_v21  ;;  %v627_v20 = vadd.f32 %v626_v16, %v1536_v56 }
 0x175   :  { %v760_v34 = vadd.f32 %v759_v63, %v697_v52  ;;  %v628_v24 = vadd.f32 %v627_v20, %v1554_v9 }
 0x177   :  { %v761_v37 = vadd.f32 %v760_v34, %v698_v54  ;;  %v629_v55 = vadd.f32 %v628_v24, %v500_v25 }
 0x179   :  { %v630_v58 = vrot.slane %v629_v55, 4  ;;  %v762_v29 = vadd.f32 %v761_v37, %v699_v57 }
 0x17b   :  { %v631_v41 = vadd.f32 %v630_v58, %v629_v55  ;;  %v763_v47 = vrot.slane %v762_v29, 4 }
 0x17d   :  { %v632_v53 = vrot.slane %v631_v41, 2  ;;  %v764_v44 = vadd.f32 %v763_v47, %v762_v29 }
 0x17f   :  { %v633_v28 = vadd.f32 %v632_v53, %v631_v41  ;;  %v765_v0 = vrot.slane %v764_v44, 2 }
 0x181   :  { %v634_v1 = vrot.slane %v633_v28, 1  ;;  %v766_v39 = vadd.f32 %v765_v0, %v764_v44 }
 0x183   :  { %v635_v56 = vadd.f32 %v634_v1, %v633_v28  ;;  %v767_v7 = vrot.slane %v766_v39, 1 }
 0x185   :  { %v768_v11 = vadd.f32 %v767_v7, %v766_v39  ;;  %769 = vst [vmem:[%s1641_s3] sm:$0xff] %v635_v56 }
 0x187   :  { %770 = vst [vmem:[%s1642_s4] sm:$0xff] %v768_v11 }

// kernel: discriminator_forward.10
= control target key start
LH: loop header
LB: loop body
LE: loop exit
PB: predicated region body
PF: predicated region fallthrough
CT: control target
= control target key end

     0   :  { %s1020_s0 = inlined_call_operand.vmem [shape: f32[512,128], index: 0, kind: input, shape index: {}]   ;;  %s1021_s1 = inlined_call_operand.vmem [shape: f32[1,128], index: 1, kind: input, shape index: {}]   ;;  %s1022_s2 = inlined_call_operand.vmem [shape: f32[1,128], index: 2, kind: input, shape index: {}]   ;;  %s1023_s3 = inlined_call_operand.vmem [shape: f32[512,128], index: 3, kind: output, shape index: {}]  }
   0x1   :  { %v14_v0 = vld [vmem:[%s1020_s0] sm:$0xff]  ;;  %v15_v3 = vld [vmem:[%s1020_s0 + $0x8] sm:$0xff]  ;;  %v16_v6 = vld [vmem:[%s1020_s0 + $0x10] sm:$0xff] }
   0x2   :  { %v502_v1 = vld [vmem:[%s1021_s1] ss:$0 sm:$0xff]  ;;  %v17_v7 = vld [vmem:[%s1020_s0 + $0x18] sm:$0xff]  ;;  %v19_v12 = vld [vmem:[%s1020_s0 + $0x28] sm:$0xff] }
   0x3   :  { %v507_v2 = vld [vmem:[%s1022_s2] ss:$0 sm:$0xff]  ;;  %v82_v4 = vmul.f32 %v502_v1, %v14_v0  ;;  %v83_v5 = vmul.f32 %v502_v1, %v15_v3  ;;  %v84_v9 = vmul.f32 %v502_v1, %v16_v6  ;;  %v85_v10 = vmul.f32 %v502_v1, %v17_v7  ;;  %v20_v13 = vld [vmem:[%s1020_s0 + $0x30] sm:$0xff]  ;;  %v21_v14 = vld [vmem:[%s1020_s0 + $0x38] sm:$0xff] }
   0x4   :  { %v18_v8 = vld [vmem:[%s1020_s0 + $0x20] sm:$0xff]  ;;  %v87_v17 = vmul.f32 %v502_v1, %v19_v12  ;;  %v88_v18 = vmul.f32 %v502_v1, %v20_v13  ;;  %v89_v22 = vmul.f32 %v502_v1, %v21_v14  ;;  %v23_v24 = vld [vmem:[%s1020_s0 + $0x48] sm:$0xff]  ;;  %v24_v32 = vld [vmem:[%s1020_s0 + $0x50] sm:$0xff] }
   0x5   :  { %v86_v11 = vmul.f32 %v502_v1, %v18_v8  ;;  %v150_v15 = vadd.f32 %v507_v2, %v82_v4  ;;  %v151_v16 = vadd.f32 %v507_v2, %v83_v5  ;;  %v152_v19 = vadd.f32 %v507_v2, %v84_v9  ;;  %v22_v23 = vld [vmem:[%s1020_s0 + $0x40] sm:$0xff]  ;;  %v25_v41 = vld [vmem:[%s1020_s0 + $0x58] sm:$0xff]  ;;  %v27_v52 = vld [vmem:[%s1020_s0 + $0x68] sm:$0xff] }
   0x6   :  { %v153_v20 = vadd.f32 %v507_v2, %v85_v10  ;;  %v155_v35 = vadd.f32 %v507_v2, %v87_v17  ;;  %v156_v36 = vadd.f32 %v507_v2, %v88_v18  ;;  %v157_v38 = vadd.f32 %v507_v2, %v89_v22  ;;  %v26_v51 = vld [vmem:[%s1020_s0 + $0x60] sm:$0xff]  ;;  %v28_v56 = vld [vmem:[%s1020_s0 + $0x70] sm:$0xff]  ;;  %v29_v59 = vld [vmem:[%s1020_s0 + $0x78] sm:$0xff] }
   0x7   :  { %v154_v21 = vadd.f32 %v507_v2, %v86_v11  ;;  %vm214_vm0 = vcmp.ge.f32.partialorder %v150_v15, 0.0  ;;  %v278_v25 = vmul.f32 0.2, %v150_v15  ;;  %vm215_vm1 = vcmp.ge.f32.partialorder %v151_v16, 0.0  ;;  %v30_v0 = vld [vmem:[%s1020_s0 + $0x80] sm:$0xff]  ;;  %v31_v3 = vld [vmem:[%s1020_s0 + $0x88] sm:$0xff] }
   0x8   :  { %v279_v26 = vmul.f32 0.2, %v151_v16  ;;  %vm216_vm2 = vcmp.ge.f32.partialorder %v152_v19, 0.0  ;;  %v280_v27 = vmul.f32 0.2, %v152_v19  ;;  %vm217_vm3 = vcmp.ge.f32.partialorder %v153_v20, 0.0 }
   0x9   :  { %v281_v28 = vmul.f32 0.2, %v153_v20  ;;  %v342_v29 = vsel %vm214_vm0, %v150_v15, %v278_v25  ;;  %vm218_vm4 = vcmp.ge.f32.partialorder %v154_v21, 0.0  ;;  %v282_v31 = vmul.f32 0.2, %v154_v21  ;;  %v34_v25 = vld [vmem:[%s1020_s0 + $0xa0] sm:$0xff] }
   0xa   :  { %v343_v30 = vsel %vm215_vm1, %v151_v16, %v279_v26  ;;  %406 = vst [vmem:[%s1023_s3] sm:$0xff] %v342_v29  ;;  %v344_v33 = vsel %vm216_vm2, %v152_v19, %v280_v27  ;;  %v90_v39 = vmul.f32 %v502_v1, %v22_v23  ;;  %v91_v40 = vmul.f32 %v502_v1, %v23_v24  ;;  %v33_v24 = vld [vmem:[%s1020_s0 + $0x98] sm:$0xff]  ;;  %v35_v26 = vld [vmem:[%s1020_s0 + $0xa8] sm:$0xff] }
   0xb   :  { %v345_v34 = vsel %vm217_vm3, %v153_v20, %v281_v28  ;;  %407 = vst [vmem:[%s1023_s3 + $0x8] sm:$0xff] %v343_v30  ;;  %v346_v37 = vsel %vm218_vm4, %v154_v21, %v282_v31  ;;  %vm219_vm5 = vcmp.ge.f32.partialorder %v155_v35, 0.0  ;;  %v283_v42 = vmul.f32 0.2, %v155_v35  ;;  %v32_v20 = vld [vmem:[%s1020_s0 + $0x90] sm:$0xff]  ;;  %v37_v31 = vld [vmem:[%s1020_s0 + $0xb8] sm:$0xff] }
   0xc   :  { %408 = vst [vmem:[%s1023_s3 + $0x10] sm:$0xff] %v344_v33  ;;  %vm220_vm6 = vcmp.ge.f32.partialorder %v156_v36, 0.0  ;;  %v92_v43 = vmul.f32 %v502_v1, %v24_v32  ;;  %v284_v44 = vmul.f32 0.2, %v156_v36  ;;  %vm221_vm7 = vcmp.ge.f32.partialorder %v157_v38, 0.0  ;;  %v36_v30 = vld [vmem:[%s1020_s0 + $0xb0] sm:$0xff] }
   0xd   :  { %409 = vst [vmem:[%s1023_s3 + $0x18] sm:$0xff] %v345_v34  ;;  %v285_v45 = vmul.f32 0.2, %v157_v38  ;;  %v158_v46 = vadd.f32 %v507_v2, %v90_v39  ;;  %v347_v47 = vsel %vm219_vm5, %v155_v35, %v283_v42  ;;  %v159_v48 = vadd.f32 %v507_v2, %v91_v40  ;;  %v38_v35 = vld [vmem:[%s1020_s0 + $0xc0] sm:$0xff] }
   0xe   :  { %410 = vst [vmem:[%s1023_s3 + $0x20] sm:$0xff] %v346_v37  ;;  %v160_v49 = vadd.f32 %v507_v2, %v92_v43  ;;  %v93_v50 = vmul.f32 %v502_v1, %v25_v41  ;;  %v348_v53 = vsel %vm220_vm6, %v156_v36, %v284_v44  ;;  %v94_v62 = vmul.f32 %v502_v1, %v26_v51  ;;  %v39_v51 = vld [vmem:[%s1020_s0 + $0xc8] sm:$0xff] }
   0xf   :  { %411 = vst [vmem:[%s1023_s3 + $0x28] sm:$0xff] %v347_v47  ;;  %v349_v54 = vsel %vm221_vm7, %v157_v38, %v285_v45  ;;  %vm222_vm8 = vcmp.ge.f32.partialorder %v158_v46, 0.0  ;;  %v286_v55 = vmul.f32 0.2, %v158_v46  ;;  %vm223_vm9 = vcmp.ge.f32.partialorder %v159_v48, 0.0 }
  0x10   :  { %412 = vst [vmem:[%s1023_s3 + $0x30] sm:$0xff] %v348_v53  ;;  %v287_v57 = vmul.f32 0.2, %v159_v48  ;;  %vm224_vm10 = vcmp.ge.f32.partialorder %v160_v49, 0.0  ;;  %v161_v58 = vadd.f32 %v507_v2, %v93_v50  ;;  %v288_v61 = vmul.f32 0.2, %v160_v49 }
  0x11   :  { %413 = vst [vmem:[%s1023_s3 + $0x38] sm:$0xff] %v349_v54  ;;  %v350_v60 = vsel %vm222_vm8, %v158_v46, %v286_v55  ;;  %v95_v63 = vmul.f32 %v502_v1, %v27_v52  ;;  %v96_v6 = vmul.f32 %v502_v1, %v28_v56  ;;  %v162_v8 = vadd.f32 %v507_v2, %v94_v62  ;;  %v40_v52 = vld [vmem:[%s1020_s0 + $0xd0] sm:$0xff] }
  0x12   :  { %414 = vst [vmem:[%s1023_s3 + $0x40] sm:$0xff] %v350_v60  ;;  %v351_v4 = vsel %vm223_vm9, %v159_v48, %v287_v57  ;;  %vm225_vm11 = vcmp.ge.f32.partialorder %v161_v58, 0.0  ;;  %v289_v5 = vmul.f32 0.2, %v161_v58  ;;  %v352_v7 = vsel %vm224_vm10, %v160_v49, %v288_v61  ;;  %v41_v57 = vld [vmem:[%s1020_s0 + $0xd8] sm:$0xff] }
  0x13   :  { %415 = vst [vmem:[%s1023_s3 + $0x48] sm:$0xff] %v351_v4  ;;  %v163_v9 = vadd.f32 %v507_v2, %v95_v63  ;;  %v97_v10 = vmul.f32 %v502_v1, %v29_v59  ;;  %v164_v12 = vadd.f32 %v507_v2, %v96_v6  ;;  %v98_v13 = vmul.f32 %v502_v1, %v30_v0  ;;  %v43_v4 = vld [vmem:[%s1020_s0 + $0xe8] sm:$0xff] }
  0x14   :  { %416 = vst [vmem:[%s1023_s3 + $0x50] sm:$0xff] %v352_v7  ;;  %v353_v11 = vsel %vm225_vm11, %v161_v58, %v289_v5  ;;  %v99_v14 = vmul.f32 %v502_v1, %v31_v3  ;;  %vm226_vm12 = vcmp.ge.f32.partialorder %v162_v8, 0.0  ;;  %v290_v15 = vmul.f32 0.2, %v162_v8  ;;  %v42_v58 = vld [vmem:[%s1020_s0 + $0xe0] sm:$0xff] }
  0x15   :  { %417 = vst [vmem:[%s1023_s3 + $0x58] sm:$0xff] %v353_v11  ;;  %vm227_vm13 = vcmp.ge.f32.partialorder %v163_v9, 0.0  ;;  %v165_v16 = vadd.f32 %v507_v2, %v97_v10  ;;  %v291_v17 = vmul.f32 0.2, %v163_v9  ;;  %vm228_vm14 = vcmp.ge.f32.partialorder %v164_v12, 0.0 }
  0x16   :  { %v292_v18 = vmul.f32 0.2, %v164_v12  ;;  %v166_v19 = vadd.f32 %v507_v2, %v98_v13  ;;  %v354_v21 = vsel %vm226_vm12, %v162_v8, %v290_v15  ;;  %v167_v23 = vadd.f32 %v507_v2, %v99_v14 }
  0x17   :  { %vm229_vm15 = vcmp.ge.f32.partialorder %v165_v16, 0.0  ;;  %v293_v22 = vmul.f32 0.2, %v165_v16  ;;  %418 = vst [vmem:[%s1023_s3 + $0x60] sm:$0xff] %v354_v21  ;;  %v355_v27 = vsel %vm227_vm13, %v163_v9, %v291_v17  ;;  %v100_v34 = vmul.f32 %v502_v1, %v32_v20  ;;  %v44_v9 = vld [vmem:[%s1020_s0 + $0xf0] sm:$0xff]  ;;  %v45_v20 = vld [vmem:[%s1020_s0 + $0xf8] sm:$0xff] }
  0x18   :  { %v356_v28 = vsel %vm228_vm14, %v164_v12, %v292_v18  ;;  %vm230_vm0 = vcmp.ge.f32.partialorder %v166_v19, 0.0  ;;  %v294_v29 = vmul.f32 0.2, %v166_v19  ;;  %419 = vst [vmem:[%s1023_s3 + $0x68] sm:$0xff] %v355_v27  ;;  %vm231_vm1 = vcmp.ge.f32.partialorder %v167_v23, 0.0  ;;  %v46_v21 = vld [vmem:[%s1020_s0 + $0x100] sm:$0xff] }
  0x19   :  { %v357_v32 = vsel %vm229_vm15, %v165_v16, %v293_v22  ;;  %v295_v33 = vmul.f32 0.2, %v167_v23  ;;  %420 = vst [vmem:[%s1023_s3 + $0x70] sm:$0xff] %v356_v28  ;;  %v101_v37 = vmul.f32 %v502_v1, %v33_v24  ;;  %v102_v38 = vmul.f32 %v502_v1, %v34_v25 }
  0x1a   :  { %v358_v36 = vsel %vm230_vm0, %v166_v19, %v294_v29  ;;  %v103_v39 = vmul.f32 %v502_v1, %v35_v26  ;;  %421 = vst [vmem:[%s1023_s3 + $0x78] sm:$0xff] %v357_v32  ;;  %v168_v41 = vadd.f32 %v507_v2, %v100_v34  ;;  %v104_v42 = vmul.f32 %v502_v1, %v36_v30  ;;  %v48_v32 = vld [vmem:[%s1020_s0 + $0x110] sm:$0xff] }
  0x1b   :  { %v359_v40 = vsel %vm231_vm1, %v167_v23, %v295_v33  ;;  %v105_v43 = vmul.f32 %v502_v1, %v37_v31  ;;  %422 = vst [vmem:[%s1023_s3 + $0x80] sm:$0xff] %v358_v36  ;;  %v169_v44 = vadd.f32 %v507_v2, %v101_v37  ;;  %v170_v45 = vadd.f32 %v507_v2, %v102_v38  ;;  %v47_v31 = vld [vmem:[%s1020_s0 + $0x108] sm:$0xff]  ;;  %v49_v33 = vld [vmem:[%s1020_s0 + $0x118] sm:$0xff] }
  0x1c   :  { %v171_v46 = vadd.f32 %v507_v2, %v103_v39  ;;  %v106_v47 = vmul.f32 %v502_v1, %v38_v35  ;;  %423 = vst [vmem:[%s1023_s3 + $0x88] sm:$0xff] %v359_v40  ;;  %vm232_vm2 = vcmp.ge.f32.partialorder %v168_v41, 0.0  ;;  %v296_v48 = vmul.f32 0.2, %v168_v41 }
  0x1d   :  { %v172_v49 = vadd.f32 %v507_v2, %v104_v42  ;;  %v173_v50 = vadd.f32 %v507_v2, %v105_v43  ;;  %vm233_vm3 = vcmp.ge.f32.partialorder %v169_v44, 0.0  ;;  %v297_v53 = vmul.f32 0.2, %v169_v44 }
  0x1e   :  { %vm234_vm4 = vcmp.ge.f32.partialorder %v170_v45, 0.0  ;;  %v298_v54 = vmul.f32 0.2, %v170_v45  ;;  %v360_v55 = vsel %vm232_vm2, %v168_v41, %v296_v48  ;;  %vm235_vm5 = vcmp.ge.f32.partialorder %v171_v46, 0.0 }
  0x1f   :  { %v299_v56 = vmul.f32 0.2, %v171_v46  ;;  %vm236_vm6 = vcmp.ge.f32.partialorder %v172_v49, 0.0  ;;  %424 = vst [vmem:[%s1023_s3 + $0x90] sm:$0xff] %v360_v55  ;;  %v361_v59 = vsel %vm233_vm3, %v169_v44, %v297_v53  ;;  %v300_v61 = vmul.f32 0.2, %v172_v49 }
  0x20   :  { %v362_v60 = vsel %vm234_vm4, %v170_v45, %v298_v54  ;;  %vm237_vm7 = vcmp.ge.f32.partialorder %v173_v50, 0.0  ;;  %425 = vst [vmem:[%s1023_s3 + $0x98] sm:$0xff] %v361_v59  ;;  %v301_v63 = vmul.f32 0.2, %v173_v50  ;;  %v174_v0 = vadd.f32 %v507_v2, %v106_v47  ;;  %v50_v44 = vld [vmem:[%s1020_s0 + $0x120] sm:$0xff]  ;;  %v51_v45 = vld [vmem:[%s1020_s0 + $0x128] sm:$0xff] }
  0x21   :  { %v363_v62 = vsel %vm235_vm5, %v171_v46, %v299_v56  ;;  %v107_v3 = vmul.f32 %v502_v1, %v39_v51  ;;  %426 = vst [vmem:[%s1023_s3 + $0xa0] sm:$0xff] %v362_v60  ;;  %v364_v5 = vsel %vm236_vm6, %v172_v49, %v300_v61  ;;  %v108_v6 = vmul.f32 %v502_v1, %v40_v52  ;;  %v52_v46 = vld [vmem:[%s1020_s0 + $0x130] sm:$0xff] }
  0x22   :  { %v109_v7 = vmul.f32 %v502_v1, %v41_v57  ;;  %v110_v8 = vmul.f32 %v502_v1, %v42_v58  ;;  %427 = vst [vmem:[%s1023_s3 + $0xa8] sm:$0xff] %v363_v62  ;;  %v365_v10 = vsel %vm237_vm7, %v173_v50, %v301_v63  ;;  %vm238_vm8 = vcmp.ge.f32.partialorder %v174_v0, 0.0  ;;  %v53_v57 = vld [vmem:[%s1020_s0 + $0x138] sm:$0xff] }
  0x23   :  { %v302_v11 = vmul.f32 0.2, %v174_v0  ;;  %v175_v12 = vadd.f32 %v507_v2, %v107_v3  ;;  %428 = vst [vmem:[%s1023_s3 + $0xb0] sm:$0xff] %v364_v5  ;;  %v176_v13 = vadd.f32 %v507_v2, %v108_v6  ;;  %v111_v16 = vmul.f32 %v502_v1, %v43_v4  ;;  %v54_v5 = vld [vmem:[%s1020_s0 + $0x140] sm:$0xff]  ;;  %v55_v6 = vld [vmem:[%s1020_s0 + $0x148] sm:$0xff] }
  0x24   :  { %v177_v14 = vadd.f32 %v507_v2, %v109_v7  ;;  %v178_v15 = vadd.f32 %v507_v2, %v110_v8  ;;  %429 = vst [vmem:[%s1023_s3 + $0xb8] sm:$0xff] %v365_v10  ;;  %v112_v19 = vmul.f32 %v502_v1, %v44_v9  ;;  %v113_v29 = vmul.f32 %v502_v1, %v45_v20  ;;  %v56_v10 = vld [vmem:[%s1020_s0 + $0x150] sm:$0xff] }
  0x25   :  { %v366_v17 = vsel %vm238_vm8, %v174_v0, %v302_v11  ;;  %vm239_vm9 = vcmp.ge.f32.partialorder %v175_v12, 0.0  ;;  %v303_v18 = vmul.f32 0.2, %v175_v12  ;;  %vm240_vm10 = vcmp.ge.f32.partialorder %v176_v13, 0.0 }
  0x26   :  { %430 = vst [vmem:[%s1023_s3 + $0xc0] sm:$0xff] %v366_v17  ;;  %v304_v22 = vmul.f32 0.2, %v176_v13  ;;  %vm241_vm11 = vcmp.ge.f32.partialorder %v177_v14, 0.0  ;;  %vm242_vm12 = vcmp.ge.f32.partialorder %v178_v15, 0.0  ;;  %v179_v26 = vadd.f32 %v507_v2, %v111_v16 }
  0x27   :  { %v367_v23 = vsel %vm239_vm9, %v175_v12, %v303_v18  ;;  %v305_v24 = vmul.f32 0.2, %v177_v14  ;;  %v306_v25 = vmul.f32 0.2, %v178_v15  ;;  %v180_v28 = vadd.f32 %v507_v2, %v112_v19  ;;  %v58_v18 = vld [vmem:[%s1020_s0 + $0x160] sm:$0xff]  ;;  %v59_v19 = vld [vmem:[%s1020_s0 + $0x168] sm:$0xff] }
  0x28   :  { %431 = vst [vmem:[%s1023_s3 + $0xc8] sm:$0xff] %v367_v23  ;;  %v368_v27 = vsel %vm240_vm10, %v176_v13, %v304_v22  ;;  %v114_v30 = vmul.f32 %v502_v1, %v46_v21  ;;  %vm243_vm13 = vcmp.ge.f32.partialorder %v179_v26, 0.0  ;;  %v307_v36 = vmul.f32 0.2, %v179_v26  ;;  %v57_v13 = vld [vmem:[%s1020_s0 + $0x158] sm:$0xff] }
  0x29   :  { %432 = vst [vmem:[%s1023_s3 + $0xd0] sm:$0xff] %v368_v27  ;;  %v369_v34 = vsel %vm241_vm11, %v177_v14, %v305_v24  ;;  %v370_v35 = vsel %vm242_vm12, %v178_v15, %v306_v25  ;;  %vm244_vm14 = vcmp.ge.f32.partialorder %v180_v28, 0.0  ;;  %v308_v37 = vmul.f32 0.2, %v180_v28 }
  0x2a   :  { %433 = vst [vmem:[%s1023_s3 + $0xd8] sm:$0xff] %v369_v34  ;;  %v181_v38 = vadd.f32 %v507_v2, %v113_v29  ;;  %v182_v39 = vadd.f32 %v507_v2, %v114_v30  ;;  %v371_v40 = vsel %vm243_vm13, %v179_v26, %v307_v36  ;;  %v115_v41 = vmul.f32 %v502_v1, %v47_v31  ;;  %v60_v36 = vld [vmem:[%s1020_s0 + $0x170] sm:$0xff] }
  0x2b   :  { %434 = vst [vmem:[%s1023_s3 + $0xe0] sm:$0xff] %v370_v35  ;;  %v116_v42 = vmul.f32 %v502_v1, %v48_v32  ;;  %v117_v43 = vmul.f32 %v502_v1, %v49_v33  ;;  %v372_v47 = vsel %vm244_vm14, %v180_v28, %v308_v37  ;;  %v118_v54 = vmul.f32 %v502_v1, %v50_v44 }
  0x2c   :  { %435 = vst [vmem:[%s1023_s3 + $0xe8] sm:$0xff] %v371_v40  ;;  %vm245_vm15 = vcmp.ge.f32.partialorder %v181_v38, 0.0  ;;  %v309_v48 = vmul.f32 0.2, %v181_v38  ;;  %vm246_vm0 = vcmp.ge.f32.partialorder %v182_v39, 0.0  ;;  %v183_v50 = vadd.f32 %v507_v2, %v115_v41  ;;  %v61_v40 = vld [vmem:[%s1020_s0 + $0x178] sm:$0xff] }
  0x2d   :  { %436 = vst [vmem:[%s1023_s3 + $0xf0] sm:$0xff] %v372_v47  ;;  %v310_v49 = vmul.f32 0.2, %v182_v39  ;;  %v184_v51 = vadd.f32 %v507_v2, %v116_v42  ;;  %v185_v52 = vadd.f32 %v507_v2, %v117_v43  ;;  %v119_v55 = vmul.f32 %v502_v1, %v51_v45  ;;  %v62_v41 = vld [vmem:[%s1020_s0 + $0x180] sm:$0xff]  ;;  %v63_v42 = vld [vmem:[%s1020_s0 + $0x188] sm:$0xff]  ;;  %v65_v47 = vld [vmem:[%s1020_s0 + $0x198] sm:$0xff] }
  0x2e   :  { %v373_v53 = vsel %vm245_vm15, %v181_v38, %v309_v48  ;;  %v120_v56 = vmul.f32 %v502_v1, %v52_v46  ;;  %vm247_vm1 = vcmp.ge.f32.partialorder %v183_v50, 0.0  ;;  %v311_v59 = vmul.f32 0.2, %v183_v50  ;;  %v64_v46 = vld [vmem:[%s1020_s0 + $0x190] sm:$0xff] }
  0x2f   :  { %437 = vst [vmem:[%s1023_s3 + $0xf8] sm:$0xff] %v373_v53  ;;  %v374_v58 = vsel %vm246_vm0, %v182_v39, %v310_v49  ;;  %vm248_vm2 = vcmp.ge.f32.partialorder %v184_v51, 0.0  ;;  %v312_v60 = vmul.f32 0.2, %v184_v51  ;;  %vm249_vm3 = vcmp.ge.f32.partialorder %v185_v52, 0.0 }
  0x30   :  { %438 = vst [vmem:[%s1023_s3 + $0x100] sm:$0xff] %v374_v58  ;;  %v313_v61 = vmul.f32 0.2, %v185_v52  ;;  %v186_v62 = vadd.f32 %v507_v2, %v118_v54  ;;  %v375_v63 = vsel %vm247_vm1, %v183_v50, %v311_v59  ;;  %v187_v0 = vadd.f32 %v507_v2, %v119_v55 }
  0x31   :  { %v188_v3 = vadd.f32 %v507_v2, %v120_v56  ;;  %v121_v4 = vmul.f32 %v502_v1, %v53_v57  ;;  %439 = vst [vmem:[%s1023_s3 + $0x108] sm:$0xff] %v375_v63  ;;  %v376_v7 = vsel %vm248_vm2, %v184_v51, %v312_v60  ;;  %v122_v16 = vmul.f32 %v502_v1, %v54_v5  ;;  %v66_v51 = vld [vmem:[%s1020_s0 + $0x1a0] sm:$0xff]  ;;  %v67_v5 = vld [vmem:[%s1020_s0 + $0x1a8] sm:$0xff] }
  0x32   :  { %v377_v8 = vsel %vm249_vm3, %v185_v52, %v313_v61  ;;  %vm250_vm4 = vcmp.ge.f32.partialorder %v186_v62, 0.0  ;;  %v314_v9 = vmul.f32 0.2, %v186_v62  ;;  %440 = vst [vmem:[%s1023_s3 + $0x110] sm:$0xff] %v376_v7  ;;  %vm251_vm5 = vcmp.ge.f32.partialorder %v187_v0, 0.0 }
  0x33   :  { %v315_v11 = vmul.f32 0.2, %v187_v0  ;;  %vm252_vm6 = vcmp.ge.f32.partialorder %v188_v3, 0.0  ;;  %v189_v12 = vadd.f32 %v507_v2, %v121_v4  ;;  %441 = vst [vmem:[%s1023_s3 + $0x118] sm:$0xff] %v377_v8  ;;  %v316_v15 = vmul.f32 0.2, %v188_v3 }
  0x34   :  { %v378_v14 = vsel %vm250_vm4, %v186_v62, %v314_v9  ;;  %v123_v17 = vmul.f32 %v502_v1, %v55_v6  ;;  %v124_v22 = vmul.f32 %v502_v1, %v56_v10  ;;  %v190_v24 = vadd.f32 %v507_v2, %v122_v16  ;;  %v68_v6 = vld [vmem:[%s1020_s0 + $0x1b0] sm:$0xff] }
  0x35   :  { %442 = vst [vmem:[%s1023_s3 + $0x120] sm:$0xff] %v378_v14  ;;  %v379_v20 = vsel %vm251_vm5, %v187_v0, %v315_v11  ;;  %vm253_vm7 = vcmp.ge.f32.partialorder %v189_v12, 0.0  ;;  %v317_v21 = vmul.f32 0.2, %v189_v12  ;;  %v380_v23 = vsel %vm252_vm6, %v188_v3, %v316_v15  ;;  %v69_v11 = vld [vmem:[%s1020_s0 + $0x1b8] sm:$0xff] }
  0x36   :  { %443 = vst [vmem:[%s1023_s3 + $0x128] sm:$0xff] %v379_v20  ;;  %v191_v25 = vadd.f32 %v507_v2, %v123_v17  ;;  %v125_v26 = vmul.f32 %v502_v1, %v57_v13  ;;  %v192_v28 = vadd.f32 %v507_v2, %v124_v22  ;;  %v126_v29 = vmul.f32 %v502_v1, %v58_v18  ;;  %v71_v20 = vld [vmem:[%s1020_s0 + $0x1c8] sm:$0xff] }
  0x37   :  { %444 = vst [vmem:[%s1023_s3 + $0x130] sm:$0xff] %v380_v23  ;;  %v381_v27 = vsel %vm253_vm7, %v189_v12, %v317_v21  ;;  %v127_v30 = vmul.f32 %v502_v1, %v59_v19  ;;  %vm254_vm8 = vcmp.ge.f32.partialorder %v190_v24, 0.0  ;;  %v318_v31 = vmul.f32 0.2, %v190_v24  ;;  %v70_v12 = vld [vmem:[%s1020_s0 + $0x1c0] sm:$0xff] }
  0x38   :  { %445 = vst [vmem:[%s1023_s3 + $0x138] sm:$0xff] %v381_v27  ;;  %vm255_vm9 = vcmp.ge.f32.partialorder %v191_v25, 0.0  ;;  %v193_v32 = vadd.f32 %v507_v2, %v125_v26  ;;  %v319_v33 = vmul.f32 0.2, %v191_v25  ;;  %vm256_vm10 = vcmp.ge.f32.partialorder %v192_v28, 0.0 }
  0x39   :  { %v320_v34 = vmul.f32 0.2, %v192_v28  ;;  %v194_v35 = vadd.f32 %v507_v2, %v126_v29  ;;  %v382_v37 = vsel %vm254_vm8, %v190_v24, %v318_v31  ;;  %v195_v39 = vadd.f32 %v507_v2, %v127_v30 }
  0x3a   :  { %vm257_vm11 = vcmp.ge.f32.partialorder %v193_v32, 0.0  ;;  %v321_v38 = vmul.f32 0.2, %v193_v32  ;;  %446 = vst [vmem:[%s1023_s3 + $0x140] sm:$0xff] %v382_v37  ;;  %v383_v43 = vsel %vm255_vm9, %v191_v25, %v319_v33  ;;  %v128_v50 = vmul.f32 %v502_v1, %v60_v36  ;;  %v72_v25 = vld [vmem:[%s1020_s0 + $0x1d0] sm:$0xff]  ;;  %v73_v36 = vld [vmem:[%s1020_s0 + $0x1d8] sm:$0xff] }
  0x3b   :  { %v384_v44 = vsel %vm256_vm10, %v192_v28, %v320_v34  ;;  %vm258_vm12 = vcmp.ge.f32.partialorder %v194_v35, 0.0  ;;  %v322_v45 = vmul.f32 0.2, %v194_v35  ;;  %447 = vst [vmem:[%s1023_s3 + $0x148] sm:$0xff] %v383_v43  ;;  %vm259_vm13 = vcmp.ge.f32.partialorder %v195_v39, 0.0  ;;  %v74_v37 = vld [vmem:[%s1020_s0 + $0x1e0] sm:$0xff] }
  0x3c   :  { %v385_v48 = vsel %vm257_vm11, %v193_v32, %v321_v38  ;;  %v323_v49 = vmul.f32 0.2, %v195_v39  ;;  %448 = vst [vmem:[%s1023_s3 + $0x150] sm:$0xff] %v384_v44  ;;  %v129_v53 = vmul.f32 %v502_v1, %v61_v40  ;;  %v130_v54 = vmul.f32 %v502_v1, %v62_v41 }
  0x3d   :  { %v386_v52 = vsel %vm258_vm12, %v194_v35, %v322_v45  ;;  %v131_v55 = vmul.f32 %v502_v1, %v63_v42  ;;  %449 = vst [vmem:[%s1023_s3 + $0x158] sm:$0xff] %v385_v48  ;;  %v196_v57 = vadd.f32 %v507_v2, %v128_v50  ;;  %v132_v58 = vmul.f32 %v502_v1, %v64_v46  ;;  %v76_v48 = vld [vmem:[%s1020_s0 + $0x1f0] sm:$0xff] }
  0x3e   :  { %v387_v56 = vsel %vm259_vm13, %v195_v39, %v323_v49  ;;  %v133_v59 = vmul.f32 %v502_v1, %v65_v47  ;;  %450 = vst [vmem:[%s1023_s3 + $0x160] sm:$0xff] %v386_v52  ;;  %v197_v60 = vadd.f32 %v507_v2, %v129_v53  ;;  %v198_v61 = vadd.f32 %v507_v2, %v130_v54  ;;  %v75_v47 = vld [vmem:[%s1020_s0 + $0x1e8] sm:$0xff]  ;;  %v77_v49 = vld [vmem:[%s1020_s0 + $0x1f8] sm:$0xff] }
  0x3f   :  { %v199_v62 = vadd.f32 %v507_v2, %v131_v55  ;;  %v134_v63 = vmul.f32 %v502_v1, %v66_v51  ;;  %451 = vst [vmem:[%s1023_s3 + $0x168] sm:$0xff] %v387_v56  ;;  %vm260_vm14 = vcmp.ge.f32.partialorder %v196_v57, 0.0  ;;  %v324_v0 = vmul.f32 0.2, %v196_v57 }
  0x40   :  { %v200_v3 = vadd.f32 %v507_v2, %v132_v58  ;;  %v201_v4 = vadd.f32 %v507_v2, %v133_v59  ;;  %vm261_vm15 = vcmp.ge.f32.partialorder %v197_v60, 0.0  ;;  %v325_v7 = vmul.f32 0.2, %v197_v60 }
  0x41   :  { %vm262_vm0 = vcmp.ge.f32.partialorder %v198_v61, 0.0  ;;  %v326_v8 = vmul.f32 0.2, %v198_v61  ;;  %v388_v9 = vsel %vm260_vm14, %v196_v57, %v324_v0  ;;  %vm263_vm1 = vcmp.ge.f32.partialorder %v199_v62, 0.0 }
  0x42   :  { %v327_v10 = vmul.f32 0.2, %v199_v62  ;;  %vm264_vm2 = vcmp.ge.f32.partialorder %v200_v3, 0.0  ;;  %452 = vst [vmem:[%s1023_s3 + $0x170] sm:$0xff] %v388_v9  ;;  %v389_v13 = vsel %vm261_vm15, %v197_v60, %v325_v7  ;;  %v328_v15 = vmul.f32 0.2, %v200_v3 }
  0x43   :  { %v390_v14 = vsel %vm262_vm0, %v198_v61, %v326_v8  ;;  %vm265_vm3 = vcmp.ge.f32.partialorder %v201_v4, 0.0  ;;  %453 = vst [vmem:[%s1023_s3 + $0x178] sm:$0xff] %v389_v13  ;;  %v329_v17 = vmul.f32 0.2, %v201_v4  ;;  %v202_v18 = vadd.f32 %v507_v2, %v134_v63 }
  0x44   :  { %v391_v16 = vsel %vm263_vm1, %v199_v62, %v327_v10  ;;  %v135_v19 = vmul.f32 %v502_v1, %v67_v5  ;;  %454 = vst [vmem:[%s1023_s3 + $0x180] sm:$0xff] %v390_v14  ;;  %v392_v21 = vsel %vm264_vm2, %v200_v3, %v328_v15  ;;  %v136_v22 = vmul.f32 %v502_v1, %v68_v6 }
  0x45   :  { %v137_v23 = vmul.f32 %v502_v1, %v69_v11  ;;  %v138_v24 = vmul.f32 %v502_v1, %v70_v12  ;;  %455 = vst [vmem:[%s1023_s3 + $0x188] sm:$0xff] %v391_v16  ;;  %v393_v26 = vsel %vm265_vm3, %v201_v4, %v329_v17  ;;  %vm266_vm4 = vcmp.ge.f32.partialorder %v202_v18, 0.0 }
  0x46   :  { %v330_v27 = vmul.f32 0.2, %v202_v18  ;;  %v203_v28 = vadd.f32 %v507_v2, %v135_v19  ;;  %456 = vst [vmem:[%s1023_s3 + $0x190] sm:$0xff] %v392_v21  ;;  %v204_v29 = vadd.f32 %v507_v2, %v136_v22  ;;  %v139_v32 = vmul.f32 %v502_v1, %v71_v20 }
  0x47   :  { %v205_v30 = vadd.f32 %v507_v2, %v137_v23  ;;  %v206_v31 = vadd.f32 %v507_v2, %v138_v24  ;;  %457 = vst [vmem:[%s1023_s3 + $0x198] sm:$0xff] %v393_v26  ;;  %v140_v35 = vmul.f32 %v502_v1, %v72_v25  ;;  %v141_v45 = vmul.f32 %v502_v1, %v73_v36 }
  0x48   :  { %v394_v33 = vsel %vm266_vm4, %v202_v18, %v330_v27  ;;  %vm267_vm5 = vcmp.ge.f32.partialorder %v203_v28, 0.0  ;;  %v331_v34 = vmul.f32 0.2, %v203_v28  ;;  %vm268_vm6 = vcmp.ge.f32.partialorder %v204_v29, 0.0 }
  0x49   :  { %458 = vst [vmem:[%s1023_s3 + $0x1a0] sm:$0xff] %v394_v33  ;;  %v332_v38 = vmul.f32 0.2, %v204_v29  ;;  %vm269_vm7 = vcmp.ge.f32.partialorder %v205_v30, 0.0  ;;  %vm270_vm8 = vcmp.ge.f32.partialorder %v206_v31, 0.0  ;;  %v207_v42 = vadd.f32 %v507_v2, %v139_v32 }
  0x4a   :  { %v395_v39 = vsel %vm267_vm5, %v203_v28, %v331_v34  ;;  %v333_v40 = vmul.f32 0.2, %v205_v30  ;;  %v334_v41 = vmul.f32 0.2, %v206_v31  ;;  %v208_v44 = vadd.f32 %v507_v2, %v140_v35 }
  0x4b   :  { %459 = vst [vmem:[%s1023_s3 + $0x1a8] sm:$0xff] %v395_v39  ;;  %v396_v43 = vsel %vm268_vm6, %v204_v29, %v332_v38  ;;  %v142_v46 = vmul.f32 %v502_v1, %v74_v37  ;;  %vm271_vm9 = vcmp.ge.f32.partialorder %v207_v42, 0.0  ;;  %v335_v52 = vmul.f32 0.2, %v207_v42 }
  0x4c   :  { %460 = vst [vmem:[%s1023_s3 + $0x1b0] sm:$0xff] %v396_v43  ;;  %v397_v50 = vsel %vm269_vm7, %v205_v30, %v333_v40  ;;  %v398_v51 = vsel %vm270_vm8, %v206_v31, %v334_v41  ;;  %vm272_vm10 = vcmp.ge.f32.partialorder %v208_v44, 0.0  ;;  %v336_v53 = vmul.f32 0.2, %v208_v44 }
  0x4d   :  { %461 = vst [vmem:[%s1023_s3 + $0x1b8] sm:$0xff] %v397_v50  ;;  %v209_v54 = vadd.f32 %v507_v2, %v141_v45  ;;  %v210_v55 = vadd.f32 %v507_v2, %v142_v46  ;;  %v399_v56 = vsel %vm271_vm9, %v207_v42, %v335_v52  ;;  %v143_v57 = vmul.f32 %v502_v1, %v75_v47 }
  0x4e   :  { %462 = vst [vmem:[%s1023_s3 + $0x1c0] sm:$0xff] %v398_v51  ;;  %v144_v58 = vmul.f32 %v502_v1, %v76_v48  ;;  %v145_v59 = vmul.f32 %v502_v1, %v77_v49  ;;  %v400_v60 = vsel %vm272_vm10, %v208_v44, %v336_v53 }
  0x4f   :  { %463 = vst [vmem:[%s1023_s3 + $0x1c8] sm:$0xff] %v399_v56  ;;  %vm273_vm11 = vcmp.ge.f32.partialorder %v209_v54, 0.0  ;;  %v337_v61 = vmul.f32 0.2, %v209_v54  ;;  %vm274_vm12 = vcmp.ge.f32.partialorder %v210_v55, 0.0  ;;  %v211_v63 = vadd.f32 %v507_v2, %v143_v57 }
  0x50   :  { %464 = vst [vmem:[%s1023_s3 + $0x1d0] sm:$0xff] %v400_v60  ;;  %v338_v62 = vmul.f32 0.2, %v210_v55  ;;  %v212_v0 = vadd.f32 %v507_v2, %v144_v58  ;;  %v213_v3 = vadd.f32 %v507_v2, %v145_v59 }
  0x51   :  { %v401_v1 = vsel %vm273_vm11, %v209_v54, %v337_v61  ;;  %vm275_vm13 = vcmp.ge.f32.partialorder %v211_v63, 0.0  ;;  %v339_v5 = vmul.f32 0.2, %v211_v63 }
  0x52   :  { %465 = vst [vmem:[%s1023_s3 + $0x1d8] sm:$0xff] %v401_v1  ;;  %v402_v4 = vsel %vm274_vm12, %v210_v55, %v338_v62  ;;  %vm276_vm14 = vcmp.ge.f32.partialorder %v212_v0, 0.0  ;;  %v340_v6 = vmul.f32 0.2, %v212_v0  ;;  %vm277_vm15 = vcmp.ge.f32.partialorder %v213_v3, 0.0 }
  0x53   :  { %466 = vst [vmem:[%s1023_s3 + $0x1e0] sm:$0xff] %v402_v4  ;;  %v341_v7 = vmul.f32 0.2, %v213_v3  ;;  %v403_v8 = vsel %vm275_vm13, %v211_v63, %v339_v5 }
  0x54   :  { %467 = vst [vmem:[%s1023_s3 + $0x1e8] sm:$0xff] %v403_v8  ;;  %v404_v2 = vsel %vm276_vm14, %v212_v0, %v340_v6 }
  0x55   :  { %v405_v9 = vsel %vm277_vm15, %v213_v3, %v341_v7  ;;  %468 = vst [vmem:[%s1023_s3 + $0x1f0] sm:$0xff] %v404_v2 }
  0x56   :  { %469 = vst [vmem:[%s1023_s3 + $0x1f8] sm:$0xff] %v405_v9 }

// kernel: discriminator_forward.11
= control target key start
LH: loop header
LB: loop body
LE: loop exit
PB: predicated region body
PF: predicated region fallthrough
CT: control target
= control target key end

     0   :  { %s847_s1 = inlined_call_operand.vmem [shape: bf16[256,128], index: 1, kind: input, shape index: {}]   ;;  %s848_s0 = inlined_call_operand.vmem [shape: bf16[128,256], index: 0, kind: input, shape index: {}]   ;;  %s849_s2 = inlined_call_operand.vmem [shape: f32[128,128], index: 2, kind: output, shape index: {0}]   ;;  %s850_s3 = inlined_call_operand.vmem [shape: f32[8,128], index: 3, kind: output, shape index: {1}]   ;;  %s851_s4 = inlined_call_operand.vmem [shape: f32[8,128], index: 4, kind: output, shape index: {2}]  }
   0x1   :  { %v575_v0 = vld [vmem:[%s847_s1 + $0x38] sm:$0xff]  ;;  %v574_v2 = vld [vmem:[%s847_s1 + $0x30] sm:$0xff]  ;;  %v573_v4 = vld [vmem:[%s847_s1 + $0x28] sm:$0xff] }
   0x2   :  { %v583_v1 = vld [vmem:[%s847_s1 + $0x78] sm:$0xff]  ;;  %238 = vmatpush.bf16.msra.mxu0 %v575_v0  ;;  %v582_v3 = vld [vmem:[%s847_s1 + $0x70] sm:$0xff]  ;;  %584 = vmatpush.bf16.msra.mxu2 %v575_v0  ;;  %v581_v5 = vld [vmem:[%s847_s1 + $0x68] sm:$0xff] }
   0x3   :  { %287 = vmatpush.bf16.msra.mxu1 %v583_v1  ;;  %592 = vmatpush.bf16.msra.mxu3 %v583_v1  ;;  %v572_v6 = vld [vmem:[%s847_s1 + $0x20] sm:$0xff]  ;;  %v571_v8 = vld [vmem:[%s847_s1 + $0x18] sm:$0xff]  ;;  %v570_v10 = vld [vmem:[%s847_s1 + $0x10] sm:$0xff] }
   0x4   :  { %v580_v7 = vld [vmem:[%s847_s1 + $0x60] sm:$0xff]  ;;  %v579_v9 = vld [vmem:[%s847_s1 + $0x58] sm:$0xff]  ;;  %v578_v11 = vld [vmem:[%s847_s1 + $0x50] sm:$0xff] }
   0x5   :  { %v569_v12 = vld [vmem:[%s847_s1 + $0x8] sm:$0xff]  ;;  %v568_v14 = vld [vmem:[%s847_s1] sm:$0xff]  ;;  %v434_v28 = vld [vmem:[%s848_s0 + $0x10] sm:$0xf] }
   0x6   :  { %239 = vmatpush.bf16.msra.mxu0 %v574_v2  ;;  %585 = vmatpush.bf16.msra.mxu2 %v574_v2  ;;  %v577_v13 = vld [vmem:[%s847_s1 + $0x48] sm:$0xff]  ;;  %v576_v15 = vld [vmem:[%s847_s1 + $0x40] sm:$0xff]  ;;  %v555_v29 = vld [vmem:[%s848_s0 + $0x14] sm:$0xf0] }
   0x7   :  { %288 = vmatpush.bf16.msra.mxu1 %v582_v3  ;;  %593 = vmatpush.bf16.msra.mxu3 %v582_v3  ;;  %v426_v16 = vld [vmem:[%s848_s0] sm:$0xf]  ;;  %v553_v17 = vld [vmem:[%s848_s0 + $0x4] sm:$0xf0]  ;;  %v552_v18 = vld [vmem:[%s848_s0 + $0x4] sm:$0xf]  ;;  %v435_v36 = vor.u32 %v555_v29, %v434_v28 }
   0x8   :  { %v428_v19 = vld [vmem:[%s848_s0 + $0x8] sm:$0xf0]  ;;  %v458_v20 = vld [vmem:[%s848_s0 + $0x40] sm:$0xf]  ;;  %v561_v21 = vld [vmem:[%s848_s0 + $0x44] sm:$0xf0]  ;;  %v427_v24 = vor.u32 %v553_v17, %v426_v16 }
   0x9   :  { %v560_v22 = vld [vmem:[%s848_s0 + $0x44] sm:$0xf]  ;;  %v460_v23 = vld [vmem:[%s848_s0 + $0x48] sm:$0xf0]  ;;  %v431_v25 = vor.u32 %v552_v18, %v428_v19  ;;  %v459_v26 = vor.u32 %v561_v21, %v458_v20  ;;  %v554_v30 = vld [vmem:[%s848_s0 + $0x14] sm:$0xf] }
   0xa   :  { %240 = vmatpush.bf16.msra.mxu0 %v573_v4  ;;  %586 = vmatpush.bf16.msra.mxu2 %v573_v4  ;;  %v463_v27 = vor.u32 %v560_v22, %v460_v23  ;;  %v436_v31 = vld [vmem:[%s848_s0 + $0x18] sm:$0xf0]  ;;  %v466_v32 = vld [vmem:[%s848_s0 + $0x50] sm:$0xf]  ;;  %v563_v33 = vld [vmem:[%s848_s0 + $0x54] sm:$0xf0] }
   0xb   :  { %289 = vmatpush.bf16.msra.mxu1 %v581_v5  ;;  %594 = vmatpush.bf16.msra.mxu3 %v581_v5  ;;  %v562_v34 = vld [vmem:[%s848_s0 + $0x54] sm:$0xf]  ;;  %v468_v35 = vld [vmem:[%s848_s0 + $0x58] sm:$0xf0]  ;;  %v439_v37 = vor.u32 %v554_v30, %v436_v31  ;;  %v467_v38 = vor.u32 %v563_v33, %v466_v32  ;;  %v442_v40 = vld [vmem:[%s848_s0 + $0x20] sm:$0xf] }
   0xc   :  { %v471_v39 = vor.u32 %v562_v34, %v468_v35  ;;  %v557_v41 = vld [vmem:[%s848_s0 + $0x24] sm:$0xf0]  ;;  %v556_v42 = vld [vmem:[%s848_s0 + $0x24] sm:$0xf]  ;;  %v444_v43 = vld [vmem:[%s848_s0 + $0x28] sm:$0xf0] }
   0xd   :  { %v474_v44 = vld [vmem:[%s848_s0 + $0x60] sm:$0xf]  ;;  %v565_v45 = vld [vmem:[%s848_s0 + $0x64] sm:$0xf0]  ;;  %v564_v46 = vld [vmem:[%s848_s0 + $0x64] sm:$0xf]  ;;  %v443_v48 = vor.u32 %v557_v41, %v442_v40  ;;  %v447_v49 = vor.u32 %v556_v42, %v444_v43 }
   0xe   :  { %241 = vmatpush.bf16.msra.mxu0 %v572_v6  ;;  %587 = vmatpush.bf16.msra.mxu2 %v572_v6  ;;  %v476_v47 = vld [vmem:[%s848_s0 + $0x68] sm:$0xf0]  ;;  %v475_v50 = vor.u32 %v565_v45, %v474_v44  ;;  %v450_v52 = vld [vmem:[%s848_s0 + $0x30] sm:$0xf]  ;;  %v559_v53 = vld [vmem:[%s848_s0 + $0x34] sm:$0xf0] }
   0xf   :  { %290 = vmatpush.bf16.msra.mxu1 %v580_v7  ;;  %595 = vmatpush.bf16.msra.mxu3 %v580_v7  ;;  %v479_v51 = vor.u32 %v564_v46, %v476_v47  ;;  %v558_v54 = vld [vmem:[%s848_s0 + $0x34] sm:$0xf]  ;;  %v452_v55 = vld [vmem:[%s848_s0 + $0x38] sm:$0xf0]  ;;  %v482_v56 = vld [vmem:[%s848_s0 + $0x70] sm:$0xf]  ;;  %v451_v60 = vor.u32 %v559_v53, %v450_v52 }
  0x10   :  { %v567_v57 = vld [vmem:[%s848_s0 + $0x74] sm:$0xf0]  ;;  %v566_v58 = vld [vmem:[%s848_s0 + $0x74] sm:$0xf]  ;;  %v484_v59 = vld [vmem:[%s848_s0 + $0x78] sm:$0xf0]  ;;  %v455_v61 = vor.u32 %v558_v54, %v452_v55 }
  0x11   :  { %v483_v62 = vor.u32 %v567_v57, %v482_v56  ;;  %v487_v63 = vor.u32 %v566_v58, %v484_v59 }
  0x12   :  { %242 = vmatpush.bf16.msra.mxu0 %v571_v8  ;;  %588 = vmatpush.bf16.msra.mxu2 %v571_v8 }
  0x13   :  { %291 = vmatpush.bf16.msra.mxu1 %v579_v9  ;;  %596 = vmatpush.bf16.msra.mxu3 %v579_v9 }
  0x16   :  { %243 = vmatpush.bf16.msra.mxu0 %v570_v10  ;;  %589 = vmatpush.bf16.msra.mxu2 %v570_v10 }
  0x17   :  { %292 = vmatpush.bf16.msra.mxu1 %v578_v11  ;;  %597 = vmatpush.bf16.msra.mxu3 %v578_v11 }
  0x1a   :  { %244 = vmatpush.bf16.msra.mxu0 %v569_v12  ;;  %590 = vmatpush.bf16.msra.mxu2 %v569_v12 }
  0x1b   :  { %293 = vmatpush.bf16.msra.mxu1 %v577_v13  ;;  %598 = vmatpush.bf16.msra.mxu3 %v577_v13 }
  0x1e   :  { %245 = vmatpush.bf16.msra.mxu0 %v568_v14  ;;  %591 = vmatpush.bf16.msra.mxu2 %v568_v14 }
  0x1f   :  { %294 = vmatpush.bf16.msra.mxu1 %v576_v15  ;;  %599 = vmatpush.bf16.msra.mxu3 %v576_v15 }
  0x21   :  { %246 = vmatmul.bf16.vlgmr.msra.gmra.mxu0 %v427_v24  ;;  %266 = vmatmul.bf16.vlgmr.msra.gmra.mxu2 %v459_v26 }
  0x22   :  { %295 = vmatmul.bf16.vlgmr.msra.gmra.mxu1 %v431_v25  ;;  %315 = vmatmul.bf16.vlgmr.msra.gmra.mxu3 %v463_v27 }
  0x31   :  { %251 = vmatmul.bf16.gmra.mxu0 %v435_v36  ;;  %271 = vmatmul.bf16.gmra.mxu2 %v467_v38 }
  0x32   :  { %300 = vmatmul.bf16.gmra.mxu1 %v439_v37  ;;  %320 = vmatmul.bf16.gmra.mxu3 %v471_v39 }
  0x41   :  { %256 = vmatmul.bf16.gmra.mxu0 %v443_v48  ;;  %276 = vmatmul.bf16.gmra.mxu2 %v475_v50 }
  0x42   :  { %305 = vmatmul.bf16.gmra.mxu1 %v447_v49  ;;  %325 = vmatmul.bf16.gmra.mxu3 %v479_v51 }
  0x51   :  { %261 = vmatmul.bf16.gmra.mxu0 %v451_v60  ;;  %281 = vmatmul.bf16.gmra.mxu2 %v483_v62 }
  0x52   :  { %310 = vmatmul.bf16.gmra.mxu1 %v455_v61  ;;  %330 = vmatmul.bf16.gmra.mxu3 %v487_v63 }
  0x9e   :  { %v247_v0 = vpop.f32.mrf.mxu0 }
  0x9f   :  { %v296_v1 = vpop.f32.mrf.mxu1 }
  0xa0   :  { %v297_v2 = vadd.f32 %v296_v1, %v247_v0 }
  0xa2   :  { %336 = vst [vmem:[%s849_s2] sm:$0xff] %v297_v2  ;;  %v373_v34 = vmul.f32 %v297_v2, %v297_v2 }
  0xa4   :  { %v267_v3 = vpop.f32.mrf.mxu2 }
  0xa5   :  { %v316_v4 = vpop.f32.mrf.mxu3 }
  0xa6   :  { %v249_v5 = vpop.f32.mrf.mxu0  ;;  %v772_v7 = vadd.f32 %v316_v4, %v267_v3 }
  0xa7   :  { %v298_v6 = vpop.f32.mrf.mxu1 }
  0xa8   :  { %v299_v8 = vadd.f32 %v298_v6, %v249_v5  ;;  %344 = vst [vmem:[%s849_s2 + $0x40] sm:$0xff] %v772_v7 }
  0xaa   :  { %337 = vst [vmem:[%s849_s2 + $0x8] sm:$0xff] %v299_v8  ;;  %v374_v33 = vmul.f32 %v299_v8, %v299_v8  ;;  %v352_v35 = vadd.f32 %v299_v8, %v297_v2  ;;  %v381_v2 = vmul.f32 %v772_v7, %v772_v7 }
  0xac   :  { %v269_v9 = vpop.f32.mrf.mxu2  ;;  %v389_v42 = vadd.f32 %v374_v33, %v373_v34 }
  0xad   :  { %v318_v10 = vpop.f32.mrf.mxu3 }
  0xae   :  { %v252_v11 = vpop.f32.mrf.mxu0  ;;  %v781_v13 = vadd.f32 %v318_v10, %v269_v9 }
  0xaf   :  { %v301_v12 = vpop.f32.mrf.mxu1 }
  0xb0   :  { %v302_v14 = vadd.f32 %v301_v12, %v252_v11  ;;  %345 = vst [vmem:[%s849_s2 + $0x48] sm:$0xff] %v781_v13  ;;  %v382_v5 = vmul.f32 %v781_v13, %v781_v13 }
  0xb2   :  { %338 = vst [vmem:[%s849_s2 + $0x10] sm:$0xff] %v302_v14  ;;  %v375_v36 = vmul.f32 %v302_v14, %v302_v14  ;;  %v353_v43 = vadd.f32 %v352_v35, %v302_v14 }
  0xb4   :  { %v272_v15 = vpop.f32.mrf.mxu2  ;;  %v390_v46 = vadd.f32 %v389_v42, %v375_v36 }
  0xb5   :  { %v321_v16 = vpop.f32.mrf.mxu3 }
  0xb6   :  { %v254_v17 = vpop.f32.mrf.mxu0  ;;  %v790_v19 = vadd.f32 %v321_v16, %v272_v15 }
  0xb7   :  { %v303_v18 = vpop.f32.mrf.mxu1 }
  0xb8   :  { %v304_v20 = vadd.f32 %v303_v18, %v254_v17  ;;  %346 = vst [vmem:[%s849_s2 + $0x50] sm:$0xff] %v790_v19  ;;  %v383_v12 = vmul.f32 %v790_v19, %v790_v19 }
  0xba   :  { %339 = vst [vmem:[%s849_s2 + $0x18] sm:$0xff] %v304_v20  ;;  %v376_v44 = vmul.f32 %v304_v20, %v304_v20  ;;  %v354_v47 = vadd.f32 %v353_v43, %v304_v20 }
  0xbc   :  { %v274_v21 = vpop.f32.mrf.mxu2  ;;  %v391_v49 = vadd.f32 %v390_v46, %v376_v44 }
  0xbd   :  { %v323_v22 = vpop.f32.mrf.mxu3 }
  0xbe   :  { %v257_v23 = vpop.f32.mrf.mxu0  ;;  %v799_v25 = vadd.f32 %v323_v22, %v274_v21 }
  0xbf   :  { %v306_v24 = vpop.f32.mrf.mxu1 }
  0xc0   :  { %v307_v26 = vadd.f32 %v306_v24, %v257_v23  ;;  %347 = vst [vmem:[%s849_s2 + $0x58] sm:$0xff] %v799_v25 }
  0xc2   :  { %340 = vst [vmem:[%s849_s2 + $0x20] sm:$0xff] %v307_v26  ;;  %v377_v48 = vmul.f32 %v307_v26, %v307_v26  ;;  %v355_v50 = vadd.f32 %v354_v47, %v307_v26 }
  0xc4   :  { %v277_v27 = vpop.f32.mrf.mxu2  ;;  %v392_v52 = vadd.f32 %v391_v49, %v377_v48 }
  0xc5   :  { %v326_v28 = vpop.f32.mrf.mxu3 }
  0xc6   :  { %v259_v29 = vpop.f32.mrf.mxu0  ;;  %v327_v31 = vadd.f32 %v326_v28, %v277_v27 }
  0xc7   :  { %v308_v30 = vpop.f32.mrf.mxu1 }
  0xc8   :  { %v309_v32 = vadd.f32 %v308_v30, %v259_v29  ;;  %348 = vst [vmem:[%s849_s2 + $0x60] sm:$0xff] %v327_v31  ;;  %v385_v17 = vmul.f32 %v327_v31, %v327_v31 }
  0xca   :  { %341 = vst [vmem:[%s849_s2 + $0x28] sm:$0xff] %v309_v32  ;;  %v378_v51 = vmul.f32 %v309_v32, %v309_v32  ;;  %v356_v53 = vadd.f32 %v355_v50, %v309_v32 }
  0xcc   :  { %v279_v37 = vpop.f32.mrf.mxu2  ;;  %v393_v60 = vadd.f32 %v392_v52, %v378_v51 }
  0xcd   :  { %v328_v38 = vpop.f32.mrf.mxu3 }
  0xce   :  { %v262_v39 = vpop.f32.mrf.mxu0  ;;  %v329_v41 = vadd.f32 %v328_v38, %v279_v37 }
  0xcf   :  { %v311_v40 = vpop.f32.mrf.mxu1 }
  0xd0   :  { %v312_v45 = vadd.f32 %v311_v40, %v262_v39  ;;  %349 = vst [vmem:[%s849_s2 + $0x68] sm:$0xff] %v329_v41  ;;  %v386_v21 = vmul.f32 %v329_v41, %v329_v41 }
  0xd2   :  { %342 = vst [vmem:[%s849_s2 + $0x30] sm:$0xff] %v312_v45  ;;  %v379_v54 = vmul.f32 %v312_v45, %v312_v45  ;;  %v357_v61 = vadd.f32 %v356_v53, %v312_v45 }
  0xd4   :  { %v282_v55 = vpop.f32.mrf.mxu2  ;;  %v394_v63 = vadd.f32 %v393_v60, %v379_v54 }
  0xd5   :  { %v331_v56 = vpop.f32.mrf.mxu3 }
  0xd6   :  { %v264_v57 = vpop.f32.mrf.mxu0  ;;  %v332_v59 = vadd.f32 %v331_v56, %v282_v55 }
  0xd7   :  { %v313_v58 = vpop.f32.mrf.mxu1 }
  0xd8   :  { %v314_v62 = vadd.f32 %v313_v58, %v264_v57  ;;  %350 = vst [vmem:[%s849_s2 + $0x70] sm:$0xff] %v332_v59  ;;  %v387_v26 = vmul.f32 %v332_v59, %v332_v59 }
  0xda   :  { %343 = vst [vmem:[%s849_s2 + $0x38] sm:$0xff] %v314_v62  ;;  %v358_v0 = vadd.f32 %v357_v61, %v314_v62  ;;  %v380_v1 = vmul.f32 %v314_v62, %v314_v62 }
  0xdc   :  { %v359_v3 = vadd.f32 %v358_v0, %v772_v7  ;;  %v395_v4 = vadd.f32 %v394_v63, %v380_v1  ;;  %v284_v9 = vpop.f32.mrf.mxu2  ;;  %v384_v7 = vmul.f32 %v799_v25, %v799_v25 }
  0xdd   :  { %v333_v10 = vpop.f32.mrf.mxu3 }
  0xde   :  { %v360_v6 = vadd.f32 %v359_v3, %v781_v13  ;;  %v396_v8 = vadd.f32 %v395_v4, %v381_v2  ;;  %v334_v11 = vadd.f32 %v333_v10, %v284_v9 }
  0xe0   :  { %v361_v14 = vadd.f32 %v360_v6, %v790_v19  ;;  %v397_v15 = vadd.f32 %v396_v8, %v382_v5  ;;  %351 = vst [vmem:[%s849_s2 + $0x78] sm:$0xff] %v334_v11  ;;  %v388_v29 = vmul.f32 %v334_v11, %v334_v11 }
  0xe2   :  { %v398_v16 = vadd.f32 %v397_v15, %v383_v12  ;;  %v362_v13 = vadd.f32 %v361_v14, %v799_v25 }
  0xe4   :  { %v363_v18 = vadd.f32 %v362_v13, %v327_v31  ;;  %v399_v20 = vadd.f32 %v398_v16, %v384_v7 }
  0xe6   :  { %v364_v22 = vadd.f32 %v363_v18, %v329_v41  ;;  %v400_v23 = vadd.f32 %v399_v20, %v385_v17 }
  0xe8   :  { %v365_v24 = vadd.f32 %v364_v22, %v332_v59  ;;  %v401_v19 = vadd.f32 %v400_v23, %v386_v21 }
  0xea   :  { %v402_v27 = vadd.f32 %v401_v19, %v387_v26  ;;  %v366_v28 = vadd.f32 %v365_v24, %v334_v11 }
  0xec   :  { %v367_v30 = vrot.slane %v366_v28, 4  ;;  %v403_v32 = vadd.f32 %v402_v27, %v388_v29 }
  0xee   :  { %v368_v33 = vadd.f32 %v367_v30, %v366_v28  ;;  %v404_v34 = vrot.slane %v403_v32, 4 }
  0xf0   :  { %v369_v35 = vrot.slane %v368_v33, 2  ;;  %v405_v36 = vadd.f32 %v404_v34, %v403_v32 }
  0xf2   :  { %v370_v37 = vadd.f32 %v369_v35, %v368_v33  ;;  %v406_v25 = vrot.slane %v405_v36, 2 }
  0xf4   :  { %v371_v38 = vrot.slane %v370_v37, 1  ;;  %v407_v31 = vadd.f32 %v406_v25, %v405_v36 }
  0xf6   :  { %v372_v39 = vadd.f32 %v371_v38, %v370_v37  ;;  %v408_v40 = vrot.slane %v407_v31, 1 }
  0xf8   :  { %v409_v41 = vadd.f32 %v408_v40, %v407_v31  ;;  %410 = vst [vmem:[%s850_s3] sm:$0xff] %v372_v39 }
  0xfa   :  { %411 = vst [vmem:[%s851_s4] sm:$0xff] %v409_v41 }

// kernel: discriminator_forward.12
= control target key start
LH: loop header
LB: loop body
LE: loop exit
PB: predicated region body
PF: predicated region fallthrough
CT: control target
= control target key end

     0   :  { %s298_s0 = inlined_call_operand.vmem [shape: f32[128,128], index: 0, kind: input, shape index: {}]   ;;  %s299_s1 = inlined_call_operand.vmem [shape: f32[1,128], index: 1, kind: input, shape index: {}]   ;;  %s300_s2 = inlined_call_operand.vmem [shape: f32[1,128], index: 2, kind: input, shape index: {}]   ;;  %s301_s3 = inlined_call_operand.vmem [shape: f32[128,128], index: 3, kind: output, shape index: {}]  }
   0x1   :  { %v14_v0 = vld [vmem:[%s298_s0] sm:$0xff]  ;;  %v15_v3 = vld [vmem:[%s298_s0 + $0x8] sm:$0xff]  ;;  %v16_v6 = vld [vmem:[%s298_s0 + $0x10] sm:$0xff] }
   0x2   :  { %v166_v1 = vld [vmem:[%s299_s1] ss:$0 sm:$0xff]  ;;  %v17_v7 = vld [vmem:[%s298_s0 + $0x18] sm:$0xff]  ;;  %v19_v12 = vld [vmem:[%s298_s0 + $0x28] sm:$0xff] }
   0x3   :  { %v171_v2 = vld [vmem:[%s300_s2] ss:$0 sm:$0xff]  ;;  %v34_v4 = vmul.f32 %v166_v1, %v14_v0  ;;  %v35_v5 = vmul.f32 %v166_v1, %v15_v3  ;;  %v36_v9 = vmul.f32 %v166_v1, %v16_v6  ;;  %v37_v10 = vmul.f32 %v166_v1, %v17_v7  ;;  %v20_v13 = vld [vmem:[%s298_s0 + $0x30] sm:$0xff]  ;;  %v21_v14 = vld [vmem:[%s298_s0 + $0x38] sm:$0xff] }
   0x4   :  { %v18_v8 = vld [vmem:[%s298_s0 + $0x20] sm:$0xff]  ;;  %v39_v17 = vmul.f32 %v166_v1, %v19_v12  ;;  %v40_v18 = vmul.f32 %v166_v1, %v20_v13  ;;  %v41_v22 = vmul.f32 %v166_v1, %v21_v14  ;;  %v23_v24 = vld [vmem:[%s298_s0 + $0x48] sm:$0xff]  ;;  %v24_v32 = vld [vmem:[%s298_s0 + $0x50] sm:$0xff] }
   0x5   :  { %v38_v11 = vmul.f32 %v166_v1, %v18_v8  ;;  %v54_v15 = vadd.f32 %v171_v2, %v34_v4  ;;  %v55_v16 = vadd.f32 %v171_v2, %v35_v5  ;;  %v56_v19 = vadd.f32 %v171_v2, %v36_v9  ;;  %v22_v23 = vld [vmem:[%s298_s0 + $0x40] sm:$0xff]  ;;  %v25_v41 = vld [vmem:[%s298_s0 + $0x58] sm:$0xff]  ;;  %v27_v52 = vld [vmem:[%s298_s0 + $0x68] sm:$0xff] }
   0x6   :  { %v57_v20 = vadd.f32 %v171_v2, %v37_v10  ;;  %v59_v35 = vadd.f32 %v171_v2, %v39_v17  ;;  %v60_v36 = vadd.f32 %v171_v2, %v40_v18  ;;  %v61_v38 = vadd.f32 %v171_v2, %v41_v22  ;;  %v26_v51 = vld [vmem:[%s298_s0 + $0x60] sm:$0xff]  ;;  %v28_v56 = vld [vmem:[%s298_s0 + $0x70] sm:$0xff]  ;;  %v29_v59 = vld [vmem:[%s298_s0 + $0x78] sm:$0xff] }
   0x7   :  { %v58_v21 = vadd.f32 %v171_v2, %v38_v11  ;;  %vm70_vm0 = vcmp.ge.f32.partialorder %v54_v15, 0.0  ;;  %v86_v25 = vmul.f32 0.2, %v54_v15  ;;  %vm71_vm1 = vcmp.ge.f32.partialorder %v55_v16, 0.0 }
   0x8   :  { %v87_v26 = vmul.f32 0.2, %v55_v16  ;;  %vm72_vm2 = vcmp.ge.f32.partialorder %v56_v19, 0.0  ;;  %v88_v27 = vmul.f32 0.2, %v56_v19  ;;  %vm73_vm3 = vcmp.ge.f32.partialorder %v57_v20, 0.0 }
   0x9   :  { %v89_v28 = vmul.f32 0.2, %v57_v20  ;;  %v102_v29 = vsel %vm70_vm0, %v54_v15, %v86_v25  ;;  %vm74_vm4 = vcmp.ge.f32.partialorder %v58_v21, 0.0  ;;  %v90_v31 = vmul.f32 0.2, %v58_v21 }
   0xa   :  { %v103_v30 = vsel %vm71_vm1, %v55_v16, %v87_v26  ;;  %118 = vst [vmem:[%s301_s3] sm:$0xff] %v102_v29  ;;  %v104_v33 = vsel %vm72_vm2, %v56_v19, %v88_v27  ;;  %v42_v39 = vmul.f32 %v166_v1, %v22_v23  ;;  %v43_v40 = vmul.f32 %v166_v1, %v23_v24 }
   0xb   :  { %v105_v34 = vsel %vm73_vm3, %v57_v20, %v89_v28  ;;  %119 = vst [vmem:[%s301_s3 + $0x8] sm:$0xff] %v103_v30  ;;  %v106_v37 = vsel %vm74_vm4, %v58_v21, %v90_v31  ;;  %vm75_vm5 = vcmp.ge.f32.partialorder %v59_v35, 0.0  ;;  %v91_v42 = vmul.f32 0.2, %v59_v35 }
   0xc   :  { %120 = vst [vmem:[%s301_s3 + $0x10] sm:$0xff] %v104_v33  ;;  %vm76_vm6 = vcmp.ge.f32.partialorder %v60_v36, 0.0  ;;  %v44_v43 = vmul.f32 %v166_v1, %v24_v32  ;;  %v92_v44 = vmul.f32 0.2, %v60_v36  ;;  %vm77_vm7 = vcmp.ge.f32.partialorder %v61_v38, 0.0 }
   0xd   :  { %121 = vst [vmem:[%s301_s3 + $0x18] sm:$0xff] %v105_v34  ;;  %v93_v45 = vmul.f32 0.2, %v61_v38  ;;  %v62_v46 = vadd.f32 %v171_v2, %v42_v39  ;;  %v107_v47 = vsel %vm75_vm5, %v59_v35, %v91_v42  ;;  %v63_v48 = vadd.f32 %v171_v2, %v43_v40 }
   0xe   :  { %122 = vst [vmem:[%s301_s3 + $0x20] sm:$0xff] %v106_v37  ;;  %v64_v49 = vadd.f32 %v171_v2, %v44_v43  ;;  %v45_v50 = vmul.f32 %v166_v1, %v25_v41  ;;  %v108_v53 = vsel %vm76_vm6, %v60_v36, %v92_v44  ;;  %v46_v62 = vmul.f32 %v166_v1, %v26_v51 }
   0xf   :  { %123 = vst [vmem:[%s301_s3 + $0x28] sm:$0xff] %v107_v47  ;;  %v109_v54 = vsel %vm77_vm7, %v61_v38, %v93_v45  ;;  %vm78_vm8 = vcmp.ge.f32.partialorder %v62_v46, 0.0  ;;  %v94_v55 = vmul.f32 0.2, %v62_v46  ;;  %vm79_vm9 = vcmp.ge.f32.partialorder %v63_v48, 0.0 }
  0x10   :  { %124 = vst [vmem:[%s301_s3 + $0x30] sm:$0xff] %v108_v53  ;;  %v95_v57 = vmul.f32 0.2, %v63_v48  ;;  %vm80_vm10 = vcmp.ge.f32.partialorder %v64_v49, 0.0  ;;  %v65_v58 = vadd.f32 %v171_v2, %v45_v50  ;;  %v96_v61 = vmul.f32 0.2, %v64_v49 }
  0x11   :  { %125 = vst [vmem:[%s301_s3 + $0x38] sm:$0xff] %v109_v54  ;;  %v110_v60 = vsel %vm78_vm8, %v62_v46, %v94_v55  ;;  %v47_v63 = vmul.f32 %v166_v1, %v27_v52  ;;  %v48_v4 = vmul.f32 %v166_v1, %v28_v56  ;;  %v66_v6 = vadd.f32 %v171_v2, %v46_v62 }
  0x12   :  { %126 = vst [vmem:[%s301_s3 + $0x40] sm:$0xff] %v110_v60  ;;  %v111_v0 = vsel %vm79_vm9, %v63_v48, %v95_v57  ;;  %vm81_vm11 = vcmp.ge.f32.partialorder %v65_v58, 0.0  ;;  %v97_v3 = vmul.f32 0.2, %v65_v58  ;;  %v112_v5 = vsel %vm80_vm10, %v64_v49, %v96_v61 }
  0x13   :  { %127 = vst [vmem:[%s301_s3 + $0x48] sm:$0xff] %v111_v0  ;;  %v67_v7 = vadd.f32 %v171_v2, %v47_v63  ;;  %v49_v8 = vmul.f32 %v166_v1, %v29_v59  ;;  %v68_v10 = vadd.f32 %v171_v2, %v48_v4  ;;  %vm82_vm12 = vcmp.ge.f32.partialorder %v66_v6, 0.0 }
  0x14   :  { %128 = vst [vmem:[%s301_s3 + $0x50] sm:$0xff] %v112_v5  ;;  %v113_v9 = vsel %vm81_vm11, %v65_v58, %v97_v3  ;;  %v98_v11 = vmul.f32 0.2, %v66_v6 }
  0x15   :  { %129 = vst [vmem:[%s301_s3 + $0x58] sm:$0xff] %v113_v9  ;;  %vm83_vm13 = vcmp.ge.f32.partialorder %v67_v7, 0.0  ;;  %v69_v12 = vadd.f32 %v171_v2, %v49_v8  ;;  %v99_v13 = vmul.f32 0.2, %v67_v7  ;;  %vm84_vm14 = vcmp.ge.f32.partialorder %v68_v10, 0.0 }
  0x16   :  { %v100_v14 = vmul.f32 0.2, %v68_v10  ;;  %v114_v1 = vsel %vm82_vm12, %v66_v6, %v98_v11 }
  0x17   :  { %vm85_vm15 = vcmp.ge.f32.partialorder %v69_v12, 0.0  ;;  %v101_v15 = vmul.f32 0.2, %v69_v12  ;;  %130 = vst [vmem:[%s301_s3 + $0x60] sm:$0xff] %v114_v1  ;;  %v115_v16 = vsel %vm83_vm13, %v67_v7, %v99_v13 }
  0x18   :  { %v116_v17 = vsel %vm84_vm14, %v68_v10, %v100_v14  ;;  %131 = vst [vmem:[%s301_s3 + $0x68] sm:$0xff] %v115_v16 }
  0x19   :  { %v117_v18 = vsel %vm85_vm15, %v69_v12, %v101_v15  ;;  %132 = vst [vmem:[%s301_s3 + $0x70] sm:$0xff] %v116_v17 }
  0x1a   :  { %133 = vst [vmem:[%s301_s3 + $0x78] sm:$0xff] %v117_v18 }

// kernel: discriminator_forward.14
= control target key start
LH: loop header
LB: loop body
LE: loop exit
PB: predicated region body
PF: predicated region fallthrough
CT: control target
= control target key end

     0   :  { %s106_s0 = inlined_call_operand.vmem [shape: f32[32,128], index: 0, kind: input, shape index: {}]   ;;  %s107_s1 = inlined_call_operand.vmem [shape: f32[1,128], index: 1, kind: input, shape index: {}]   ;;  %s108_s2 = inlined_call_operand.vmem [shape: f32[1,128], index: 2, kind: input, shape index: {}]   ;;  %s109_s3 = inlined_call_operand.vmem [shape: f32[32,128], index: 3, kind: output, shape index: {}]  }
   0x1   :  { %v14_v0 = vld [vmem:[%s106_s0] sm:$0xff]  ;;  %v15_v3 = vld [vmem:[%s106_s0 + $0x8] sm:$0xff]  ;;  %v16_v6 = vld [vmem:[%s106_s0 + $0x10] sm:$0xff] }
   0x2   :  { %v54_v1 = vld [vmem:[%s107_s1] ss:$0 sm:$0xff]  ;;  %v17_v7 = vld [vmem:[%s106_s0 + $0x18] sm:$0xff] }
   0x3   :  { %v55_v2 = vld [vmem:[%s108_s2] ss:$0 sm:$0xff]  ;;  %v22_v4 = vmul.f32 %v54_v1, %v14_v0  ;;  %v23_v5 = vmul.f32 %v54_v1, %v15_v3  ;;  %v24_v8 = vmul.f32 %v54_v1, %v16_v6  ;;  %v25_v9 = vmul.f32 %v54_v1, %v17_v7 }
   0x5   :  { %v30_v10 = vadd.f32 %v55_v2, %v22_v4  ;;  %v31_v11 = vadd.f32 %v55_v2, %v23_v5  ;;  %v32_v12 = vadd.f32 %v55_v2, %v24_v8  ;;  %v33_v13 = vadd.f32 %v55_v2, %v25_v9 }
   0x7   :  { %vm34_vm0 = vcmp.ge.f32.partialorder %v30_v10, 0.0  ;;  %v38_v14 = vmul.f32 0.2, %v30_v10  ;;  %vm35_vm1 = vcmp.ge.f32.partialorder %v31_v11, 0.0  ;;  %v39_v15 = vmul.f32 0.2, %v31_v11 }
   0x8   :  { %vm36_vm2 = vcmp.ge.f32.partialorder %v32_v12, 0.0  ;;  %v40_v16 = vmul.f32 0.2, %v32_v12  ;;  %vm37_vm3 = vcmp.ge.f32.partialorder %v33_v13, 0.0  ;;  %v41_v17 = vmul.f32 0.2, %v33_v13 }
   0x9   :  { %v42_v18 = vsel %vm34_vm0, %v30_v10, %v38_v14  ;;  %v43_v19 = vsel %vm35_vm1, %v31_v11, %v39_v15 }
   0xa   :  { %46 = vst [vmem:[%s109_s3] sm:$0xff] %v42_v18  ;;  %v44_v20 = vsel %vm36_vm2, %v32_v12, %v40_v16  ;;  %v45_v21 = vsel %vm37_vm3, %v33_v13, %v41_v17 }
   0xb   :  { %47 = vst [vmem:[%s109_s3 + $0x8] sm:$0xff] %v43_v19 }
   0xc   :  { %48 = vst [vmem:[%s109_s3 + $0x10] sm:$0xff] %v44_v20 }
   0xd   :  { %49 = vst [vmem:[%s109_s3 + $0x18] sm:$0xff] %v45_v21 }

// kernel: discriminator_forward.13
= control target key start
LH: loop header
LB: loop body
LE: loop exit
PB: predicated region body
PF: predicated region fallthrough
CT: control target
= control target key end

     0   :  { %s821_s1 = inlined_call_operand.vmem [shape: bf16[512,128], index: 1, kind: input, shape index: {}]   ;;  %s822_s0 = inlined_call_operand.vmem [shape: bf16[32,512], index: 0, kind: input, shape index: {}]   ;;  %s823_s2 = inlined_call_operand.vmem [shape: f32[32,128], index: 2, kind: output, shape index: {0}]   ;;  %s824_s3 = inlined_call_operand.vmem [shape: f32[8,128], index: 3, kind: output, shape index: {1}]   ;;  %s825_s4 = inlined_call_operand.vmem [shape: f32[8,128], index: 4, kind: output, shape index: {2}]  }
   0x1   :  { %v609_v0 = vld [vmem:[%s821_s1 + $0x38] sm:$0xff]  ;;  %v608_v4 = vld [vmem:[%s821_s1 + $0x30] sm:$0xff]  ;;  %v607_v8 = vld [vmem:[%s821_s1 + $0x28] sm:$0xff] }
   0x2   :  { %v617_v1 = vld [vmem:[%s821_s1 + $0x78] sm:$0xff]  ;;  %318 = vmatpush.bf16.msra.mxu0 %v609_v0  ;;  %v616_v5 = vld [vmem:[%s821_s1 + $0x70] sm:$0xff]  ;;  %v615_v9 = vld [vmem:[%s821_s1 + $0x68] sm:$0xff] }
   0x3   :  { %v625_v2 = vld [vmem:[%s821_s1 + $0xb8] sm:$0xff]  ;;  %337 = vmatpush.bf16.msra.mxu1 %v617_v1  ;;  %v624_v6 = vld [vmem:[%s821_s1 + $0xb0] sm:$0xff]  ;;  %v623_v10 = vld [vmem:[%s821_s1 + $0xa8] sm:$0xff] }
   0x4   :  { %v633_v3 = vld [vmem:[%s821_s1 + $0xf8] sm:$0xff]  ;;  %356 = vmatpush.bf16.msra.mxu2 %v625_v2  ;;  %v632_v7 = vld [vmem:[%s821_s1 + $0xf0] sm:$0xff]  ;;  %v631_v11 = vld [vmem:[%s821_s1 + $0xe8] sm:$0xff] }
   0x5   :  { %375 = vmatpush.bf16.msra.mxu3 %v633_v3  ;;  %v606_v12 = vld [vmem:[%s821_s1 + $0x20] sm:$0xff]  ;;  %v605_v16 = vld [vmem:[%s821_s1 + $0x18] sm:$0xff]  ;;  %v604_v20 = vld [vmem:[%s821_s1 + $0x10] sm:$0xff] }
   0x6   :  { %319 = vmatpush.bf16.msra.mxu0 %v608_v4  ;;  %v614_v13 = vld [vmem:[%s821_s1 + $0x60] sm:$0xff]  ;;  %v613_v17 = vld [vmem:[%s821_s1 + $0x58] sm:$0xff]  ;;  %v612_v21 = vld [vmem:[%s821_s1 + $0x50] sm:$0xff] }
   0x7   :  { %338 = vmatpush.bf16.msra.mxu1 %v616_v5  ;;  %v622_v14 = vld [vmem:[%s821_s1 + $0xa0] sm:$0xff]  ;;  %v621_v18 = vld [vmem:[%s821_s1 + $0x98] sm:$0xff]  ;;  %v620_v22 = vld [vmem:[%s821_s1 + $0x90] sm:$0xff] }
   0x8   :  { %357 = vmatpush.bf16.msra.mxu2 %v624_v6  ;;  %v630_v15 = vld [vmem:[%s821_s1 + $0xe0] sm:$0xff]  ;;  %v629_v19 = vld [vmem:[%s821_s1 + $0xd8] sm:$0xff]  ;;  %v628_v23 = vld [vmem:[%s821_s1 + $0xd0] sm:$0xff] }
   0x9   :  { %376 = vmatpush.bf16.msra.mxu3 %v632_v7  ;;  %v603_v24 = vld [vmem:[%s821_s1 + $0x8] sm:$0xff]  ;;  %v602_v28 = vld [vmem:[%s821_s1] sm:$0xff]  ;;  %v596_v33 = vld [vmem:[%s822_s0 + $0xc] sm:$0xf0] }
   0xa   :  { %320 = vmatpush.bf16.msra.mxu0 %v607_v8  ;;  %v611_v25 = vld [vmem:[%s821_s1 + $0x48] sm:$0xff]  ;;  %v610_v29 = vld [vmem:[%s821_s1 + $0x40] sm:$0xff]  ;;  %v438_v35 = vld [vmem:[%s822_s0 + $0x10] sm:$0xf0] }
   0xb   :  { %339 = vmatpush.bf16.msra.mxu1 %v615_v9  ;;  %v619_v26 = vld [vmem:[%s821_s1 + $0x88] sm:$0xff]  ;;  %v618_v30 = vld [vmem:[%s821_s1 + $0x80] sm:$0xff]  ;;  %v597_v37 = vld [vmem:[%s822_s0 + $0x14] sm:$0xf0] }
   0xc   :  { %358 = vmatpush.bf16.msra.mxu2 %v623_v10  ;;  %v627_v27 = vld [vmem:[%s821_s1 + $0xc8] sm:$0xff]  ;;  %v626_v31 = vld [vmem:[%s821_s1 + $0xc0] sm:$0xff]  ;;  %v446_v39 = vld [vmem:[%s822_s0 + $0x18] sm:$0xf0] }
   0xd   :  { %377 = vmatpush.bf16.msra.mxu3 %v631_v11  ;;  %v436_v32 = vld [vmem:[%s822_s0] sm:$0xf]  ;;  %v594_v34 = vld [vmem:[%s822_s0 + $0x4] sm:$0xf]  ;;  %v444_v36 = vld [vmem:[%s822_s0 + $0x8] sm:$0xf] }
   0xe   :  { %321 = vmatpush.bf16.msra.mxu0 %v606_v12  ;;  %v595_v38 = vld [vmem:[%s822_s0 + $0xc] sm:$0xf]  ;;  %v437_v40 = vor.u32 %v596_v33, %v436_v32  ;;  %v441_v41 = vor.u32 %v594_v34, %v438_v35  ;;  %v445_v42 = vor.u32 %v597_v37, %v444_v36  ;;  %v452_v44 = vld [vmem:[%s822_s0 + $0x20] sm:$0xf]  ;;  %v600_v45 = vld [vmem:[%s822_s0 + $0x2c] sm:$0xf0] }
   0xf   :  { %340 = vmatpush.bf16.msra.mxu1 %v614_v13  ;;  %v449_v43 = vor.u32 %v595_v38, %v446_v39  ;;  %v598_v46 = vld [vmem:[%s822_s0 + $0x24] sm:$0xf]  ;;  %v454_v47 = vld [vmem:[%s822_s0 + $0x30] sm:$0xf0]  ;;  %v460_v48 = vld [vmem:[%s822_s0 + $0x28] sm:$0xf]  ;;  %v453_v52 = vor.u32 %v600_v45, %v452_v44 }
  0x10   :  { %359 = vmatpush.bf16.msra.mxu2 %v622_v14  ;;  %v601_v49 = vld [vmem:[%s822_s0 + $0x34] sm:$0xf0]  ;;  %v599_v50 = vld [vmem:[%s822_s0 + $0x2c] sm:$0xf]  ;;  %v462_v51 = vld [vmem:[%s822_s0 + $0x38] sm:$0xf0]  ;;  %v457_v53 = vor.u32 %v598_v46, %v454_v47 }
  0x11   :  { %378 = vmatpush.bf16.msra.mxu3 %v630_v15  ;;  %v461_v54 = vor.u32 %v601_v49, %v460_v48  ;;  %v465_v55 = vor.u32 %v599_v50, %v462_v51 }
  0x12   :  { %322 = vmatpush.bf16.msra.mxu0 %v605_v16 }
  0x13   :  { %341 = vmatpush.bf16.msra.mxu1 %v613_v17 }
  0x14   :  { %360 = vmatpush.bf16.msra.mxu2 %v621_v18 }
  0x15   :  { %379 = vmatpush.bf16.msra.mxu3 %v629_v19 }
  0x16   :  { %323 = vmatpush.bf16.msra.mxu0 %v604_v20 }
  0x17   :  { %342 = vmatpush.bf16.msra.mxu1 %v612_v21 }
  0x18   :  { %361 = vmatpush.bf16.msra.mxu2 %v620_v22 }
  0x19   :  { %380 = vmatpush.bf16.msra.mxu3 %v628_v23 }
  0x1a   :  { %324 = vmatpush.bf16.msra.mxu0 %v603_v24 }
  0x1b   :  { %343 = vmatpush.bf16.msra.mxu1 %v611_v25 }
  0x1c   :  { %362 = vmatpush.bf16.msra.mxu2 %v619_v26 }
  0x1d   :  { %381 = vmatpush.bf16.msra.mxu3 %v627_v27 }
  0x1e   :  { %325 = vmatpush.bf16.msra.mxu0 %v602_v28 }
  0x1f   :  { %344 = vmatpush.bf16.msra.mxu1 %v610_v29 }
  0x20   :  { %363 = vmatpush.bf16.msra.mxu2 %v618_v30 }
  0x21   :  { %382 = vmatpush.bf16.msra.mxu3 %v626_v31  ;;  %326 = vmatmul.bf16.vlgmr.msra.gmra.mxu0 %v437_v40 }
  0x22   :  { %345 = vmatmul.bf16.vlgmr.msra.gmra.mxu1 %v441_v41 }
  0x23   :  { %364 = vmatmul.bf16.vlgmr.msra.gmra.mxu2 %v445_v42 }
  0x24   :  { %383 = vmatmul.bf16.vlgmr.msra.gmra.mxu3 %v449_v43 }
  0x31   :  { %331 = vmatmul.bf16.gmra.mxu0 %v453_v52 }
  0x32   :  { %350 = vmatmul.bf16.gmra.mxu1 %v457_v53 }
  0x33   :  { %369 = vmatmul.bf16.gmra.mxu2 %v461_v54 }
  0x34   :  { %388 = vmatmul.bf16.gmra.mxu3 %v465_v55 }
  0x9e   :  { %v327_v56 = vpop.f32.mrf.mxu0 }
  0x9f   :  { %v346_v57 = vpop.f32.mrf.mxu1 }
  0xa0   :  { %v347_v58 = vadd.f32 %v346_v57, %v327_v56 }
  0xa6   :  { %v365_v59 = vpop.f32.mrf.mxu2  ;;  %v329_v62 = vpop.f32.mrf.mxu0 }
  0xa7   :  { %v384_v60 = vpop.f32.mrf.mxu3  ;;  %v366_v61 = vadd.f32 %v365_v59, %v347_v58  ;;  %v348_v63 = vpop.f32.mrf.mxu1 }
  0xa8   :  { %v349_v1 = vadd.f32 %v348_v63, %v329_v62 }
  0xa9   :  { %v385_v0 = vadd.f32 %v384_v60, %v366_v61 }
  0xab   :  { %394 = vst [vmem:[%s823_s2] sm:$0xff] %v385_v0  ;;  %v407_v18 = vmul.f32 %v385_v0, %v385_v0 }
  0xae   :  { %v367_v2 = vpop.f32.mrf.mxu2  ;;  %v332_v5 = vpop.f32.mrf.mxu0 }
  0xaf   :  { %v386_v3 = vpop.f32.mrf.mxu3  ;;  %v368_v4 = vadd.f32 %v367_v2, %v349_v1  ;;  %v351_v6 = vpop.f32.mrf.mxu1 }
  0xb0   :  { %v352_v8 = vadd.f32 %v351_v6, %v332_v5 }
  0xb1   :  { %v387_v7 = vadd.f32 %v386_v3, %v368_v4 }
  0xb3   :  { %395 = vst [vmem:[%s823_s2 + $0x8] sm:$0xff] %v387_v7  ;;  %v408_v15 = vmul.f32 %v387_v7, %v387_v7  ;;  %v398_v19 = vadd.f32 %v387_v7, %v385_v0 }
  0xb5   :  { %v411_v23 = vadd.f32 %v408_v15, %v407_v18 }
  0xb6   :  { %v370_v9 = vpop.f32.mrf.mxu2  ;;  %v334_v13 = vpop.f32.mrf.mxu0 }
  0xb7   :  { %v389_v10 = vpop.f32.mrf.mxu3  ;;  %v371_v11 = vadd.f32 %v370_v9, %v352_v8  ;;  %v353_v14 = vpop.f32.mrf.mxu1 }
  0xb8   :  { %v354_v16 = vadd.f32 %v353_v14, %v334_v13 }
  0xb9   :  { %v390_v12 = vadd.f32 %v389_v10, %v371_v11 }
  0xbb   :  { %396 = vst [vmem:[%s823_s2 + $0x10] sm:$0xff] %v390_v12  ;;  %v409_v20 = vmul.f32 %v390_v12, %v390_v12  ;;  %v399_v24 = vadd.f32 %v398_v19, %v390_v12 }
  0xbd   :  { %v412_v26 = vadd.f32 %v411_v23, %v409_v20 }
  0xbe   :  { %v372_v17 = vpop.f32.mrf.mxu2 }
  0xbf   :  { %v373_v21 = vadd.f32 %v372_v17, %v354_v16  ;;  %v391_v22 = vpop.f32.mrf.mxu3 }
  0xc1   :  { %v392_v25 = vadd.f32 %v391_v22, %v373_v21 }
  0xc3   :  { %397 = vst [vmem:[%s823_s2 + $0x18] sm:$0xff] %v392_v25  ;;  %v400_v27 = vadd.f32 %v399_v24, %v392_v25  ;;  %v410_v28 = vmul.f32 %v392_v25, %v392_v25 }
  0xc5   :  { %v401_v29 = vrot.slane %v400_v27, 4  ;;  %v413_v30 = vadd.f32 %v412_v26, %v410_v28 }
  0xc7   :  { %v402_v31 = vadd.f32 %v401_v29, %v400_v27  ;;  %v414_v32 = vrot.slane %v413_v30, 4 }
  0xc9   :  { %v403_v33 = vrot.slane %v402_v31, 2  ;;  %v415_v34 = vadd.f32 %v414_v32, %v413_v30 }
  0xcb   :  { %v404_v35 = vadd.f32 %v403_v33, %v402_v31  ;;  %v416_v36 = vrot.slane %v415_v34, 2 }
  0xcd   :  { %v405_v37 = vrot.slane %v404_v35, 1  ;;  %v417_v38 = vadd.f32 %v416_v36, %v415_v34 }
  0xcf   :  { %v406_v39 = vadd.f32 %v405_v37, %v404_v35  ;;  %v418_v40 = vrot.slane %v417_v38, 1 }
  0xd1   :  { %v419_v41 = vadd.f32 %v418_v40, %v417_v38  ;;  %420 = vst [vmem:[%s824_s3] sm:$0xff] %v406_v39 }
  0xd3   :  { %421 = vst [vmem:[%s825_s4] sm:$0xff] %v419_v41 }

// kernel: discriminator_forward.15
= control target key start
LH: loop header
LB: loop body
LE: loop exit
PB: predicated region body
PF: predicated region fallthrough
CT: control target
= control target key end

     0   :  { %s1215_s1 = inlined_call_operand.vmem [shape: bf16[1024,128], index: 1, kind: input, shape index: {}]   ;;  %s1216_s0 = inlined_call_operand.vmem [shape: bf16[8,1024], index: 0, kind: input, shape index: {}]   ;;  %s1217_s2 = inlined_call_operand.vmem [shape: f32[8,128], index: 2, kind: output, shape index: {}]  }
   0x1   :  { %v932_v0 = vld [vmem:[%s1215_s1 + $0x38] sm:$0xff]  ;;  %v931_v4 = vld [vmem:[%s1215_s1 + $0x30] sm:$0xff]  ;;  %v930_v8 = vld [vmem:[%s1215_s1 + $0x28] sm:$0xff] }
   0x2   :  { %v940_v1 = vld [vmem:[%s1215_s1 + $0x78] sm:$0xff]  ;;  %555 = vmatpush.bf16.msra.mxu0 %v932_v0  ;;  %v939_v5 = vld [vmem:[%s1215_s1 + $0x70] sm:$0xff]  ;;  %v938_v9 = vld [vmem:[%s1215_s1 + $0x68] sm:$0xff] }
   0x3   :  { %v948_v2 = vld [vmem:[%s1215_s1 + $0xb8] sm:$0xff]  ;;  %568 = vmatpush.bf16.msra.mxu1 %v940_v1  ;;  %v947_v6 = vld [vmem:[%s1215_s1 + $0xb0] sm:$0xff]  ;;  %v946_v10 = vld [vmem:[%s1215_s1 + $0xa8] sm:$0xff] }
   0x4   :  { %v956_v3 = vld [vmem:[%s1215_s1 + $0xf8] sm:$0xff]  ;;  %581 = vmatpush.bf16.msra.mxu2 %v948_v2  ;;  %v955_v7 = vld [vmem:[%s1215_s1 + $0xf0] sm:$0xff]  ;;  %v954_v11 = vld [vmem:[%s1215_s1 + $0xe8] sm:$0xff] }
   0x5   :  { %594 = vmatpush.bf16.msra.mxu3 %v956_v3  ;;  %v929_v12 = vld [vmem:[%s1215_s1 + $0x20] sm:$0xff]  ;;  %v928_v16 = vld [vmem:[%s1215_s1 + $0x18] sm:$0xff]  ;;  %v927_v20 = vld [vmem:[%s1215_s1 + $0x10] sm:$0xff] }
   0x6   :  { %556 = vmatpush.bf16.msra.mxu0 %v931_v4  ;;  %v937_v13 = vld [vmem:[%s1215_s1 + $0x60] sm:$0xff]  ;;  %v936_v17 = vld [vmem:[%s1215_s1 + $0x58] sm:$0xff]  ;;  %v935_v21 = vld [vmem:[%s1215_s1 + $0x50] sm:$0xff] }
   0x7   :  { %569 = vmatpush.bf16.msra.mxu1 %v939_v5  ;;  %v945_v14 = vld [vmem:[%s1215_s1 + $0xa0] sm:$0xff]  ;;  %v944_v18 = vld [vmem:[%s1215_s1 + $0x98] sm:$0xff]  ;;  %v943_v22 = vld [vmem:[%s1215_s1 + $0x90] sm:$0xff] }
   0x8   :  { %582 = vmatpush.bf16.msra.mxu2 %v947_v6  ;;  %v953_v15 = vld [vmem:[%s1215_s1 + $0xe0] sm:$0xff]  ;;  %v952_v19 = vld [vmem:[%s1215_s1 + $0xd8] sm:$0xff]  ;;  %v951_v23 = vld [vmem:[%s1215_s1 + $0xd0] sm:$0xff] }
   0x9   :  { %595 = vmatpush.bf16.msra.mxu3 %v955_v7  ;;  %v926_v24 = vld [vmem:[%s1215_s1 + $0x8] sm:$0xff]  ;;  %v11_v29 = vld [vmem:[%s1216_s0] sm:$0xff]  ;;  %v964_v38 = vld [vmem:[%s1215_s1 + $0x138] sm:$0xff] }
   0xa   :  { %557 = vmatpush.bf16.msra.mxu0 %v930_v8  ;;  %v934_v25 = vld [vmem:[%s1215_s1 + $0x48] sm:$0xff]  ;;  %v925_v30 = vld [vmem:[%s1215_s1] sm:$0xff]  ;;  %v147_v33 = vunpack.c.l.b16 %v11_v29  ;;  %v148_v37 = vunpack.c.h.b16 %v11_v29  ;;  %v972_v39 = vld [vmem:[%s1215_s1 + $0x178] sm:$0xff] }
   0xb   :  { %570 = vmatpush.bf16.msra.mxu1 %v938_v9  ;;  %v942_v26 = vld [vmem:[%s1215_s1 + $0x88] sm:$0xff]  ;;  %v933_v31 = vld [vmem:[%s1215_s1 + $0x40] sm:$0xff]  ;;  %v980_v40 = vld [vmem:[%s1215_s1 + $0x1b8] sm:$0xff] }
   0xc   :  { %583 = vmatpush.bf16.msra.mxu2 %v946_v10  ;;  %v950_v27 = vld [vmem:[%s1215_s1 + $0xc8] sm:$0xff]  ;;  %v941_v34 = vld [vmem:[%s1215_s1 + $0x80] sm:$0xff]  ;;  %v988_v41 = vld [vmem:[%s1215_s1 + $0x1f8] sm:$0xff]  ;;  %v155_v43 = vpack.c.b16 %v147_v33, %v147_v33  ;;  %v156_v45 = vpack.c.b16 %v148_v37, %v148_v37 }
   0xd   :  { %596 = vmatpush.bf16.msra.mxu3 %v954_v11  ;;  %v12_v28 = vld [vmem:[%s1216_s0 + $0x8] sm:$0xff]  ;;  %v949_v35 = vld [vmem:[%s1215_s1 + $0xc0] sm:$0xff]  ;;  %v963_v46 = vld [vmem:[%s1215_s1 + $0x130] sm:$0xff] }
   0xe   :  { %558 = vmatpush.bf16.msra.mxu0 %v929_v12  ;;  %v149_v32 = vunpack.c.l.b16 %v12_v28  ;;  %v150_v36 = vunpack.c.h.b16 %v12_v28  ;;  %v971_v47 = vld [vmem:[%s1215_s1 + $0x170] sm:$0xff]  ;;  %v962_v50 = vld [vmem:[%s1215_s1 + $0x128] sm:$0xff]  ;;  %v961_v54 = vld [vmem:[%s1215_s1 + $0x120] sm:$0xff] }
   0xf   :  { %571 = vmatpush.bf16.msra.mxu1 %v937_v13  ;;  %v979_v48 = vld [vmem:[%s1215_s1 + $0x1b0] sm:$0xff]  ;;  %v970_v51 = vld [vmem:[%s1215_s1 + $0x168] sm:$0xff]  ;;  %v969_v55 = vld [vmem:[%s1215_s1 + $0x160] sm:$0xff] }
  0x10   :  { %584 = vmatpush.bf16.msra.mxu2 %v945_v14  ;;  %v157_v42 = vpack.c.b16 %v149_v32, %v149_v32  ;;  %v158_v44 = vpack.c.b16 %v150_v36, %v150_v36  ;;  %v987_v49 = vld [vmem:[%s1215_s1 + $0x1f0] sm:$0xff]  ;;  %v978_v52 = vld [vmem:[%s1215_s1 + $0x1a8] sm:$0xff]  ;;  %v977_v56 = vld [vmem:[%s1215_s1 + $0x1a0] sm:$0xff] }
  0x11   :  { %597 = vmatpush.bf16.msra.mxu3 %v953_v15  ;;  %v986_v53 = vld [vmem:[%s1215_s1 + $0x1e8] sm:$0xff]  ;;  %v985_v57 = vld [vmem:[%s1215_s1 + $0x1e0] sm:$0xff]  ;;  %v960_v58 = vld [vmem:[%s1215_s1 + $0x118] sm:$0xff] }
  0x12   :  { %559 = vmatpush.bf16.msra.mxu0 %v928_v16  ;;  %v968_v59 = vld [vmem:[%s1215_s1 + $0x158] sm:$0xff]  ;;  %v959_v62 = vld [vmem:[%s1215_s1 + $0x110] sm:$0xff]  ;;  %v958_v2 = vld [vmem:[%s1215_s1 + $0x108] sm:$0xff] }
  0x13   :  { %572 = vmatpush.bf16.msra.mxu1 %v936_v17  ;;  %v976_v60 = vld [vmem:[%s1215_s1 + $0x198] sm:$0xff]  ;;  %v967_v63 = vld [vmem:[%s1215_s1 + $0x150] sm:$0xff]  ;;  %v966_v3 = vld [vmem:[%s1215_s1 + $0x148] sm:$0xff] }
  0x14   :  { %585 = vmatpush.bf16.msra.mxu2 %v944_v18  ;;  %v984_v61 = vld [vmem:[%s1215_s1 + $0x1d8] sm:$0xff]  ;;  %v975_v0 = vld [vmem:[%s1215_s1 + $0x190] sm:$0xff]  ;;  %v974_v5 = vld [vmem:[%s1215_s1 + $0x188] sm:$0xff] }
  0x15   :  { %598 = vmatpush.bf16.msra.mxu3 %v952_v19  ;;  %v983_v1 = vld [vmem:[%s1215_s1 + $0x1d0] sm:$0xff]  ;;  %v982_v6 = vld [vmem:[%s1215_s1 + $0x1c8] sm:$0xff]  ;;  %v14_v7 = vld [vmem:[%s1216_s0 + $0x18] sm:$0xff] }
  0x16   :  { %560 = vmatpush.bf16.msra.mxu0 %v927_v20  ;;  %v13_v4 = vld [vmem:[%s1216_s0 + $0x10] sm:$0xff]  ;;  %v957_v10 = vld [vmem:[%s1215_s1 + $0x100] sm:$0xff]  ;;  %v153_v12 = vunpack.c.l.b16 %v14_v7  ;;  %v154_v13 = vunpack.c.h.b16 %v14_v7 }
  0x17   :  { %573 = vmatpush.bf16.msra.mxu1 %v935_v21  ;;  %v151_v8 = vunpack.c.l.b16 %v13_v4  ;;  %v152_v9 = vunpack.c.h.b16 %v13_v4  ;;  %v965_v11 = vld [vmem:[%s1215_s1 + $0x140] sm:$0xff] }
  0x18   :  { %586 = vmatpush.bf16.msra.mxu2 %v943_v22  ;;  %v973_v14 = vld [vmem:[%s1215_s1 + $0x180] sm:$0xff]  ;;  %v161_v18 = vpack.c.b16 %v153_v12, %v153_v12  ;;  %v162_v19 = vpack.c.b16 %v154_v13, %v154_v13 }
  0x19   :  { %599 = vmatpush.bf16.msra.mxu3 %v951_v23  ;;  %v981_v15 = vld [vmem:[%s1215_s1 + $0x1c0] sm:$0xff]  ;;  %v159_v16 = vpack.c.b16 %v151_v8, %v151_v8  ;;  %v160_v17 = vpack.c.b16 %v152_v9, %v152_v9 }
  0x1a   :  { %561 = vmatpush.bf16.msra.mxu0 %v926_v24 }
  0x1b   :  { %574 = vmatpush.bf16.msra.mxu1 %v934_v25 }
  0x1c   :  { %587 = vmatpush.bf16.msra.mxu2 %v942_v26 }
  0x1d   :  { %600 = vmatpush.bf16.msra.mxu3 %v950_v27 }
  0x1e   :  { %562 = vmatpush.bf16.msra.mxu0 %v925_v30 }
  0x1f   :  { %575 = vmatpush.bf16.msra.mxu1 %v933_v31 }
  0x20   :  { %588 = vmatpush.bf16.msra.mxu2 %v941_v34 }
  0x21   :  { %601 = vmatpush.bf16.msra.mxu3 %v949_v35  ;;  %563 = vmatmul.bf16.vlgmr.msra.gmra.mxu0 %v155_v43 }
  0x22   :  { %607 = vmatpush.bf16.msrb.mxu0 %v964_v38  ;;  %576 = vmatmul.bf16.vlgmr.msra.gmra.mxu1 %v156_v45 }
  0x23   :  { %620 = vmatpush.bf16.msrb.mxu1 %v972_v39  ;;  %589 = vmatmul.bf16.vlgmr.msra.gmra.mxu2 %v157_v42 }
  0x24   :  { %633 = vmatpush.bf16.msrb.mxu2 %v980_v40  ;;  %602 = vmatmul.bf16.vlgmr.msra.gmra.mxu3 %v158_v44 }
  0x25   :  { %646 = vmatpush.bf16.msrb.mxu3 %v988_v41 }
  0x26   :  { %608 = vmatpush.bf16.msrb.mxu0 %v963_v46 }
  0x27   :  { %621 = vmatpush.bf16.msrb.mxu1 %v971_v47 }
  0x28   :  { %634 = vmatpush.bf16.msrb.mxu2 %v979_v48 }
  0x29   :  { %647 = vmatpush.bf16.msrb.mxu3 %v987_v49 }
  0x2a   :  { %609 = vmatpush.bf16.msrb.mxu0 %v962_v50 }
  0x2b   :  { %622 = vmatpush.bf16.msrb.mxu1 %v970_v51 }
  0x2c   :  { %635 = vmatpush.bf16.msrb.mxu2 %v978_v52 }
  0x2d   :  { %648 = vmatpush.bf16.msrb.mxu3 %v986_v53 }
  0x2e   :  { %610 = vmatpush.bf16.msrb.mxu0 %v961_v54 }
  0x2f   :  { %623 = vmatpush.bf16.msrb.mxu1 %v969_v55 }
  0x30   :  { %636 = vmatpush.bf16.msrb.mxu2 %v977_v56 }
  0x31   :  { %649 = vmatpush.bf16.msrb.mxu3 %v985_v57 }
  0x32   :  { %611 = vmatpush.bf16.msrb.mxu0 %v960_v58 }
  0x33   :  { %624 = vmatpush.bf16.msrb.mxu1 %v968_v59 }
  0x34   :  { %637 = vmatpush.bf16.msrb.mxu2 %v976_v60 }
  0x35   :  { %650 = vmatpush.bf16.msrb.mxu3 %v984_v61 }
  0x36   :  { %612 = vmatpush.bf16.msrb.mxu0 %v959_v62 }
  0x37   :  { %625 = vmatpush.bf16.msrb.mxu1 %v967_v63 }
  0x38   :  { %638 = vmatpush.bf16.msrb.mxu2 %v975_v0 }
  0x39   :  { %651 = vmatpush.bf16.msrb.mxu3 %v983_v1 }
  0x3a   :  { %613 = vmatpush.bf16.msrb.mxu0 %v958_v2 }
  0x3b   :  { %626 = vmatpush.bf16.msrb.mxu1 %v966_v3 }
  0x3c   :  { %639 = vmatpush.bf16.msrb.mxu2 %v974_v5 }
  0x3d   :  { %652 = vmatpush.bf16.msrb.mxu3 %v982_v6 }
  0x3e   :  { %614 = vmatpush.bf16.msrb.mxu0 %v957_v10 }
  0x3f   :  { %627 = vmatpush.bf16.msrb.mxu1 %v965_v11 }
  0x40   :  { %640 = vmatpush.bf16.msrb.mxu2 %v973_v14 }
  0x41   :  { %653 = vmatpush.bf16.msrb.mxu3 %v981_v15  ;;  %615 = vmatmul.bf16.vlgmr.msrb.gmra.mxu0 %v159_v16 }
  0x42   :  { %628 = vmatmul.bf16.vlgmr.msrb.gmra.mxu1 %v160_v17 }
  0x43   :  { %641 = vmatmul.bf16.vlgmr.msrb.gmra.mxu2 %v161_v18 }
  0x44   :  { %654 = vmatmul.bf16.vlgmr.msrb.gmra.mxu3 %v162_v19 }
  0x9e   :  { %v564_v20 = vpop.f32.mrf.mxu0 }
  0x9f   :  { %v577_v21 = vpop.f32.mrf.mxu1 }
  0xa0   :  { %v578_v28 = vadd.f32 %v577_v21, %v564_v20 }
  0xa6   :  { %v590_v22 = vpop.f32.mrf.mxu2  ;;  %v566_v24 = vpop.f32.mrf.mxu0 }
  0xa7   :  { %v603_v23 = vpop.f32.mrf.mxu3  ;;  %v579_v25 = vpop.f32.mrf.mxu1  ;;  %v591_v29 = vadd.f32 %v590_v22, %v578_v28 }
  0xa9   :  { %v604_v30 = vadd.f32 %v603_v23, %v591_v29 }
  0xae   :  { %v592_v26 = vpop.f32.mrf.mxu2 }
  0xaf   :  { %v605_v27 = vpop.f32.mrf.mxu3 }
  0xbe   :  { %v616_v31 = vpop.f32.mrf.mxu0 }
  0xbf   :  { %v629_v32 = vpop.f32.mrf.mxu1  ;;  %v617_v33 = vadd.f32 %v616_v31, %v604_v30 }
  0xc1   :  { %v630_v34 = vadd.f32 %v629_v32, %v617_v33 }
  0xc6   :  { %v642_v35 = vpop.f32.mrf.mxu2  ;;  %v618_v38 = vpop.f32.mrf.mxu0 }
  0xc7   :  { %v655_v36 = vpop.f32.mrf.mxu3  ;;  %v643_v37 = vadd.f32 %v642_v35, %v630_v34  ;;  %v631_v39 = vpop.f32.mrf.mxu1 }
  0xc9   :  { %v656_v40 = vadd.f32 %v655_v36, %v643_v37 }
  0xcb   :  { %v659_v41 = vsub.f32 0.0, %v656_v40 }
  0xcd   :  { %v660_v42 = vmul.f32 1.442695, %v659_v41 }
  0xce   :  { %v644_v43 = vpop.f32.mrf.mxu2 }
  0xcf   :  { %v657_v44 = vpop.f32.mrf.mxu3  ;;  %989 = vpow2.f32 %v660_v42 }
  0xd5   :  { %v990_v45 = vpop.eup %989 }
  0xd6   :  { %v662_v46 = vadd.f32 1.0, %v990_v45 }
  0xd8   :  { %991 = vrcp.f32 %v662_v46 }
  0xde   :  { %v992_v47 = vpop.eup %991 }
  0xdf   :  { %664 = vst [vmem:[%s1217_s2] sm:$0xff] %v992_v47 }

</bundles_post_ra>
